<compile_context>
chip_gen: v6e
topology: v6e:2x2x1
jax: 0.10.0
libtpu: 0.0.40
codegen_flags: <defaults>
</compile_context>

<pallas_src>
import math
from functools import partial

import jax
import jax.numpy as jnp
from jax.experimental import pallas as pl
from jax.experimental.pallas import tpu as pltpu


# ---------------------------------------------------------------------------
# Small helpers
# ---------------------------------------------------------------------------
def _gelu(x):
    # tanh-approximate GELU (== torch.nn.GELU(approximate='tanh')); max abs
    # deviation from the exact erf form ~3e-4.  tanh goes to the EUP slot,
    # freeing VALU in these store-bound pointwise kernels.
    c = 0.7978845608028654  # sqrt(2/pi)
    return 0.5 * x * (1.0 + jnp.tanh(c * (x + 0.044715 * x * x * x)))


_VMEM_LIMIT_CACHE = [None]


def _vmem_limit_bytes():
    # Generation-aware scoped-VMEM budget: v5e/v6e have 128 MiB physical VMEM
    # -> allow 80 MiB; v7x has 64 MiB -> cap at 48 MiB.  Falls back to a safe
    # 48 MiB if the hardware query is unavailable.
    if _VMEM_LIMIT_CACHE[0] is None:
        cap = None
        try:
            cap = getattr(pltpu.get_tpu_info(), "vmem_capacity_bytes", None)
        except Exception:
            cap = None
        if cap is not None and cap >= 100 * 1024 * 1024:
            _VMEM_LIMIT_CACHE[0] = 80 * 1024 * 1024
        else:
            _VMEM_LIMIT_CACHE[0] = 48 * 1024 * 1024
    return _VMEM_LIMIT_CACHE[0]


def _mosaic_params(dimension_semantics):
    return pltpu.CompilerParams(dimension_semantics=dimension_semantics,
                                vmem_limit_bytes=_vmem_limit_bytes())


def _rows_blocking(n, *, min_steps=4, max_rows=1024):
    """Row-block size for pointwise kernels: largest multiple-of-8 divisor of n
    giving >= min_steps grid steps (>= 2 per v7x TensorCore so the pipeline
    double-buffers); fall back to the largest divisor, then to padding."""
    divs = [d for d in range(8, min(n, max_rows) + 1, 8) if n % d == 0]
    if divs:
        good = [d for d in divs if n // d >= min_steps]
        blk = max(good) if good else max(divs)
        return blk, n
    blk = min(max_rows, 256)
    return blk, pl.cdiv(n, blk) * blk


def _pick_tile(n, align, max_tile):
    """Largest multiple-of-`align` divisor of n that is <= max_tile
    (n is guaranteed to be a multiple of `align` by the callers)."""
    best = align
    t = align
    while t <= min(n, max_tile):
        if n % t == 0:
            best = t
        t += align
    return best


# ---------------------------------------------------------------------------
# Pallas kernels
# ---------------------------------------------------------------------------
def _mlp2_kernel(x_ref, w1_ref, b1_ref, w2_ref, b2_ref, o_ref):
    """Fused (x @ w1 + b1) -> GELU -> (@ w2 + b2); intermediate stays in VMEM."""
    h = jnp.dot(x_ref[...], w1_ref[...], preferred_element_type=jnp.float32)
    h = _gelu(h + b1_ref[...])
    o_ref[...] = jnp.dot(h, w2_ref[...],
                         preferred_element_type=jnp.float32) + b2_ref[...]


def mlp2(x, w1, b1, w2, b2):
    """Fused two-layer pointwise MLP (1x1 conv -> GELU -> 1x1 conv).
    x: [N, Cin] -> [N, Cout]."""
    n, cin = x.shape
    mid = w1.shape[1]
    cout = w2.shape[1]
    bn, n_pad = _rows_blocking(n)
    xp = x if n_pad == n else jnp.pad(x, ((0, n_pad - n), (0, 0)))
    # TODO(synk): output last dim (cout=32/3) is lane-sparse; a lane-dense
    # [n/4, 128] out view needs an in-kernel minor-dim relayout (kept off for
    # Mosaic-reshape robustness).
    out = pl.pallas_call(
        _mlp2_kernel,
        out_shape=jax.ShapeDtypeStruct((n_pad, cout), jnp.float32),
        grid=(n_pad // bn,),
        in_specs=[
            pl.BlockSpec((bn, cin), lambda i: (i, 0)),
            pl.BlockSpec((cin, mid), lambda i: (0, 0)),
            pl.BlockSpec((1, mid), lambda i: (0, 0)),
            pl.BlockSpec((mid, cout), lambda i: (0, 0)),
            pl.BlockSpec((1, cout), lambda i: (0, 0)),
        ],
        out_specs=pl.BlockSpec((bn, cout), lambda i: (i, 0)),
        compiler_params=_mosaic_params(("parallel",)),
    )(xp, w1, b1.reshape(1, mid), w2, b2.reshape(1, cout))
    return out if n_pad == n else out[:n]


def _spectral_matmul_kernel(a_ref, k_ref, o_ref, acc_ref):
    """One M/N/K tile of  activation(bf16) @ folded-spectral-operator(bf16),
    f32 accumulation, reduction axis last."""
    @pl.when(pl.program_id(2) == 0)
    def _():
        acc_ref[...] = jnp.zeros_like(acc_ref)

    acc_ref[...] += jnp.dot(a_ref[...].astype(jnp.bfloat16), k_ref[...],
                            preferred_element_type=jnp.float32)

    @pl.when(pl.program_id(2) == pl.num_programs(2) - 1)
    def _():
        o_ref[...] = acc_ref[...]


def spectral_matmul(a, k_op):
    """a: [M, K] float32 activation view; k_op: [K, N] bfloat16 folded spectral
    operator.  Returns float32 [M, N].  Tiled (bm, bn, bk) with an f32 VMEM
    accumulator; M/N parallel (megacore), K arbitrary (reduction last)."""
    m, kdim = a.shape
    kdim2, n = k_op.shape
    assert kdim == kdim2
    m_pad = pl.cdiv(m, 8) * 8
    k_pad = pl.cdiv(kdim, 128) * 128
    n_pad = pl.cdiv(n, 128) * 128
    if (m_pad, k_pad) != (m, kdim):
        a = jnp.pad(a, ((0, m_pad - m), (0, k_pad - kdim)))
    if (k_pad, n_pad) != (kdim, n):
        k_op = jnp.pad(k_op, ((0, k_pad - kdim), (0, n_pad - n)))
    bm = _pick_tile(m_pad, 8, 256)      # >=256 rows per MXU push where M allows
    bn = _pick_tile(n_pad, 128, 512)    # lane-dense output blocks
    bk = _pick_tile(k_pad, 128, 1024)   # stream the operator; VMEM stays bounded
    out = pl.pallas_call(
        _spectral_matmul_kernel,
        out_shape=jax.ShapeDtypeStruct((m_pad, n_pad), jnp.float32),
        grid=(m_pad // bm, n_pad // bn, k_pad // bk),
        in_specs=[
            pl.BlockSpec((bm, bk), lambda i, j, kk: (i, kk)),
            pl.BlockSpec((bk, bn), lambda i, j, kk: (kk, j)),
        ],
        out_specs=pl.BlockSpec((bm, bn), lambda i, j, kk: (i, j)),
        scratch_shapes=[pltpu.VMEM((bm, bn), jnp.float32)],
        compiler_params=_mosaic_params(("parallel", "parallel", "arbitrary")),
    )(a, k_op)
    if (m_pad, n_pad) != (m, n):
        out = out[:m, :n]
    return out


def _layer_tail_kernel(sy_ref, sx_ref, h_ref, w1_ref, b1_ref, w2_ref, b2_ref, o_ref):
    """gelu(spec_y + spec_x) + FeedForward(h)  (Linear -> ReLU -> Linear),
    fused so the skip intermediate never leaves VMEM."""
    mid = jnp.maximum(
        jnp.dot(h_ref[...], w1_ref[...], preferred_element_type=jnp.float32)
        + b1_ref[...], 0.0)
    skip = jnp.dot(mid, w2_ref[...],
                   preferred_element_type=jnp.float32) + b2_ref[...]
    o_ref[...] = _gelu(sy_ref[...] + sx_ref[...]) + skip


def layer_tail(sy, sx, h, w1, b1, w2, b2):
    """sy, sx, h: [N, C] -> [N, C]."""
    n, c = h.shape
    mid = w1.shape[1]
    bn, n_pad = _rows_blocking(n)
    if n_pad != n:
        pad = ((0, n_pad - n), (0, 0))
        sy, sx, h = jnp.pad(sy, pad), jnp.pad(sx, pad), jnp.pad(h, pad)
    # TODO(synk): fusing the Y-axis spectral matmul here (removing the sy HBM
    # round trip) needs an in-kernel [bn, Wp*C] <-> [bn*Wp, C] relayout that
    # Mosaic cannot be relied on to lower cheaply; kept as a separate launch.
    out = pl.pallas_call(
        _layer_tail_kernel,
        out_shape=jax.ShapeDtypeStruct((n_pad, c), jnp.float32),
        grid=(n_pad // bn,),
        in_specs=[
            pl.BlockSpec((bn, c), lambda i: (i, 0)),
            pl.BlockSpec((bn, c), lambda i: (i, 0)),
            pl.BlockSpec((bn, c), lambda i: (i, 0)),
            pl.BlockSpec((c, mid), lambda i: (0, 0)),
            pl.BlockSpec((1, mid), lambda i: (0, 0)),
            pl.BlockSpec((mid, c), lambda i: (0, 0)),
            pl.BlockSpec((1, c), lambda i: (0, 0)),
        ],
        out_specs=pl.BlockSpec((bn, c), lambda i: (i, 0)),
        compiler_params=_mosaic_params(("parallel",)),
    )(sy, sx, h, w1, b1.reshape(1, mid), w2, b2.reshape(1, c))
    return out if n_pad == n else out[:n]


# ---------------------------------------------------------------------------
# Folded per-axis spectral operator (rDFT -> complex mode mix -> inverse rDFT)
# Precomputed ONCE outside the jitted forward (it only depends on parameters).
# ---------------------------------------------------------------------------
def _spectral_operator(size, modes, wr, wi):
    """Fold  irfft( rfft(x, norm='ortho')[..., :modes, :] @ (wr + i*wi),
                    n=size, norm='ortho')
    along one spatial axis into a single real [size*Cin, size*Cout] operator,
    applied as a right matmul on the [rows, size*Cin] flattened activation.
    Returned in bfloat16 for the MXU (matmuls accumulate in f32)."""
    cin, cout = wr.shape[1], wr.shape[2]
    k = jnp.arange(modes, dtype=jnp.float32)
    pos = jnp.arange(size, dtype=jnp.float32)
    inv_sqrt = 1.0 / math.sqrt(size)
    # forward truncated rDFT (ortho):  fwd[w, k] = e^{-2*pi*i*k*w/size}/sqrt(size)
    ang_f = (2.0 * math.pi / size) * jnp.outer(pos, k)            # [S, m]
    fr, fi = jnp.cos(ang_f) * inv_sqrt, -jnp.sin(ang_f) * inv_sqrt
    # inverse rDFT coefficients with c_k doubling of non-DC/non-Nyquist bins;
    # Re() extraction (imag of DC/Nyquist dropped) matches c2r irfft semantics.
    c = jnp.where((k == 0) | (2.0 * k == float(size)), 1.0, 2.0) * inv_sqrt
    ang_g = (2.0 * math.pi / size) * jnp.outer(k, pos)             # [m, S]
    gr, gi = jnp.cos(ang_g) * c[:, None], jnp.sin(ang_g) * c[:, None]
    # P[w, k, v] = fwd[w, k] * inv[k, v]
    pr = fr[:, :, None] * gr[None, :, :] - fi[:, :, None] * gi[None, :, :]
    pi = fr[:, :, None] * gi[None, :, :] + fi[:, :, None] * gr[None, :, :]
    # kmat[w, i, v, o] = sum_k Re(P[w, k, v] * (wr + i*wi)[k, i, o])
    kmat = (jnp.einsum("wkv,kio->wivo", pr, wr)
            - jnp.einsum("wkv,kio->wivo", pi, wi))
    # TODO(synk): at large S*C this dense operator is O((S*C)^2) in HBM; the
    # fully factorized (DFT / per-mode 2Cx2C mix / iDFT) in-kernel form would
    # shrink it to O(modes*C^2) but needs batched second-minor contractions.
    return kmat.reshape(size * cin, size * cout).astype(jnp.bfloat16)


def precompute_spectral_operators(params, H, W, domain_padding, modes):
    """Build the per-layer (ky, kx) folded operators once, outside jit."""
    ph = int(round(domain_padding * H))
    pw = int(round(domain_padding * W))
    Hp, Wp = H + ph, W + pw
    ops = []
    for sl in params["spectral"]:
        ky = _spectral_operator(Wp, modes, sl["wy_r"], sl["wy_i"])   # W-axis
        kx = _spectral_operator(Hp, modes, sl["wx_r"], sl["wx_i"])   # H-axis
        ops.append((ky, kx))
    return tuple(ops)


# ---------------------------------------------------------------------------
# Forward pass (eval mode: dropouts are identity)
# ---------------------------------------------------------------------------
def fno_factorized_2d_block(x_nchw, params, spectral_ops, *, domain_padding,
                            n_layers):
    x = jnp.transpose(x_nchw, (0, 2, 3, 1)).astype(jnp.float32)   # NCHW -> NHWC
    B, H, W, cin = x.shape
    hidden = params["lift2"][0].shape[1]

    # lifting: Conv1x1 -> GELU -> Conv1x1 (single fused kernel)
    h = mlp2(x.reshape(B * H * W, cin), *params["lift1"], *params["lift2"])
    h = h.reshape(B, H, W, hidden)

    # domain padding (one-sided zero pad at the end of each spatial axis)
    ph = int(round(domain_padding * H))
    pw = int(round(domain_padding * W))
    h = jnp.pad(h, ((0, 0), (0, ph), (0, pw), (0, 0)))
    Hp, Wp = H + ph, W + pw
    npix = B * Hp * Wp

    for i in range(n_layers):
        ky, kx = spectral_ops[i]
        # Y (width) axis spectral conv: lane-dense [B*Hp, Wp*C] view.
        sy = spectral_matmul(h.reshape(B * Hp, Wp * hidden), ky)
        # TODO(synk): the [B,Hp,Wp,C] <-> [B,Wp,Hp,C] transposes stay in XLA;
        # folding them into Pallas index_maps needs an in-kernel second-minor
        # relayout Mosaic can't do cheaply.
        hx = jnp.transpose(h, (0, 2, 1, 3)).reshape(B * Wp, Hp * hidden)
        sxx = spectral_matmul(hx, kx)
        sx = jnp.transpose(sxx.reshape(B, Wp, Hp, hidden), (0, 2, 1, 3))

        ff = params["ff"][i]
        h = layer_tail(sy.reshape(npix, hidden),
                       sx.reshape(npix, hidden),
                       h.reshape(npix, hidden),
                       *ff["w1"], *ff["w2"]).reshape(B, Hp, Wp, hidden)

    h = h[:, :H, :W, :]  # unpad

    # projection: Conv1x1 -> GELU -> Conv1x1 (single fused kernel)
    y = mlp2(h.reshape(B * H * W, hidden), *params["proj1"], *params["proj2"])
    out_channels = params["proj2"][0].shape[1]
    return jnp.transpose(y.reshape(B, H, W, out_channels), (0, 3, 1, 2))  # NCHW


# ---------------------------------------------------------------------------
# Deterministic parameter init (synthetic, no checkpoint loading)
# ---------------------------------------------------------------------------
def _lin(key, cin, cout):
    kw, kb = jax.random.split(key)
    w = jax.random.normal(kw, (cin, cout), jnp.float32) * (1.0 / math.sqrt(cin))
    b = jax.random.normal(kb, (cout,), jnp.float32) * 0.01
    return w, b


def init_params(key, in_channels, out_channels, hidden, modes, n_layers, factor):
    ks = iter(jax.random.split(key, 4 + 2 * n_layers))
    p = {
        "lift1": _lin(next(ks), in_channels, 128),
        "lift2": _lin(next(ks), 128, hidden),
        "proj1": _lin(next(ks), hidden, 128),
        "proj2": _lin(next(ks), 128, out_channels),
        "spectral": [],
        "ff": [],
    }
    scale = 1.0 / math.sqrt(hidden)
    for _ in range(n_layers):
        k1, k2, k3, k4 = jax.random.split(next(ks), 4)
        p["spectral"].append(dict(
            wy_r=jax.random.normal(k1, (modes, hidden, hidden), jnp.float32) * scale,
            wy_i=jax.random.normal(k2, (modes, hidden, hidden), jnp.float32) * scale,
            wx_r=jax.random.normal(k3, (modes, hidden, hidden), jnp.float32) * scale,
            wx_i=jax.random.normal(k4, (modes, hidden, hidden), jnp.float32) * scale,
        ))
        kf1, kf2 = jax.random.split(next(ks))
        p["ff"].append(dict(
            w1=_lin(kf1, hidden, hidden * factor),
            w2=_lin(kf2, hidden * factor, hidden),
        ))
    return p


if __name__ == "__main__":
    B, Cin, Cout, H, W = 2, 4, 3, 16, 16
    hidden, modes, n_layers, factor = 32, 8, 4, 2
    domain_padding = 0.25

    key = jax.random.PRNGKey(0)
    kx_, kp = jax.random.split(key)
    x = jax.random.normal(kx_, (B, Cin, H, W), jnp.float32)
    params = init_params(kp, Cin, Cout, hidden, modes, n_layers, factor)

    # Spectral operators folded once, OUTSIDE the jitted forward (static params).
    spectral_ops = jax.block_until_ready(
        precompute_spectral_operators(params, H, W, domain_padding, modes))

    fwd = jax.jit(partial(fno_factorized_2d_block,
                          domain_padding=domain_padding, n_layers=n_layers))
    out = fwd(x, params, spectral_ops)
    jax.block_until_ready(out)
    assert out.shape == (B, Cout, H, W), out.shape
    assert out.dtype == jnp.float32
    assert bool(jnp.all(jnp.isfinite(out)))
    print("KERNEL_OK")
</pallas_src>

<mosaic_0001>
module attributes {stable_mosaic.version = 11 : i64} {
  func.func @_mlp2_kernel(%arg0: i32, %arg1: memref<128x4xf32, #tpu.memory_space<vmem>>, %arg2: memref<4x128xf32, #tpu.memory_space<vmem>>, %arg3: memref<1x128xf32, #tpu.memory_space<vmem>>, %arg4: memref<128x32xf32, #tpu.memory_space<vmem>>, %arg5: memref<1x32xf32, #tpu.memory_space<vmem>>, %arg6: memref<128x32xf32, #tpu.memory_space<vmem>>) attributes {dimension_semantics = [#tpu.dimension_semantics<parallel>], iteration_bounds = array<i64: 4>, scalar_prefetch = 0 : i64, scratch_operands = 0 : i64, tpu.core_type = #tpu.core_type<tc>, window_params = [{transform_indices = @transform_0, window_bounds = array<i64: 128, 4>}, {pipeline_mode = #tpu.pipeline_mode<synchronous>, transform_indices = @transform_1, window_bounds = array<i64: 4, 128>}, {pipeline_mode = #tpu.pipeline_mode<synchronous>, transform_indices = @transform_2, window_bounds = array<i64: 1, 128>}, {pipeline_mode = #tpu.pipeline_mode<synchronous>, transform_indices = @transform_3, window_bounds = array<i64: 128, 32>}, {pipeline_mode = #tpu.pipeline_mode<synchronous>, transform_indices = @transform_4, window_bounds = array<i64: 1, 32>}, {transform_indices = @transform_5, window_bounds = array<i64: 128, 32>}]} {
    %c0 = arith.constant 0 : index
    %c0_0 = arith.constant 0 : index
    %0 = vector.load %arg1[%c0, %c0_0] : memref<128x4xf32, #tpu.memory_space<vmem>>, vector<128x4xf32>
    %c0_1 = arith.constant 0 : index
    %c0_2 = arith.constant 0 : index
    %1 = vector.load %arg2[%c0_1, %c0_2] : memref<4x128xf32, #tpu.memory_space<vmem>>, vector<4x128xf32>
    %cst = arith.constant dense<0.000000e+00> : vector<128x128xf32>
    %2 = tpu.matmul %0, %1, %cst {dimension_numbers = #tpu.dot_dimension_numbers<[1], [0], [0], [1], [0, 0, 1, 1], [], []>} : vector<128x4xf32>, vector<4x128xf32>, vector<128x128xf32> -> vector<128x128xf32>
    %c0_3 = arith.constant 0 : index
    %c0_4 = arith.constant 0 : index
    %3 = vector.load %arg3[%c0_3, %c0_4] : memref<1x128xf32, #tpu.memory_space<vmem>>, vector<1x128xf32>
    %4 = vector.broadcast %3 : vector<1x128xf32> to vector<128x128xf32>
    %5 = arith.addf %2, %4 : vector<128x128xf32>
    %cst_5 = arith.constant 5.000000e-01 : f32
    %6 = vector.broadcast %cst_5 : f32 to vector<128x128xf32>
    %7 = arith.mulf %6, %5 : vector<128x128xf32>
    %cst_6 = arith.constant 4.471500e-02 : f32
    %8 = vector.broadcast %cst_6 : f32 to vector<128x128xf32>
    %9 = arith.mulf %8, %5 : vector<128x128xf32>
    %10 = arith.mulf %9, %5 : vector<128x128xf32>
    %11 = arith.mulf %10, %5 : vector<128x128xf32>
    %12 = arith.addf %5, %11 : vector<128x128xf32>
    %cst_7 = arith.constant 0.797884583 : f32
    %13 = vector.broadcast %cst_7 : f32 to vector<128x128xf32>
    %14 = arith.mulf %13, %12 : vector<128x128xf32>
    %15 = math.tanh %14 : vector<128x128xf32>
    %cst_8 = arith.constant 1.000000e+00 : f32
    %16 = vector.broadcast %cst_8 : f32 to vector<128x128xf32>
    %17 = arith.addf %16, %15 : vector<128x128xf32>
    %18 = arith.mulf %7, %17 : vector<128x128xf32>
    %c0_9 = arith.constant 0 : index
    %c0_10 = arith.constant 0 : index
    %19 = vector.load %arg4[%c0_9, %c0_10] : memref<128x32xf32, #tpu.memory_space<vmem>>, vector<128x32xf32>
    %cst_11 = arith.constant dense<0.000000e+00> : vector<128x32xf32>
    %20 = tpu.matmul %18, %19, %cst_11 {dimension_numbers = #tpu.dot_dimension_numbers<[1], [0], [0], [1], [0, 0, 1, 1], [], []>} : vector<128x128xf32>, vector<128x32xf32>, vector<128x32xf32> -> vector<128x32xf32>
    %c0_12 = arith.constant 0 : index
    %c0_13 = arith.constant 0 : index
    %21 = vector.load %arg5[%c0_12, %c0_13] : memref<1x32xf32, #tpu.memory_space<vmem>>, vector<1x32xf32>
    %22 = vector.broadcast %21 : vector<1x32xf32> to vector<128x32xf32>
    %23 = arith.addf %20, %22 : vector<128x32xf32>
    %c0_14 = arith.constant 0 : index
    %c0_15 = arith.constant 0 : index
    %24 = vector.load %arg6[%c0_14, %c0_15] : memref<128x32xf32, #tpu.memory_space<vmem>>, vector<128x32xf32>
    tpu.vector_store %arg6[%c0_14, %c0_15], %23 {strides = array<i32>} : memref<128x32xf32, #tpu.memory_space<vmem>>, vector<128x32xf32>,
    return
  }
  func.func @transform_0(%arg0: i32) -> (i32, i32) {
    %c0_i32 = arith.constant 0 : i32
    %c0_i32_0 = arith.constant 0 : i32
    return %arg0, %c0_i32 : i32, i32
  }
  func.func @transform_1(%arg0: i32) -> (i32, i32) {
    %c0_i32 = arith.constant 0 : i32
    %c0_i32_0 = arith.constant 0 : i32
    %c0_i32_1 = arith.constant 0 : i32
    return %c0_i32, %c0_i32_0 : i32, i32
  }
  func.func @transform_2(%arg0: i32) -> (i32, i32) {
    %c0_i32 = arith.constant 0 : i32
    %c0_i32_0 = arith.constant 0 : i32
    %c0_i32_1 = arith.constant 0 : i32
    return %c0_i32, %c0_i32_0 : i32, i32
  }
  func.func @transform_3(%arg0: i32) -> (i32, i32) {
    %c0_i32 = arith.constant 0 : i32
    %c0_i32_0 = arith.constant 0 : i32
    %c0_i32_1 = arith.constant 0 : i32
    return %c0_i32, %c0_i32_0 : i32, i32
  }
  func.func @transform_4(%arg0: i32) -> (i32, i32) {
    %c0_i32 = arith.constant 0 : i32
    %c0_i32_0 = arith.constant 0 : i32
    %c0_i32_1 = arith.constant 0 : i32
    return %c0_i32, %c0_i32_0 : i32, i32
  }
  func.func @transform_5(%arg0: i32) -> (i32, i32) {
    %c0_i32 = arith.constant 0 : i32
    %c0_i32_0 = arith.constant 0 : i32
    return %arg0, %c0_i32 : i32, i32
  }
}

module attributes {stable_mosaic.version = 11 : i64} {
  func.func @_spectral_matmul_kernel(%arg0: i32, %arg1: i32, %arg2: i32, %arg3: memref<40x640xf32, #tpu.memory_space<vmem>>, %arg4: memref<640x128xbf16, #tpu.memory_space<vmem>>, %arg5: memref<40x128xf32, #tpu.memory_space<vmem>>, %arg6: memref<40x128xf32, #tpu.memory_space<vmem>>) attributes {dimension_semantics = [#tpu.dimension_semantics<parallel>, #tpu.dimension_semantics<parallel>, #tpu.dimension_semantics<arbitrary>], iteration_bounds = array<i64: 1, 5, 1>, scalar_prefetch = 0 : i64, scratch_operands = 1 : i64, tpu.core_type = #tpu.core_type<tc>, window_params = [{transform_indices = @transform_0, window_bounds = array<i64: 40, 640>}, {transform_indices = @transform_1, window_bounds = array<i64: 640, 128>}, {transform_indices = @transform_2, window_bounds = array<i64: 40, 128>}]} {
    %c0_i32 = arith.constant 0 : i32
    %0 = arith.cmpi eq, %arg2, %c0_i32 : i32
    %1 = arith.extui %0 : i1 to i32
    %c0_i32_0 = arith.constant 0 : i32
    %2 = arith.cmpi ne, %1, %c0_i32_0 : i32
    scf.if %2 {
      %cst_10 = arith.constant 0.000000e+00 : f32
      %13 = vector.broadcast %cst_10 : f32 to vector<40x128xf32>
      %c0_11 = arith.constant 0 : index
      %c0_12 = arith.constant 0 : index
      %14 = vector.load %arg6[%c0_11, %c0_12] : memref<40x128xf32, #tpu.memory_space<vmem>>, vector<40x128xf32>
      tpu.vector_store %arg6[%c0_11, %c0_12], %13 {strides = array<i32>} : memref<40x128xf32, #tpu.memory_space<vmem>>, vector<40x128xf32>,
    } else {
    }
    %c0 = arith.constant 0 : index
    %c0_1 = arith.constant 0 : index
    %3 = vector.load %arg6[%c0, %c0_1] : memref<40x128xf32, #tpu.memory_space<vmem>>, vector<40x128xf32>
    %c0_2 = arith.constant 0 : index
    %c0_3 = arith.constant 0 : index
    %4 = vector.load %arg3[%c0_2, %c0_3] : memref<40x640xf32, #tpu.memory_space<vmem>>, vector<40x640xf32>
    %5 = arith.truncf %4 : vector<40x640xf32> to vector<40x640xbf16>
    %c0_4 = arith.constant 0 : index
    %c0_5 = arith.constant 0 : index
    %6 = vector.load %arg4[%c0_4, %c0_5] : memref<640x128xbf16, #tpu.memory_space<vmem>>, vector<640x128xbf16>
    %cst = arith.constant dense<0.000000e+00> : vector<40x128xf32>
    %7 = tpu.matmul %5, %6, %cst {dimension_numbers = #tpu.dot_dimension_numbers<[1], [0], [0], [1], [0, 0, 1, 1], [], []>} : vector<40x640xbf16>, vector<640x128xbf16>, vector<40x128xf32> -> vector<40x128xf32>
    %8 = arith.addf %3, %7 : vector<40x128xf32>
    %c0_6 = arith.constant 0 : index
    %c0_7 = arith.constant 0 : index
    %9 = vector.load %arg6[%c0_6, %c0_7] : memref<40x128xf32, #tpu.memory_space<vmem>>, vector<40x128xf32>
    tpu.vector_store %arg6[%c0_6, %c0_7], %8 {strides = array<i32>} : memref<40x128xf32, #tpu.memory_space<vmem>>, vector<40x128xf32>,
    %c0_i32_8 = arith.constant 0 : i32
    %10 = arith.cmpi eq, %arg2, %c0_i32_8 : i32
    %11 = arith.extui %10 : i1 to i32
    %c0_i32_9 = arith.constant 0 : i32
    %12 = arith.cmpi ne, %11, %c0_i32_9 : i32
    scf.if %12 {
      %c0_10 = arith.constant 0 : index
      %c0_11 = arith.constant 0 : index
      %13 = vector.load %arg6[%c0_10, %c0_11] : memref<40x128xf32, #tpu.memory_space<vmem>>, vector<40x128xf32>
      %c0_12 = arith.constant 0 : index
      %c0_13 = arith.constant 0 : index
      %14 = vector.load %arg5[%c0_12, %c0_13] : memref<40x128xf32, #tpu.memory_space<vmem>>, vector<40x128xf32>
      tpu.vector_store %arg5[%c0_12, %c0_13], %13 {strides = array<i32>} : memref<40x128xf32, #tpu.memory_space<vmem>>, vector<40x128xf32>,
    } else {
    }
    return
  }
  func.func @transform_0(%arg0: i32, %arg1: i32, %arg2: i32) -> (i32, i32) {
    %c0_i32 = arith.constant 0 : i32
    return %arg0, %arg2 : i32, i32
  }
  func.func @transform_1(%arg0: i32, %arg1: i32, %arg2: i32) -> (i32, i32) {
    %c0_i32 = arith.constant 0 : i32
    return %arg2, %arg1 : i32, i32
  }
  func.func @transform_2(%arg0: i32, %arg1: i32, %arg2: i32) -> (i32, i32) {
    %c0_i32 = arith.constant 0 : i32
    return %arg0, %arg1 : i32, i32
  }
}

module attributes {stable_mosaic.version = 11 : i64} {
  func.func @_layer_tail_kernel(%arg0: i32, %arg1: memref<200x32xf32, #tpu.memory_space<vmem>>, %arg2: memref<200x32xf32, #tpu.memory_space<vmem>>, %arg3: memref<200x32xf32, #tpu.memory_space<vmem>>, %arg4: memref<32x64xf32, #tpu.memory_space<vmem>>, %arg5: memref<1x64xf32, #tpu.memory_space<vmem>>, %arg6: memref<64x32xf32, #tpu.memory_space<vmem>>, %arg7: memref<1x32xf32, #tpu.memory_space<vmem>>, %arg8: memref<200x32xf32, #tpu.memory_space<vmem>>) attributes {dimension_semantics = [#tpu.dimension_semantics<parallel>], iteration_bounds = array<i64: 4>, scalar_prefetch = 0 : i64, scratch_operands = 0 : i64, tpu.core_type = #tpu.core_type<tc>, window_params = [{transform_indices = @transform_0, window_bounds = array<i64: 200, 32>}, {transform_indices = @transform_1, window_bounds = array<i64: 200, 32>}, {transform_indices = @transform_2, window_bounds = array<i64: 200, 32>}, {pipeline_mode = #tpu.pipeline_mode<synchronous>, transform_indices = @transform_3, window_bounds = array<i64: 32, 64>}, {pipeline_mode = #tpu.pipeline_mode<synchronous>, transform_indices = @transform_4, window_bounds = array<i64: 1, 64>}, {pipeline_mode = #tpu.pipeline_mode<synchronous>, transform_indices = @transform_5, window_bounds = array<i64: 64, 32>}, {pipeline_mode = #tpu.pipeline_mode<synchronous>, transform_indices = @transform_6, window_bounds = array<i64: 1, 32>}, {transform_indices = @transform_7, window_bounds = array<i64: 200, 32>}]} {
    %c0 = arith.constant 0 : index
    %c0_0 = arith.constant 0 : index
    %0 = vector.load %arg3[%c0, %c0_0] : memref<200x32xf32, #tpu.memory_space<vmem>>, vector<200x32xf32>
    %c0_1 = arith.constant 0 : index
    %c0_2 = arith.constant 0 : index
    %1 = vector.load %arg4[%c0_1, %c0_2] : memref<32x64xf32, #tpu.memory_space<vmem>>, vector<32x64xf32>
    %cst = arith.constant dense<0.000000e+00> : vector<200x64xf32>
    %2 = tpu.matmul %0, %1, %cst {dimension_numbers = #tpu.dot_dimension_numbers<[1], [0], [0], [1], [0, 0, 1, 1], [], []>} : vector<200x32xf32>, vector<32x64xf32>, vector<200x64xf32> -> vector<200x64xf32>
    %c0_3 = arith.constant 0 : index
    %c0_4 = arith.constant 0 : index
    %3 = vector.load %arg5[%c0_3, %c0_4] : memref<1x64xf32, #tpu.memory_space<vmem>>, vector<1x64xf32>
    %4 = vector.broadcast %3 : vector<1x64xf32> to vector<200x64xf32>
    %5 = arith.addf %2, %4 : vector<200x64xf32>
    %cst_5 = arith.constant 0.000000e+00 : f32
    %6 = vector.broadcast %cst_5 : f32 to vector<200x64xf32>
    %7 = arith.maximumf %5, %6 : vector<200x64xf32>
    %c0_6 = arith.constant 0 : index
    %c0_7 = arith.constant 0 : index
    %8 = vector.load %arg6[%c0_6, %c0_7] : memref<64x32xf32, #tpu.memory_space<vmem>>, vector<64x32xf32>
    %cst_8 = arith.constant dense<0.000000e+00> : vector<200x32xf32>
    %9 = tpu.matmul %7, %8, %cst_8 {dimension_numbers = #tpu.dot_dimension_numbers<[1], [0], [0], [1], [0, 0, 1, 1], [], []>} : vector<200x64xf32>, vector<64x32xf32>, vector<200x32xf32> -> vector<200x32xf32>
    %c0_9 = arith.constant 0 : index
    %c0_10 = arith.constant 0 : index
    %10 = vector.load %arg7[%c0_9, %c0_10] : memref<1x32xf32, #tpu.memory_space<vmem>>, vector<1x32xf32>
    %11 = vector.broadcast %10 : vector<1x32xf32> to vector<200x32xf32>
    %12 = arith.addf %9, %11 : vector<200x32xf32>
    %c0_11 = arith.constant 0 : index
    %c0_12 = arith.constant 0 : index
    %13 = vector.load %arg1[%c0_11, %c0_12] : memref<200x32xf32, #tpu.memory_space<vmem>>, vector<200x32xf32>
    %c0_13 = arith.constant 0 : index
    %c0_14 = arith.constant 0 : index
    %14 = vector.load %arg2[%c0_13, %c0_14] : memref<200x32xf32, #tpu.memory_space<vmem>>, vector<200x32xf32>
    %15 = arith.addf %13, %14 : vector<200x32xf32>
    %cst_15 = arith.constant 5.000000e-01 : f32
    %16 = vector.broadcast %cst_15 : f32 to vector<200x32xf32>
    %17 = arith.mulf %16, %15 : vector<200x32xf32>
    %cst_16 = arith.constant 4.471500e-02 : f32
    %18 = vector.broadcast %cst_16 : f32 to vector<200x32xf32>
    %19 = arith.mulf %18, %15 : vector<200x32xf32>
    %20 = arith.mulf %19, %15 : vector<200x32xf32>
    %21 = arith.mulf %20, %15 : vector<200x32xf32>
    %22 = arith.addf %15, %21 : vector<200x32xf32>
    %cst_17 = arith.constant 0.797884583 : f32
    %23 = vector.broadcast %cst_17 : f32 to vector<200x32xf32>
    %24 = arith.mulf %23, %22 : vector<200x32xf32>
    %25 = math.tanh %24 : vector<200x32xf32>
    %cst_18 = arith.constant 1.000000e+00 : f32
    %26 = vector.broadcast %cst_18 : f32 to vector<200x32xf32>
    %27 = arith.addf %26, %25 : vector<200x32xf32>
    %28 = arith.mulf %17, %27 : vector<200x32xf32>
    %29 = arith.addf %28, %12 : vector<200x32xf32>
    %c0_19 = arith.constant 0 : index
    %c0_20 = arith.constant 0 : index
    %30 = vector.load %arg8[%c0_19, %c0_20] : memref<200x32xf32, #tpu.memory_space<vmem>>, vector<200x32xf32>
    tpu.vector_store %arg8[%c0_19, %c0_20], %29 {strides = array<i32>} : memref<200x32xf32, #tpu.memory_space<vmem>>, vector<200x32xf32>,
    return
  }
  func.func @transform_0(%arg0: i32) -> (i32, i32) {
    %c0_i32 = arith.constant 0 : i32
    %c0_i32_0 = arith.constant 0 : i32
    return %arg0, %c0_i32 : i32, i32
  }
  func.func @transform_1(%arg0: i32) -> (i32, i32) {
    %c0_i32 = arith.constant 0 : i32
    %c0_i32_0 = arith.constant 0 : i32
    return %arg0, %c0_i32 : i32, i32
  }
  func.func @transform_2(%arg0: i32) -> (i32, i32) {
    %c0_i32 = arith.constant 0 : i32
    %c0_i32_0 = arith.constant 0 : i32
    return %arg0, %c0_i32 : i32, i32
  }
  func.func @transform_3(%arg0: i32) -> (i32, i32) {
    %c0_i32 = arith.constant 0 : i32
    %c0_i32_0 = arith.constant 0 : i32
    %c0_i32_1 = arith.constant 0 : i32
    return %c0_i32, %c0_i32_0 : i32, i32
  }
  func.func @transform_4(%arg0: i32) -> (i32, i32) {
    %c0_i32 = arith.constant 0 : i32
    %c0_i32_0 = arith.constant 0 : i32
    %c0_i32_1 = arith.constant 0 : i32
    return %c0_i32, %c0_i32_0 : i32, i32
  }
  func.func @transform_5(%arg0: i32) -> (i32, i32) {
    %c0_i32 = arith.constant 0 : i32
    %c0_i32_0 = arith.constant 0 : i32
    %c0_i32_1 = arith.constant 0 : i32
    return %c0_i32, %c0_i32_0 : i32, i32
  }
  func.func @transform_6(%arg0: i32) -> (i32, i32) {
    %c0_i32 = arith.constant 0 : i32
    %c0_i32_0 = arith.constant 0 : i32
    %c0_i32_1 = arith.constant 0 : i32
    return %c0_i32, %c0_i32_0 : i32, i32
  }
  func.func @transform_7(%arg0: i32) -> (i32, i32) {
    %c0_i32 = arith.constant 0 : i32
    %c0_i32_0 = arith.constant 0 : i32
    return %arg0, %c0_i32 : i32, i32
  }
}

module attributes {stable_mosaic.version = 11 : i64} {
  func.func @_mlp2_kernel(%arg0: i32, %arg1: memref<128x32xf32, #tpu.memory_space<vmem>>, %arg2: memref<32x128xf32, #tpu.memory_space<vmem>>, %arg3: memref<1x128xf32, #tpu.memory_space<vmem>>, %arg4: memref<128x3xf32, #tpu.memory_space<vmem>>, %arg5: memref<1x3xf32, #tpu.memory_space<vmem>>, %arg6: memref<128x3xf32, #tpu.memory_space<vmem>>) attributes {dimension_semantics = [#tpu.dimension_semantics<parallel>], iteration_bounds = array<i64: 4>, scalar_prefetch = 0 : i64, scratch_operands = 0 : i64, tpu.core_type = #tpu.core_type<tc>, window_params = [{transform_indices = @transform_0, window_bounds = array<i64: 128, 32>}, {pipeline_mode = #tpu.pipeline_mode<synchronous>, transform_indices = @transform_1, window_bounds = array<i64: 32, 128>}, {pipeline_mode = #tpu.pipeline_mode<synchronous>, transform_indices = @transform_2, window_bounds = array<i64: 1, 128>}, {pipeline_mode = #tpu.pipeline_mode<synchronous>, transform_indices = @transform_3, window_bounds = array<i64: 128, 3>}, {pipeline_mode = #tpu.pipeline_mode<synchronous>, transform_indices = @transform_4, window_bounds = array<i64: 1, 3>}, {transform_indices = @transform_5, window_bounds = array<i64: 128, 3>}]} {
    %c0 = arith.constant 0 : index
    %c0_0 = arith.constant 0 : index
    %0 = vector.load %arg1[%c0, %c0_0] : memref<128x32xf32, #tpu.memory_space<vmem>>, vector<128x32xf32>
    %c0_1 = arith.constant 0 : index
    %c0_2 = arith.constant 0 : index
    %1 = vector.load %arg2[%c0_1, %c0_2] : memref<32x128xf32, #tpu.memory_space<vmem>>, vector<32x128xf32>
    %cst = arith.constant dense<0.000000e+00> : vector<128x128xf32>
    %2 = tpu.matmul %0, %1, %cst {dimension_numbers = #tpu.dot_dimension_numbers<[1], [0], [0], [1], [0, 0, 1, 1], [], []>} : vector<128x32xf32>, vector<32x128xf32>, vector<128x128xf32> -> vector<128x128xf32>
    %c0_3 = arith.constant 0 : index
    %c0_4 = arith.constant 0 : index
    %3 = vector.load %arg3[%c0_3, %c0_4] : memref<1x128xf32, #tpu.memory_space<vmem>>, vector<1x128xf32>
    %4 = vector.broadcast %3 : vector<1x128xf32> to vector<128x128xf32>
    %5 = arith.addf %2, %4 : vector<128x128xf32>
    %cst_5 = arith.constant 5.000000e-01 : f32
    %6 = vector.broadcast %cst_5 : f32 to vector<128x128xf32>
    %7 = arith.mulf %6, %5 : vector<128x128xf32>
    %cst_6 = arith.constant 4.471500e-02 : f32
    %8 = vector.broadcast %cst_6 : f32 to vector<128x128xf32>
    %9 = arith.mulf %8, %5 : vector<128x128xf32>
    %10 = arith.mulf %9, %5 : vector<128x128xf32>
    %11 = arith.mulf %10, %5 : vector<128x128xf32>
    %12 = arith.addf %5, %11 : vector<128x128xf32>
    %cst_7 = arith.constant 0.797884583 : f32
    %13 = vector.broadcast %cst_7 : f32 to vector<128x128xf32>
    %14 = arith.mulf %13, %12 : vector<128x128xf32>
    %15 = math.tanh %14 : vector<128x128xf32>
    %cst_8 = arith.constant 1.000000e+00 : f32
    %16 = vector.broadcast %cst_8 : f32 to vector<128x128xf32>
    %17 = arith.addf %16, %15 : vector<128x128xf32>
    %18 = arith.mulf %7, %17 : vector<128x128xf32>
    %c0_9 = arith.constant 0 : index
    %c0_10 = arith.constant 0 : index
    %19 = vector.load %arg4[%c0_9, %c0_10] : memref<128x3xf32, #tpu.memory_space<vmem>>, vector<128x3xf32>
    %cst_11 = arith.constant dense<0.000000e+00> : vector<128x3xf32>
    %20 = tpu.matmul %18, %19, %cst_11 {dimension_numbers = #tpu.dot_dimension_numbers<[1], [0], [0], [1], [0, 0, 1, 1], [], []>} : vector<128x128xf32>, vector<128x3xf32>, vector<128x3xf32> -> vector<128x3xf32>
    %c0_12 = arith.constant 0 : index
    %c0_13 = arith.constant 0 : index
    %21 = vector.load %arg5[%c0_12, %c0_13] : memref<1x3xf32, #tpu.memory_space<vmem>>, vector<1x3xf32>
    %22 = vector.broadcast %21 : vector<1x3xf32> to vector<128x3xf32>
    %23 = arith.addf %20, %22 : vector<128x3xf32>
    %c0_14 = arith.constant 0 : index
    %c0_15 = arith.constant 0 : index
    %24 = vector.load %arg6[%c0_14, %c0_15] : memref<128x3xf32, #tpu.memory_space<vmem>>, vector<128x3xf32>
    tpu.vector_store %arg6[%c0_14, %c0_15], %23 {strides = array<i32>} : memref<128x3xf32, #tpu.memory_space<vmem>>, vector<128x3xf32>,
    return
  }
  func.func @transform_0(%arg0: i32) -> (i32, i32) {
    %c0_i32 = arith.constant 0 : i32
    %c0_i32_0 = arith.constant 0 : i32
    return %arg0, %c0_i32 : i32, i32
  }
  func.func @transform_1(%arg0: i32) -> (i32, i32) {
    %c0_i32 = arith.constant 0 : i32
    %c0_i32_0 = arith.constant 0 : i32
    %c0_i32_1 = arith.constant 0 : i32
    return %c0_i32, %c0_i32_0 : i32, i32
  }
  func.func @transform_2(%arg0: i32) -> (i32, i32) {
    %c0_i32 = arith.constant 0 : i32
    %c0_i32_0 = arith.constant 0 : i32
    %c0_i32_1 = arith.constant 0 : i32
    return %c0_i32, %c0_i32_0 : i32, i32
  }
  func.func @transform_3(%arg0: i32) -> (i32, i32) {
    %c0_i32 = arith.constant 0 : i32
    %c0_i32_0 = arith.constant 0 : i32
    %c0_i32_1 = arith.constant 0 : i32
    return %c0_i32, %c0_i32_0 : i32, i32
  }
  func.func @transform_4(%arg0: i32) -> (i32, i32) {
    %c0_i32 = arith.constant 0 : i32
    %c0_i32_0 = arith.constant 0 : i32
    %c0_i32_1 = arith.constant 0 : i32
    return %c0_i32, %c0_i32_0 : i32, i32
  }
  func.func @transform_5(%arg0: i32) -> (i32, i32) {
    %c0_i32 = arith.constant 0 : i32
    %c0_i32_0 = arith.constant 0 : i32
    return %arg0, %c0_i32 : i32, i32
  }
}

</mosaic_0001>

<bundles_post_ra>
// kernel: fno_factorized_2d_block.14
= control target key start
LH: loop header
LB: loop body
LE: loop exit
PB: predicated region body
PF: predicated region fallthrough
CT: control target
= control target key end

     0   :  { %s1106_s18 = smov 0   ;;  %s1385_s0 = inlined_call_operand.vmem [shape: f32[512,4], index: 0, kind: input, shape index: {}]   ;;  %s1386_s1 = inlined_call_operand.vmem [shape: f32[4,128], index: 1, kind: input, shape index: {}]   ;;  %s1387_s2 = inlined_call_operand.vmem [shape: f32[1,128], index: 2, kind: input, shape index: {}]   ;;  %s1388_s3 = inlined_call_operand.vmem [shape: f32[128,32], index: 3, kind: input, shape index: {}]   ;;  %s1389_s4 = inlined_call_operand.vmem [shape: f32[1,32], index: 4, kind: input, shape index: {}]   ;;  %s1390_s5 = inlined_call_operand.vmem [shape: f32[512,32], index: 5, kind: output, shape index: {}]  }
   0x1 LB: > { %s835_s19 = sadd.s32 4294967295, %s1074_s18   ;;  %p839_p0 = scmp.ge.s32.totalorder %s1074_s18, 1  ;;  %s1074_s18 = sphi %s1106_s18, %s15_s18  }
   0x2   : > { %p188_p1 = scmp.lt.s32.totalorder %s1074_s18, 5 }
   0x4   : > { %p189_p2 = pnand %p839_p0, %p188_p1 }
   0x5   : > { %s840_s22 = sshll.u32 (!%p189_p2), %s835_s19, 4 }
   0x6   : > { %192 = sbr.rel (%p189_p2) target bundleno = 469 (0x1d5), region = 40  ;;  %p217_p3 = scmp.lt.s32.totalorder (!%p189_p2), %s840_s22, 63 }
   0xb   : > { %v244_v0 = vld [vmem:[%s1386_s1] sm:$0xf]  ;;  %vm301_vm0 = vcmask 1043456   ;;  %s1392_s22 = smov (!%p217_p3, %s840_s22), 63  ;;  %vm252_vm1 = vcmask 31744   ;;  %v609_v17 = vld [vmem:[%s1388_s3 + $0x78] sm:$0xff] }
   0xc   : > { %914 = vmatprep.subr.msk.mxu0 %vm301_vm0, %v244_v0  ;;  %s841_s23 = sshll.u32 %s1392_s22, 3  ;;  %996 = vmatprep.subr.mxu1 %v609_v17  ;;  %v608_v18 = vld [vmem:[%s1388_s3 + $0x70] sm:$0xff]  ;;  %v607_v19 = vld [vmem:[%s1388_s3 + $0x68] sm:$0xff]  ;;  %v606_v20 = vld [vmem:[%s1388_s3 + $0x60] sm:$0xff]  ;;  %vm762_vm2 = vcmask 261120  }
   0xd   : > { %915 = vmatpush3.msk.msra.mxu0 %vm301_vm0, %v244_v0  ;;  %s1125_s26 = scalar_lea.vmem %s1385_s0, %s841_s23  ;;  %1012 = vmatpush3.msra.mxu1 %v609_v17  ;;  %v605_v21 = vld [vmem:[%s1388_s3 + $0x58] sm:$0xff]  ;;  %v604_v22 = vld [vmem:[%s1388_s3 + $0x50] sm:$0xff]  ;;  %v603_v23 = vld [vmem:[%s1388_s3 + $0x48] sm:$0xff]  ;;  %s1348_s19 = scalar_lea.vmem %s1390_s5, %s841_s23 }
   0xe   : > { %v228_v1 = vld [vmem:[%s1125_s26] sm:$0xff]  ;;  %v229_v2 = vld [vmem:[%s1125_s26 + $0x8] sm:$0xff]  ;;  %v230_v3 = vld [vmem:[%s1125_s26 + $0x10] sm:$0xff]  ;;  %940 = vmatprep.subr.mxu0 %v609_v17  ;;  %997 = vmatprep.subr.mxu1 %v608_v18 }
   0xf   : > { %916 = vmatprep.mubr.msk.f32.mxu0 %vm252_vm1, %v228_v1  ;;  %v231_v4 = vld [vmem:[%s1125_s26 + $0x18] sm:$0xff]  ;;  %v232_v5 = vld [vmem:[%s1125_s26 + $0x20] sm:$0xff]  ;;  %v233_v6 = vld [vmem:[%s1125_s26 + $0x28] sm:$0xff]  ;;  %1013 = vmatpush3.msra.mxu1 %v608_v18 }
  0x10   : > { %917 = vmatmul.mubr.msk.f32.vlgmr.msra.gmra.mxu0 %vm252_vm1, %v229_v2  ;;  %v234_v7 = vld [vmem:[%s1125_s26 + $0x30] sm:$0xff]  ;;  %v235_v8 = vld [vmem:[%s1125_s26 + $0x38] sm:$0xff]  ;;  %v236_v9 = vld [vmem:[%s1125_s26 + $0x40] sm:$0xff]  ;;  %998 = vmatprep.subr.mxu1 %v607_v19 }
  0x11   : > { %919 = vmatprep.mubr.msk.f32.mxu0 %vm252_vm1, %v230_v3  ;;  %v237_v10 = vld [vmem:[%s1125_s26 + $0x48] sm:$0xff]  ;;  %v238_v11 = vld [vmem:[%s1125_s26 + $0x50] sm:$0xff]  ;;  %v239_v12 = vld [vmem:[%s1125_s26 + $0x58] sm:$0xff]  ;;  %941 = vmatpush3.msra.mxu0 %v609_v17 }
  0x12   : > { %v240_v13 = vld [vmem:[%s1125_s26 + $0x60] sm:$0xff]  ;;  %v241_v14 = vld [vmem:[%s1125_s26 + $0x68] sm:$0xff]  ;;  %v242_v15 = vld [vmem:[%s1125_s26 + $0x70] sm:$0xff]  ;;  %942 = vmatprep.subr.mxu0 %v608_v18  ;;  %1014 = vmatpush3.msra.mxu1 %v607_v19 }
  0x13   : > { %v243_v16 = vld [vmem:[%s1125_s26 + $0x78] sm:$0xff]  ;;  %943 = vmatpush3.msra.mxu0 %v608_v18  ;;  %999 = vmatprep.subr.mxu1 %v606_v20  ;;  %v602_v24 = vld [vmem:[%s1388_s3 + $0x40] sm:$0xff]  ;;  %v600_v26 = vld [vmem:[%s1388_s3 + $0x30] sm:$0xff] }
  0x14   : > { %920 = vmatmul.mubr.msk.f32.gmra.mxu0 %vm252_vm1, %v231_v4  ;;  %944 = vmatprep.subr.mxu0 %v607_v19  ;;  %v601_v25 = vld [vmem:[%s1388_s3 + $0x38] sm:$0xff]  ;;  %v599_v27 = vld [vmem:[%s1388_s3 + $0x28] sm:$0xff]  ;;  %v598_v28 = vld [vmem:[%s1388_s3 + $0x20] sm:$0xff] }
  0x15   : > { %922 = vmatprep.mubr.msk.f32.mxu0 %vm252_vm1, %v232_v5  ;;  %945 = vmatpush3.msra.mxu0 %v607_v19  ;;  %v597_v29 = vld [vmem:[%s1388_s3 + $0x18] sm:$0xff]  ;;  %v596_v30 = vld [vmem:[%s1388_s3 + $0x10] sm:$0xff]  ;;  %v595_v31 = vld [vmem:[%s1388_s3 + $0x8] sm:$0xff] }
  0x16   : > { %946 = vmatprep.subr.mxu0 %v606_v20  ;;  %1015 = vmatpush3.msra.mxu1 %v606_v20  ;;  %v594_v32 = vld [vmem:[%s1388_s3] sm:$0xff] }
  0x17   : > { %947 = vmatpush3.msra.mxu0 %v606_v20  ;;  %1000 = vmatprep.subr.mxu1 %v605_v21  ;;  %v1210_v33 = vld [vmem:[%s1387_s2] ss:$0 sm:$0xff] }
  0x18   : > { %923 = vmatmul.mubr.msk.f32.gmra.mxu0 %vm252_vm1, %v233_v6  ;;  %948 = vmatprep.subr.mxu0 %v605_v21 }
  0x19   : > { %925 = vmatprep.mubr.msk.f32.mxu0 %vm252_vm1, %v234_v7  ;;  %949 = vmatpush3.msra.mxu0 %v605_v21 }
  0x1a   : > { %1016 = vmatpush3.msra.mxu1 %v605_v21  ;;  %950 = vmatprep.subr.mxu0 %v604_v22 }
  0x1b   : > { %1001 = vmatprep.subr.mxu1 %v604_v22  ;;  %951 = vmatpush3.msra.mxu0 %v604_v22 }
  0x1c   : > { %926 = vmatmul.mubr.msk.f32.gmra.mxu0 %vm252_vm1, %v235_v8  ;;  %1017 = vmatpush3.msra.mxu1 %v604_v22 }
  0x1d   : > { %928 = vmatprep.mubr.msk.f32.mxu0 %vm252_vm1, %v236_v9  ;;  %952 = vmatprep.subr.mxu0 %v603_v23 }
  0x1e   : > { %1002 = vmatprep.subr.mxu1 %v603_v23  ;;  %953 = vmatpush3.msra.mxu0 %v603_v23 }
  0x1f   : > { %1018 = vmatpush3.msra.mxu1 %v603_v23  ;;  %954 = vmatprep.subr.mxu0 %v602_v24 }
  0x20   : > { %929 = vmatmul.mubr.msk.f32.gmra.mxu0 %vm252_vm1, %v237_v10  ;;  %1003 = vmatprep.subr.mxu1 %v602_v24 }
  0x21   : > { %931 = vmatprep.mubr.msk.f32.mxu0 %vm252_vm1, %v238_v11  ;;  %955 = vmatpush3.msra.mxu0 %v602_v24 }
  0x22   : > { %1019 = vmatpush3.msra.mxu1 %v602_v24  ;;  %956 = vmatprep.subr.mxu0 %v601_v25 }
  0x23   : > { %1004 = vmatprep.subr.mxu1 %v601_v25  ;;  %957 = vmatpush3.msra.mxu0 %v601_v25 }
  0x24   : > { %932 = vmatmul.mubr.msk.f32.gmra.mxu0 %vm252_vm1, %v239_v12  ;;  %1020 = vmatpush3.msra.mxu1 %v601_v25 }
  0x25   : > { %934 = vmatprep.mubr.msk.f32.mxu0 %vm252_vm1, %v240_v13  ;;  %958 = vmatprep.subr.mxu0 %v600_v26 }
  0x26   : > { %1005 = vmatprep.subr.mxu1 %v600_v26  ;;  %959 = vmatpush3.msra.mxu0 %v600_v26 }
  0x27   : > { %1021 = vmatpush3.msra.mxu1 %v600_v26  ;;  %960 = vmatprep.subr.mxu0 %v599_v27 }
  0x28   : > { %935 = vmatmul.mubr.msk.f32.gmra.mxu0 %vm252_vm1, %v241_v14  ;;  %1006 = vmatprep.subr.mxu1 %v599_v27 }
  0x29   : > { %937 = vmatprep.mubr.msk.f32.mxu0 %vm252_vm1, %v242_v15  ;;  %961 = vmatpush3.msra.mxu0 %v599_v27 }
  0x2a   : > { %1022 = vmatpush3.msra.mxu1 %v599_v27  ;;  %962 = vmatprep.subr.mxu0 %v598_v28 }
  0x2b   : > { %1007 = vmatprep.subr.mxu1 %v598_v28  ;;  %963 = vmatpush3.msra.mxu0 %v598_v28 }
  0x2c   : > { %938 = vmatmul.mubr.msk.f32.gmra.mxu0 %vm252_vm1, %v243_v16  ;;  %1023 = vmatpush3.msra.mxu1 %v598_v28 }
  0x2d   : > { %964 = vmatprep.subr.mxu0 %v597_v29  ;;  %1008 = vmatprep.subr.mxu1 %v597_v29 }
  0x2e   : > { %965 = vmatpush3.msra.mxu0 %v597_v29  ;;  %1024 = vmatpush3.msra.mxu1 %v597_v29 }
  0x2f   : > { %966 = vmatprep.subr.mxu0 %v596_v30  ;;  %1009 = vmatprep.subr.mxu1 %v596_v30 }
  0x30   : > { %967 = vmatpush3.msra.mxu0 %v596_v30  ;;  %1025 = vmatpush3.msra.mxu1 %v596_v30 }
  0x31   : > { %968 = vmatprep.subr.mxu0 %v595_v31  ;;  %1010 = vmatprep.subr.mxu1 %v595_v31 }
  0x32   : > { %969 = vmatpush3.msra.mxu0 %v595_v31  ;;  %1026 = vmatpush3.msra.mxu1 %v595_v31 }
  0x33   : > { %970 = vmatprep.subr.mxu0 %v594_v32  ;;  %1011 = vmatprep.subr.mxu1 %v594_v32 }
  0x34   : > { %971 = vmatpush3.msra.mxu0 %v594_v32  ;;  %1027 = vmatpush3.msra.mxu1 %v594_v32 }
  0xd0   : > { %v918_v34 = vpop.f32.mrf.mxu0 }
  0xd1   : > { %v1213_v35 = vadd.f32 %v918_v34, %v1210_v33 }
  0xd2   : > { %v371_v36 = vpop.f32.mrf.mxu0 }
  0xd3   : > { %v467_v37 = vmul.f32 0.044715, %v1213_v35  ;;  %v1217_v38 = vadd.f32 %v1210_v33, %v371_v36 }
  0xd4   : > { %v921_v39 = vpop.f32.mrf.mxu0 }
  0xd5   : > { %v483_v40 = vmul.f32 %v467_v37, %v1213_v35  ;;  %v466_v41 = vmul.f32 0.044715, %v1217_v38  ;;  %v1222_v42 = vadd.f32 %v921_v39, %v1210_v33  ;;  %v451_v39 = vmul.f32 0.5, %v1213_v35 }
  0xd6   : > { %v381_v43 = vpop.f32.mrf.mxu0 }
  0xd7   : > { %v499_v44 = vmul.f32 %v483_v40, %v1213_v35  ;;  %v482_v45 = vmul.f32 %v466_v41, %v1217_v38  ;;  %v469_v46 = vmul.f32 0.044715, %v1222_v42  ;;  %v1228_v47 = vadd.f32 %v1210_v33, %v381_v43 }
  0xd8   : > { %v924_v48 = vpop.f32.mrf.mxu0 }
  0xd9   : > { %v515_v49 = vadd.f32 %v499_v44, %v1213_v35  ;;  %v485_v50 = vmul.f32 %v469_v46, %v1222_v42  ;;  %v468_v51 = vmul.f32 0.044715, %v1228_v47  ;;  %v1234_v52 = vadd.f32 %v924_v48, %v1210_v33 }
  0xda   : > { %v391_v53 = vpop.f32.mrf.mxu0  ;;  %v498_v54 = vmul.f32 %v482_v45, %v1217_v38 }
  0xdb   : > { %v531_v55 = vmul.f32 0.7978846, %v515_v49  ;;  %v484_v56 = vmul.f32 %v468_v51, %v1228_v47  ;;  %v471_v57 = vmul.f32 0.044715, %v1234_v52  ;;  %v1240_v58 = vadd.f32 %v1210_v33, %v391_v53 }
  0xdc   : > { %v927_v59 = vpop.f32.mrf.mxu0  ;;  %v514_v60 = vadd.f32 %v498_v54, %v1217_v38  ;;  %v501_v61 = vmul.f32 %v485_v50, %v1222_v42  ;;  %v450_v53 = vmul.f32 0.5, %v1217_v38 }
  0xdd   : > { %1036 = vtanh.f32 %v531_v55  ;;  %v487_v62 = vmul.f32 %v471_v57, %v1234_v52  ;;  %v470_v63 = vmul.f32 0.044715, %v1240_v58  ;;  %v1247_v0 = vadd.f32 %v927_v59, %v1210_v33 }
  0xde   : > { %v401_v1 = vpop.f32.mrf.mxu0  ;;  %v530_v2 = vmul.f32 0.7978846, %v514_v60  ;;  %v500_v3 = vmul.f32 %v484_v56, %v1228_v47  ;;  %v517_v4 = vadd.f32 %v501_v61, %v1222_v42  ;;  %v453_v59 = vmul.f32 0.5, %v1222_v42 }
  0xdf   : > { %v486_v5 = vmul.f32 %v470_v63, %v1240_v58  ;;  %v473_v6 = vmul.f32 0.044715, %v1247_v0  ;;  %v1254_v7 = vadd.f32 %v1210_v33, %v401_v1  ;;  %v503_v8 = vmul.f32 %v487_v62, %v1234_v52 }
  0xe0   : > { %v930_v9 = vpop.f32.mrf.mxu0  ;;  %1038 = vtanh.f32 %v530_v2  ;;  %v516_v10 = vadd.f32 %v500_v3, %v1228_v47  ;;  %v533_v11 = vmul.f32 0.7978846, %v517_v4 }
  0xe1   : > { %v489_v12 = vmul.f32 %v473_v6, %v1247_v0  ;;  %v1260_v13 = vadd.f32 %v930_v9, %v1210_v33  ;;  %v502_v14 = vmul.f32 %v486_v5, %v1240_v58  ;;  %v519_v15 = vadd.f32 %v503_v8, %v1234_v52 }
  0xe2   : > { %v411_v16 = vpop.f32.mrf.mxu0  ;;  %v532_v17 = vmul.f32 0.7978846, %v516_v10  ;;  %1040 = vtanh.f32 %v533_v11  ;;  %v472_v18 = vmul.f32 0.044715, %v1254_v7 }
  0xe3   : > { %v475_v19 = vmul.f32 0.044715, %v1260_v13  ;;  %v1267_v20 = vadd.f32 %v1210_v33, %v411_v16  ;;  %v518_v21 = vadd.f32 %v502_v14, %v1240_v58  ;;  %v535_v22 = vmul.f32 0.7978846, %v519_v15 }
  0xe4   : > { %v933_v23 = vpop.f32.mrf.mxu0  ;;  %1042 = vtanh.f32 %v532_v17  ;;  %v488_v24 = vmul.f32 %v472_v18, %v1254_v7  ;;  %v505_v25 = vmul.f32 %v489_v12, %v1247_v0 }
  0xe5   : > { %v491_v26 = vmul.f32 %v475_v19, %v1260_v13  ;;  %v474_v27 = vmul.f32 0.044715, %v1267_v20  ;;  %v1275_v28 = vadd.f32 %v933_v23, %v1210_v33  ;;  %v534_v29 = vmul.f32 0.7978846, %v518_v21 }
  0xe6   : > { %v421_v30 = vpop.f32.mrf.mxu0  ;;  %1044 = vtanh.f32 %v535_v22  ;;  %v504_v31 = vmul.f32 %v488_v24, %v1254_v7  ;;  %v521_v32 = vadd.f32 %v505_v25, %v1247_v0  ;;  %v452_v22 = vmul.f32 0.5, %v1228_v47 }
  0xe7   : > { %v490_v34 = vmul.f32 %v474_v27, %v1267_v20  ;;  %v477_v36 = vmul.f32 0.044715, %v1275_v28  ;;  %v1282_v37 = vadd.f32 %v1210_v33, %v421_v30  ;;  %1046 = vtanh.f32 %v534_v29 }
  0xe8   : > { %v936_v40 = vpop.f32.mrf.mxu0  ;;  %v520_v41 = vadd.f32 %v504_v31, %v1254_v7  ;;  %v537_v43 = vmul.f32 0.7978846, %v521_v32  ;;  %v507_v44 = vmul.f32 %v491_v26, %v1260_v13  ;;  %v454_v30 = vmul.f32 0.5, %v1240_v58 }
  0xe9   : > { %v493_v45 = vmul.f32 %v477_v36, %v1275_v28  ;;  %v476_v46 = vmul.f32 0.044715, %v1282_v37  ;;  %v1290_v48 = vadd.f32 %v936_v40, %v1210_v33  ;;  %v506_v49 = vmul.f32 %v490_v34, %v1267_v20 }
  0xea   : > { %v1037_v50 = vpop.eup %1036  ;;  %v431_v51 = vpop.f32.mrf.mxu0  ;;  %v536_v35 = vmul.f32 0.7978846, %v520_v41  ;;  %1048 = vtanh.f32 %v537_v43  ;;  %v523_v54 = vadd.f32 %v507_v44, %v1260_v13 }
  0xeb   : > { %v492_v55 = vmul.f32 %v476_v46, %v1282_v37  ;;  %v479_v56 = vmul.f32 0.044715, %v1290_v48  ;;  %v1298_v57 = vadd.f32 %v1210_v33, %v431_v51  ;;  %v522_v61 = vadd.f32 %v506_v49, %v1267_v20 }
  0xec   : > { %v939_v60 = vpop.f32.mrf.mxu0  ;;  %1050 = vtanh.f32 %v536_v35  ;;  %v539_v62 = vmul.f32 0.7978846, %v523_v54  ;;  %v509_v38 = vmul.f32 %v493_v45, %v1275_v28  ;;  %v563_v4 = vadd.f32 1.0, %v1037_v50 }
  0xed   : > { %v1039_v63 = vpop.eup %1038  ;;  %v495_v1 = vmul.f32 %v479_v56, %v1290_v48  ;;  %v478_v2 = vmul.f32 0.044715, %v1298_v57  ;;  %v1306_v3 = vadd.f32 %v939_v60, %v1210_v33  ;;  %v538_v8 = vmul.f32 0.7978846, %v522_v61 }
  0xee   : > { %v441_v5 = vpop.f32.mrf.mxu0  ;;  %v562_v6 = vadd.f32 1.0, %v1039_v63  ;;  %1052 = vtanh.f32 %v539_v62  ;;  %v508_v42 = vmul.f32 %v492_v55, %v1282_v37  ;;  %v525_v14 = vadd.f32 %v509_v38, %v1275_v28 }
  0xef   : > { %v1041_v9 = vpop.eup %1040  ;;  %v494_v10 = vmul.f32 %v478_v2, %v1298_v57  ;;  %v481_v11 = vmul.f32 0.044715, %v1306_v3  ;;  %v1312_v12 = vadd.f32 %v1210_v33, %v441_v5  ;;  %1054 = vtanh.f32 %v538_v8 }
  0xf0   : > { %v578_v15 = vmul.f32 %v562_v6, %v450_v53  ;;  %v565_v16 = vadd.f32 1.0, %v1041_v9  ;;  %v524_v17 = vadd.f32 %v508_v42, %v1282_v37  ;;  %v579_v21 = vmul.f32 %v563_v4, %v451_v39 }
  0xf1   : > { %v1043_v18 = vpop.eup %1042  ;;  %v480_v19 = vmul.f32 0.044715, %v1312_v12  ;;  %v541_v23 = vmul.f32 0.7978846, %v525_v14  ;;  %v497_v24 = vmul.f32 %v481_v11, %v1306_v3  ;;  %v510_v26 = vmul.f32 %v494_v10, %v1298_v57 }
  0xf2   : > { %972 = vmatprep.mubr.f32.mxu0 %v578_v15  ;;  %v564_v25 = vadd.f32 1.0, %v1043_v18  ;;  %v540_v33 = vmul.f32 0.7978846, %v524_v17  ;;  %v511_v31 = vmul.f32 %v495_v1, %v1290_v48  ;;  %v581_v47 = vmul.f32 %v565_v16, %v453_v59 }
  0xf3   : > { %v1045_v27 = vpop.eup %1044  ;;  %v496_v29 = vmul.f32 %v480_v19, %v1312_v12  ;;  %973 = vmatmul.mubr.f32.vlgmr.msra.gmra.mxu0 %v579_v21  ;;  %1056 = vtanh.f32 %v541_v23  ;;  %v526_v36 = vadd.f32 %v510_v26, %v1298_v57  ;;  %v513_v45 = vmul.f32 %v497_v24, %v1306_v3 }
  0xf4   : > { %v1047_v32 = vpop.eup %1046  ;;  %v580_v34 = vmul.f32 %v564_v25, %v452_v22  ;;  %1058 = vtanh.f32 %v540_v33  ;;  %v567_v40 = vadd.f32 1.0, %v1045_v27  ;;  %v527_v41 = vadd.f32 %v511_v31, %v1290_v48 }
  0xf5   : > { %v566_v39 = vadd.f32 1.0, %v1047_v32  ;;  %v512_v43 = vmul.f32 %v496_v29, %v1312_v12  ;;  %v542_v44 = vmul.f32 0.7978846, %v526_v36  ;;  %v455_v49 = vmul.f32 0.5, %v1234_v52 }
  0xf6   : > { %975 = vmatprep.mubr.f32.mxu0 %v580_v34  ;;  %v543_v50 = vmul.f32 0.7978846, %v527_v41  ;;  %v529_v53 = vadd.f32 %v513_v45, %v1306_v3  ;;  %v456_v59 = vmul.f32 0.5, %v1254_v7  ;;  %v457_v52 = vmul.f32 0.5, %v1247_v0 }
  0xf7   : > { %v1049_v58 = vpop.eup %1048  ;;  %976 = vmatmul.mubr.f32.gmra.mxu0 %v581_v47  ;;  %v582_v46 = vmul.f32 %v566_v39, %v454_v30  ;;  %v528_v51 = vadd.f32 %v512_v43, %v1312_v12  ;;  %1060 = vtanh.f32 %v542_v44  ;;  %v583_v54 = vmul.f32 %v567_v40, %v455_v49 }
  0xf8   : > { %v569_v55 = vadd.f32 1.0, %v1049_v58  ;;  %1062 = vtanh.f32 %v543_v50  ;;  %v545_v61 = vmul.f32 0.7978846, %v529_v53  ;;  %v458_v4 = vmul.f32 0.5, %v1267_v20 }
  0xf9   : > { %v1051_v35 = vpop.eup %1050  ;;  %978 = vmatprep.mubr.f32.mxu0 %v582_v46  ;;  %v544_v56 = vmul.f32 0.7978846, %v528_v51  ;;  %v459_v6 = vmul.f32 0.5, %v1260_v13  ;;  %v460_v0 = vmul.f32 0.5, %v1282_v37  ;;  %v461_v14 = vmul.f32 0.5, %v1275_v28 }
  0xfa   : > { %v568_v60 = vadd.f32 1.0, %v1051_v35  ;;  %v585_v1 = vmul.f32 %v569_v55, %v457_v52  ;;  %v462_v18 = vmul.f32 0.5, %v1298_v57  ;;  %v463_v19 = vmul.f32 0.5, %v1290_v48  ;;  %v862_v48 = vld [vmem:[%s1389_s4] ss:$0 sm:$0xff] }
  0xfb   : > { %v1053_v62 = vpop.eup %1052  ;;  %979 = vmatmul.mubr.f32.gmra.mxu0 %v583_v54  ;;  %1064 = vtanh.f32 %v544_v56  ;;  %v464_v25 = vmul.f32 0.5, %v1312_v12  ;;  %v465_v27 = vmul.f32 0.5, %v1306_v3 }
  0xfc   : > { %v584_v38 = vmul.f32 %v568_v60, %v456_v59  ;;  %1066 = vtanh.f32 %v545_v61  ;;  %v1055_v63 = vpop.eup %1054  ;;  %v571_v2 = vadd.f32 1.0, %v1053_v62 }
  0xfd   : > { %v570_v5 = vadd.f32 1.0, %v1055_v63 }
  0xfe   : > { %981 = vmatprep.mubr.f32.mxu1 %v584_v38  ;;  %v587_v9 = vmul.f32 %v571_v2, %v459_v6 }
  0xff   : > { %982 = vmatmul.mubr.f32.vlgmr.msra.gmra.mxu1 %v585_v1  ;;  %v586_v8 = vmul.f32 %v570_v5, %v458_v4 }
 0x100   : > { %v1057_v7 = vpop.eup %1056 }
 0x101   : > { %v1059_v42 = vpop.eup %1058  ;;  %v573_v10 = vadd.f32 1.0, %v1057_v7  ;;  %984 = vmatprep.mubr.f32.mxu1 %v586_v8 }
 0x102   : > { %v572_v11 = vadd.f32 1.0, %v1059_v42 }
 0x103   : > { %985 = vmatmul.mubr.f32.gmra.mxu1 %v587_v9  ;;  %v589_v17 = vmul.f32 %v573_v10, %v461_v14 }
 0x104   : > { %v588_v15 = vmul.f32 %v572_v11, %v460_v0  ;;  %v1061_v16 = vpop.eup %1060 }
 0x105   : > { %v1063_v20 = vpop.eup %1062  ;;  %v574_v13 = vadd.f32 1.0, %v1061_v16 }
 0x106   : > { %987 = vmatprep.mubr.f32.mxu1 %v588_v15  ;;  %v575_v21 = vadd.f32 1.0, %v1063_v20 }
 0x107   : > { %988 = vmatmul.mubr.f32.gmra.mxu1 %v589_v17  ;;  %v590_v23 = vmul.f32 %v574_v13, %v462_v18 }
 0x108   : > { %v1065_v22 = vpop.eup %1064  ;;  %v591_v24 = vmul.f32 %v575_v21, %v463_v19 }
 0x109   : > { %v1067_v37 = vpop.eup %1066  ;;  %v576_v28 = vadd.f32 1.0, %v1065_v22  ;;  %990 = vmatprep.mubr.f32.mxu1 %v590_v23 }
 0x10a   : > { %v577_v33 = vadd.f32 1.0, %v1067_v37 }
 0x10b   : > { %991 = vmatmul.mubr.f32.gmra.mxu1 %v591_v24  ;;  %v592_v26 = vmul.f32 %v576_v28, %v464_v25 }
 0x10c   : > { %v593_v57 = vmul.f32 %v577_v33, %v465_v27 }
 0x10d   : > { %993 = vmatprep.mubr.f32.mxu1 %v592_v26 }
 0x10f   : > { %994 = vmatmul.mubr.f32.gmra.mxu1 %v593_v57 }
 0x1b3   : > { %v974_v12 = vpop.f32.mrf.mxu0 }
 0x1b4   : > { %v689_v3 = vadd.f32 %v974_v12, %v862_v48 }
 0x1b5   : > { %v683_v29 = vpop.f32.mrf.mxu0 }
 0x1b6   : > { %764 = vst.msk [vmem:[%s1348_s19 + $0x8] sm:$0xff] %vm762_vm2, %v689_v3  ;;  %v684_v30 = vadd.f32 %v862_v48, %v683_v29 }
 0x1b7   : > { %v977_v31 = vpop.f32.mrf.mxu0 }
 0x1b8   : > { %763 = vst.msk [vmem:[%s1348_s19] sm:$0xff] %vm762_vm2, %v684_v30  ;;  %v699_v32 = vadd.f32 %v977_v31, %v862_v48 }
 0x1b9   : > { %v693_v34 = vpop.f32.mrf.mxu0 }
 0x1ba   : > { %766 = vst.msk [vmem:[%s1348_s19 + $0x18] sm:$0xff] %vm762_vm2, %v699_v32  ;;  %v694_v47 = vadd.f32 %v862_v48, %v693_v34 }
 0x1bb   : > { %v980_v36 = vpop.f32.mrf.mxu0 }
 0x1bc   : > { %765 = vst.msk [vmem:[%s1348_s19 + $0x10] sm:$0xff] %vm762_vm2, %v694_v47  ;;  %v709_v39 = vadd.f32 %v980_v36, %v862_v48 }
 0x1bd   : > { %v703_v40 = vpop.f32.mrf.mxu0 }
 0x1be   : > { %768 = vst.msk [vmem:[%s1348_s19 + $0x28] sm:$0xff] %vm762_vm2, %v709_v39  ;;  %v704_v41 = vadd.f32 %v862_v48, %v703_v40 }
 0x1bf   : > { %v983_v43 = vpop.f32.mrf.mxu1 }
 0x1c0   : > { %767 = vst.msk [vmem:[%s1348_s19 + $0x20] sm:$0xff] %vm762_vm2, %v704_v41  ;;  %v719_v44 = vadd.f32 %v983_v43, %v862_v48 }
 0x1c1   : > { %v713_v45 = vpop.f32.mrf.mxu1 }
 0x1c2   : > { %770 = vst.msk [vmem:[%s1348_s19 + $0x38] sm:$0xff] %vm762_vm2, %v719_v44  ;;  %v714_v58 = vadd.f32 %v862_v48, %v713_v45 }
 0x1c3   : > { %v986_v46 = vpop.f32.mrf.mxu1 }
 0x1c4   : > { %769 = vst.msk [vmem:[%s1348_s19 + $0x30] sm:$0xff] %vm762_vm2, %v714_v58  ;;  %v729_v49 = vadd.f32 %v986_v46, %v862_v48 }
 0x1c5   : > { %v723_v50 = vpop.f32.mrf.mxu1 }
 0x1c6   : > { %772 = vst.msk [vmem:[%s1348_s19 + $0x48] sm:$0xff] %vm762_vm2, %v729_v49  ;;  %v724_v51 = vadd.f32 %v862_v48, %v723_v50 }
 0x1c7   : > { %v989_v53 = vpop.f32.mrf.mxu1 }
 0x1c8   : > { %771 = vst.msk [vmem:[%s1348_s19 + $0x40] sm:$0xff] %vm762_vm2, %v724_v51  ;;  %v739_v35 = vadd.f32 %v989_v53, %v862_v48 }
 0x1c9   : > { %v733_v54 = vpop.f32.mrf.mxu1 }
 0x1ca   : > { %774 = vst.msk [vmem:[%s1348_s19 + $0x58] sm:$0xff] %vm762_vm2, %v739_v35  ;;  %v734_v55 = vadd.f32 %v862_v48, %v733_v54 }
 0x1cb   : > { %v992_v56 = vpop.f32.mrf.mxu1 }
 0x1cc   : > { %773 = vst.msk [vmem:[%s1348_s19 + $0x50] sm:$0xff] %vm762_vm2, %v734_v55  ;;  %v749_v59 = vadd.f32 %v992_v56, %v862_v48 }
 0x1cd   : > { %v743_v60 = vpop.f32.mrf.mxu1 }
 0x1ce   : > { %776 = vst.msk [vmem:[%s1348_s19 + $0x68] sm:$0xff] %vm762_vm2, %v749_v59  ;;  %v744_v61 = vadd.f32 %v862_v48, %v743_v60 }
 0x1cf   : > { %v995_v62 = vpop.f32.mrf.mxu1 }
 0x1d0   : > { %775 = vst.msk [vmem:[%s1348_s19 + $0x60] sm:$0xff] %vm762_vm2, %v744_v61  ;;  %v759_v52 = vadd.f32 %v995_v62, %v862_v48 }
 0x1d1   : > { %v753_v38 = vpop.f32.mrf.mxu1 }
 0x1d2   : > { %778 = vst.msk [vmem:[%s1348_s19 + $0x78] sm:$0xff] %vm762_vm2, %v759_v52  ;;  %v754_v63 = vadd.f32 %v862_v48, %v753_v38 }
 0x1d4   : > { %777 = vst.msk [vmem:[%s1348_s19 + $0x70] sm:$0xff] %vm762_vm2, %v754_v63 }
 0x1d5 PF: > { %s15_s18 = sadd.s32 1, %s1074_s18  }
 0x1d6   : > { %p12_p4 = scmp.ge.s32.totalorder %s15_s18, 6  }
 0x1d8   :  { %14 = sbr.rel (!%p12_p4) target bundleno = 1 (0x1), region = 70 }

// kernel: fno_factorized_2d_block.15
= control target key start
LH: loop header
LB: loop body
LE: loop exit
PB: predicated region body
PF: predicated region fallthrough
CT: control target
= control target key end

     0   :  { %s1601_s9 = smov 0   ;;  %s1603_s10 = smov 0   ;;  %s1992_s0 = inlined_call_operand.vmem [shape: f32[40,640], index: 0, kind: input, shape index: {}]   ;;  %s1993_s1 = inlined_call_operand.vmem [shape: bf16[640,640], index: 1, kind: input, shape index: {}]   ;;  %s1994_s2 = inlined_call_operand.vmem [shape: f32[40,640], index: 2, kind: output, shape index: {}]  }
   0x1   :  { %s1605_s11 = smov 0   ;;  %s1607_s12 = smov 0  }
   0x2   :  { %s1609_s13 = smov 0  }
   0x3 LB: > { %s27_s14 = sadd.s32 1, %s1578_s12  ;;  %s1286_s15 = sadd.s32 4294967295, %s1582_s13   ;;  %s1582_s13 = sphi %s1609_s13, %s12_s13   ;;  %s1578_s12 = sphi %s1607_s12, %s1999_s12   ;;  %s1574_s11 = sphi %s1605_s11, %s1998_s11   ;;  %s1570_s10 = sphi %s1603_s10, %s1997_s10   ;;  %s1566_s9 = sphi %s1601_s9, %s1996_s9  }
   0x4   : > { %p29_p0 = scmp.ge.s32.totalorder %s27_s14, 5  ;;  %p75_p1 = scmp.ne.s32.totalorder %s1570_s10, %s1566_s9 }
   0x5   : > { %p76_p2 = scmp.eq.s32.totalorder %s1582_s13, 0  ;;  %p107_p4 = scmp.eq.s32.totalorder %s1286_s15, 4 }
   0x6   : > { %s2001_s14 = smov (%p29_p0, %s27_s14), 0  ;;  %s68_s17 = sadd.s32 1, %s1570_s10 }
   0x7   : > { %p77_p3 = por %p76_p2, %p75_p1  ;;  %s64_s16 = ssub.s32 %s1578_s12, %s2001_s14 }
   0x8   : > { %p66_p5 = scmp.eq.s32.totalorder %s64_s16, 0  ;;  %p1636_p6 = por %p107_p4, %p75_p1 }
   0x9   : > { %p1290_p7 = scmp.ge.s32.totalorder %s1582_s13, 5 }
   0xa   : > { %s1641_s19 = scalar_select %p66_p5, %s1570_s10, %s68_s17  }
   0xb   : > { %144 = sbr.rel (%p1290_p7) target bundleno = 73 (0x49), region = 20 }
  0x10   : > { %147 = sbr.rel (!%p77_p3) target bundleno = 73 (0x49), region = 24  ;;  %s149_s20 = sand.u32 (%p77_p3), 1, %s1570_s10  }
  0x11   : > { %s1291_s21 = sshll.u32 (%p77_p3), %s1578_s12, 2  ;;  %s1459_s22 = smul.u32 (%p77_p3), 320, %s149_s20 }
  0x12   : > { %s1649_s25 = scalar_lea.vmem (%p77_p3), %s1993_s1, %s1291_s21 }
  0x13   : > { %v173_v0 = vld [vmem:[%s1649_s25] sm:$0xf] (%p77_p3)  ;;  %v175_v1 = vld [vmem:[%s1649_s25 + $0x14] sm:$0xf] (%p77_p3)  ;;  %v177_v2 = vld [vmem:[%s1649_s25 + $0x28] sm:$0xf] (%p77_p3) }
  0x14   : > { %v179_v3 = vld [vmem:[%s1649_s25 + $0x3c] sm:$0xf] (%p77_p3)  ;;  %v181_v4 = vld [vmem:[%s1649_s25 + $0x50] sm:$0xf] (%p77_p3)  ;;  %s1656_s26 = scalar_lea.vmem (%p77_p3), [#allocation3], %s1459_s22 }
  0x15   : > { %174 = vst [vmem:[%s1656_s26] sm:$0xf] %v173_v0  ;;  %176 = vst [vmem:[%s1656_s26 + $0x4] sm:$0xf] %v175_v1  ;;  %v183_v5 = vld [vmem:[%s1649_s25 + $0x64] sm:$0xf] }
  0x16   : > { %178 = vst [vmem:[%s1656_s26 + $0x8] sm:$0xf] %v177_v2  ;;  %180 = vst [vmem:[%s1656_s26 + $0xc] sm:$0xf] %v179_v3  ;;  %v185_v6 = vld [vmem:[%s1649_s25 + $0x78] sm:$0xf] }
  0x17   : > { %182 = vst [vmem:[%s1656_s26 + $0x10] sm:$0xf] %v181_v4  ;;  %v187_v7 = vld [vmem:[%s1649_s25 + $0x8c] sm:$0xf]  ;;  %184 = vst [vmem:[%s1656_s26 + $0x14] sm:$0xf] %v183_v5 }
  0x18   : > { %186 = vst [vmem:[%s1656_s26 + $0x18] sm:$0xf] %v185_v6  ;;  %188 = vst [vmem:[%s1656_s26 + $0x1c] sm:$0xf] %v187_v7  ;;  %v189_v8 = vld [vmem:[%s1649_s25 + $0xa0] sm:$0xf] }
  0x19   : > { %v191_v9 = vld [vmem:[%s1649_s25 + $0xb4] sm:$0xf]  ;;  %v193_v10 = vld [vmem:[%s1649_s25 + $0xc8] sm:$0xf]  ;;  %190 = vst [vmem:[%s1656_s26 + $0x20] sm:$0xf] %v189_v8 }
  0x1a   : > { %192 = vst [vmem:[%s1656_s26 + $0x24] sm:$0xf] %v191_v9  ;;  %194 = vst [vmem:[%s1656_s26 + $0x28] sm:$0xf] %v193_v10  ;;  %v195_v11 = vld [vmem:[%s1649_s25 + $0xdc] sm:$0xf] }
  0x1b   : > { %v197_v12 = vld [vmem:[%s1649_s25 + $0xf0] sm:$0xf]  ;;  %v199_v13 = vld [vmem:[%s1649_s25 + $0x104] sm:$0xf]  ;;  %196 = vst [vmem:[%s1656_s26 + $0x2c] sm:$0xf] %v195_v11 }
  0x1c   : > { %198 = vst [vmem:[%s1656_s26 + $0x30] sm:$0xf] %v197_v12  ;;  %200 = vst [vmem:[%s1656_s26 + $0x34] sm:$0xf] %v199_v13  ;;  %v201_v14 = vld [vmem:[%s1649_s25 + $0x118] sm:$0xf] }
  0x1d   : > { %v203_v15 = vld [vmem:[%s1649_s25 + $0x12c] sm:$0xf]  ;;  %v205_v16 = vld [vmem:[%s1649_s25 + $0x140] sm:$0xf]  ;;  %202 = vst [vmem:[%s1656_s26 + $0x38] sm:$0xf] %v201_v14 }
  0x1e   : > { %204 = vst [vmem:[%s1656_s26 + $0x3c] sm:$0xf] %v203_v15  ;;  %206 = vst [vmem:[%s1656_s26 + $0x40] sm:$0xf] %v205_v16  ;;  %v207_v17 = vld [vmem:[%s1649_s25 + $0x154] sm:$0xf] }
  0x1f   : > { %v209_v18 = vld [vmem:[%s1649_s25 + $0x168] sm:$0xf]  ;;  %v211_v19 = vld [vmem:[%s1649_s25 + $0x17c] sm:$0xf]  ;;  %208 = vst [vmem:[%s1656_s26 + $0x44] sm:$0xf] %v207_v17 }
  0x20   : > { %210 = vst [vmem:[%s1656_s26 + $0x48] sm:$0xf] %v209_v18  ;;  %212 = vst [vmem:[%s1656_s26 + $0x4c] sm:$0xf] %v211_v19  ;;  %v213_v20 = vld [vmem:[%s1649_s25 + $0x190] sm:$0xf] }
  0x21   : > { %v215_v21 = vld [vmem:[%s1649_s25 + $0x1a4] sm:$0xf]  ;;  %v217_v22 = vld [vmem:[%s1649_s25 + $0x1b8] sm:$0xf]  ;;  %214 = vst [vmem:[%s1656_s26 + $0x50] sm:$0xf] %v213_v20 }
  0x22   : > { %216 = vst [vmem:[%s1656_s26 + $0x54] sm:$0xf] %v215_v21  ;;  %218 = vst [vmem:[%s1656_s26 + $0x58] sm:$0xf] %v217_v22  ;;  %v219_v23 = vld [vmem:[%s1649_s25 + $0x1cc] sm:$0xf] }
  0x23   : > { %v221_v24 = vld [vmem:[%s1649_s25 + $0x1e0] sm:$0xf]  ;;  %v223_v25 = vld [vmem:[%s1649_s25 + $0x1f4] sm:$0xf]  ;;  %220 = vst [vmem:[%s1656_s26 + $0x5c] sm:$0xf] %v219_v23 }
  0x24   : > { %222 = vst [vmem:[%s1656_s26 + $0x60] sm:$0xf] %v221_v24  ;;  %224 = vst [vmem:[%s1656_s26 + $0x64] sm:$0xf] %v223_v25  ;;  %v225_v26 = vld [vmem:[%s1649_s25 + $0x208] sm:$0xf] }
  0x25   : > { %v227_v27 = vld [vmem:[%s1649_s25 + $0x21c] sm:$0xf]  ;;  %v229_v28 = vld [vmem:[%s1649_s25 + $0x230] sm:$0xf]  ;;  %226 = vst [vmem:[%s1656_s26 + $0x68] sm:$0xf] %v225_v26 }
  0x26   : > { %228 = vst [vmem:[%s1656_s26 + $0x6c] sm:$0xf] %v227_v27  ;;  %230 = vst [vmem:[%s1656_s26 + $0x70] sm:$0xf] %v229_v28  ;;  %v231_v29 = vld [vmem:[%s1649_s25 + $0x244] sm:$0xf] }
  0x27   : > { %v233_v30 = vld [vmem:[%s1649_s25 + $0x258] sm:$0xf]  ;;  %v235_v31 = vld [vmem:[%s1649_s25 + $0x26c] sm:$0xf]  ;;  %232 = vst [vmem:[%s1656_s26 + $0x74] sm:$0xf] %v231_v29 }
  0x28   : > { %234 = vst [vmem:[%s1656_s26 + $0x78] sm:$0xf] %v233_v30  ;;  %236 = vst [vmem:[%s1656_s26 + $0x7c] sm:$0xf] %v235_v31  ;;  %v237_v32 = vld [vmem:[%s1649_s25 + $0x280] sm:$0xf] }
  0x29   : > { %v239_v33 = vld [vmem:[%s1649_s25 + $0x294] sm:$0xf]  ;;  %v241_v34 = vld [vmem:[%s1649_s25 + $0x2a8] sm:$0xf]  ;;  %238 = vst [vmem:[%s1656_s26 + $0x80] sm:$0xf] %v237_v32 }
  0x2a   : > { %240 = vst [vmem:[%s1656_s26 + $0x84] sm:$0xf] %v239_v33  ;;  %242 = vst [vmem:[%s1656_s26 + $0x88] sm:$0xf] %v241_v34  ;;  %v243_v35 = vld [vmem:[%s1649_s25 + $0x2bc] sm:$0xf] }
  0x2b   : > { %v245_v36 = vld [vmem:[%s1649_s25 + $0x2d0] sm:$0xf]  ;;  %v247_v37 = vld [vmem:[%s1649_s25 + $0x2e4] sm:$0xf]  ;;  %244 = vst [vmem:[%s1656_s26 + $0x8c] sm:$0xf] %v243_v35 }
  0x2c   : > { %246 = vst [vmem:[%s1656_s26 + $0x90] sm:$0xf] %v245_v36  ;;  %248 = vst [vmem:[%s1656_s26 + $0x94] sm:$0xf] %v247_v37  ;;  %v249_v38 = vld [vmem:[%s1649_s25 + $0x2f8] sm:$0xf] }
  0x2d   : > { %v251_v39 = vld [vmem:[%s1649_s25 + $0x30c] sm:$0xf]  ;;  %v253_v40 = vld [vmem:[%s1649_s25 + $0x320] sm:$0xf]  ;;  %250 = vst [vmem:[%s1656_s26 + $0x98] sm:$0xf] %v249_v38 }
  0x2e   : > { %252 = vst [vmem:[%s1656_s26 + $0x9c] sm:$0xf] %v251_v39  ;;  %254 = vst [vmem:[%s1656_s26 + $0xa0] sm:$0xf] %v253_v40  ;;  %v255_v41 = vld [vmem:[%s1649_s25 + $0x334] sm:$0xf] }
  0x2f   : > { %v257_v42 = vld [vmem:[%s1649_s25 + $0x348] sm:$0xf]  ;;  %v259_v43 = vld [vmem:[%s1649_s25 + $0x35c] sm:$0xf]  ;;  %256 = vst [vmem:[%s1656_s26 + $0xa4] sm:$0xf] %v255_v41 }
  0x30   : > { %258 = vst [vmem:[%s1656_s26 + $0xa8] sm:$0xf] %v257_v42  ;;  %260 = vst [vmem:[%s1656_s26 + $0xac] sm:$0xf] %v259_v43  ;;  %v261_v44 = vld [vmem:[%s1649_s25 + $0x370] sm:$0xf] }
  0x31   : > { %v263_v45 = vld [vmem:[%s1649_s25 + $0x384] sm:$0xf]  ;;  %v265_v46 = vld [vmem:[%s1649_s25 + $0x398] sm:$0xf]  ;;  %262 = vst [vmem:[%s1656_s26 + $0xb0] sm:$0xf] %v261_v44 }
  0x32   : > { %264 = vst [vmem:[%s1656_s26 + $0xb4] sm:$0xf] %v263_v45  ;;  %266 = vst [vmem:[%s1656_s26 + $0xb8] sm:$0xf] %v265_v46  ;;  %v267_v47 = vld [vmem:[%s1649_s25 + $0x3ac] sm:$0xf] }
  0x33   : > { %v269_v48 = vld [vmem:[%s1649_s25 + $0x3c0] sm:$0xf]  ;;  %v271_v49 = vld [vmem:[%s1649_s25 + $0x3d4] sm:$0xf]  ;;  %268 = vst [vmem:[%s1656_s26 + $0xbc] sm:$0xf] %v267_v47 }
  0x34   : > { %270 = vst [vmem:[%s1656_s26 + $0xc0] sm:$0xf] %v269_v48  ;;  %272 = vst [vmem:[%s1656_s26 + $0xc4] sm:$0xf] %v271_v49  ;;  %v273_v50 = vld [vmem:[%s1649_s25 + $0x3e8] sm:$0xf] }
  0x35   : > { %v275_v51 = vld [vmem:[%s1649_s25 + $0x3fc] sm:$0xf]  ;;  %v277_v52 = vld [vmem:[%s1649_s25 + $0x410] sm:$0xf]  ;;  %274 = vst [vmem:[%s1656_s26 + $0xc8] sm:$0xf] %v273_v50 }
  0x36   : > { %276 = vst [vmem:[%s1656_s26 + $0xcc] sm:$0xf] %v275_v51  ;;  %278 = vst [vmem:[%s1656_s26 + $0xd0] sm:$0xf] %v277_v52  ;;  %v279_v53 = vld [vmem:[%s1649_s25 + $0x424] sm:$0xf] }
  0x37   : > { %v281_v54 = vld [vmem:[%s1649_s25 + $0x438] sm:$0xf]  ;;  %v283_v55 = vld [vmem:[%s1649_s25 + $0x44c] sm:$0xf]  ;;  %280 = vst [vmem:[%s1656_s26 + $0xd4] sm:$0xf] %v279_v53 }
  0x38   : > { %282 = vst [vmem:[%s1656_s26 + $0xd8] sm:$0xf] %v281_v54  ;;  %284 = vst [vmem:[%s1656_s26 + $0xdc] sm:$0xf] %v283_v55  ;;  %v285_v56 = vld [vmem:[%s1649_s25 + $0x460] sm:$0xf] }
  0x39   : > { %v287_v57 = vld [vmem:[%s1649_s25 + $0x474] sm:$0xf]  ;;  %v289_v58 = vld [vmem:[%s1649_s25 + $0x488] sm:$0xf]  ;;  %286 = vst [vmem:[%s1656_s26 + $0xe0] sm:$0xf] %v285_v56 }
  0x3a   : > { %288 = vst [vmem:[%s1656_s26 + $0xe4] sm:$0xf] %v287_v57  ;;  %290 = vst [vmem:[%s1656_s26 + $0xe8] sm:$0xf] %v289_v58  ;;  %v291_v59 = vld [vmem:[%s1649_s25 + $0x49c] sm:$0xf] }
  0x3b   : > { %v293_v60 = vld [vmem:[%s1649_s25 + $0x4b0] sm:$0xf]  ;;  %v295_v61 = vld [vmem:[%s1649_s25 + $0x4c4] sm:$0xf]  ;;  %292 = vst [vmem:[%s1656_s26 + $0xec] sm:$0xf] %v291_v59 }
  0x3c   : > { %294 = vst [vmem:[%s1656_s26 + $0xf0] sm:$0xf] %v293_v60  ;;  %296 = vst [vmem:[%s1656_s26 + $0xf4] sm:$0xf] %v295_v61  ;;  %v297_v62 = vld [vmem:[%s1649_s25 + $0x4d8] sm:$0xf] }
  0x3d   : > { %v299_v63 = vld [vmem:[%s1649_s25 + $0x4ec] sm:$0xf]  ;;  %v301_v0 = vld [vmem:[%s1649_s25 + $0x500] sm:$0xf]  ;;  %298 = vst [vmem:[%s1656_s26 + $0xf8] sm:$0xf] %v297_v62 }
  0x3e   : > { %300 = vst [vmem:[%s1656_s26 + $0xfc] sm:$0xf] %v299_v63  ;;  %302 = vst [vmem:[%s1656_s26 + $0x100] sm:$0xf] %v301_v0  ;;  %v303_v1 = vld [vmem:[%s1649_s25 + $0x514] sm:$0xf] }
  0x3f   : > { %v305_v2 = vld [vmem:[%s1649_s25 + $0x528] sm:$0xf]  ;;  %v307_v3 = vld [vmem:[%s1649_s25 + $0x53c] sm:$0xf]  ;;  %304 = vst [vmem:[%s1656_s26 + $0x104] sm:$0xf] %v303_v1 }
  0x40   : > { %306 = vst [vmem:[%s1656_s26 + $0x108] sm:$0xf] %v305_v2  ;;  %308 = vst [vmem:[%s1656_s26 + $0x10c] sm:$0xf] %v307_v3  ;;  %v309_v4 = vld [vmem:[%s1649_s25 + $0x550] sm:$0xf] }
  0x41   : > { %v311_v5 = vld [vmem:[%s1649_s25 + $0x564] sm:$0xf]  ;;  %v313_v6 = vld [vmem:[%s1649_s25 + $0x578] sm:$0xf]  ;;  %310 = vst [vmem:[%s1656_s26 + $0x110] sm:$0xf] %v309_v4 }
  0x42   : > { %312 = vst [vmem:[%s1656_s26 + $0x114] sm:$0xf] %v311_v5  ;;  %314 = vst [vmem:[%s1656_s26 + $0x118] sm:$0xf] %v313_v6  ;;  %v315_v7 = vld [vmem:[%s1649_s25 + $0x58c] sm:$0xf] }
  0x43   : > { %v317_v8 = vld [vmem:[%s1649_s25 + $0x5a0] sm:$0xf]  ;;  %v319_v9 = vld [vmem:[%s1649_s25 + $0x5b4] sm:$0xf]  ;;  %316 = vst [vmem:[%s1656_s26 + $0x11c] sm:$0xf] %v315_v7 }
  0x44   : > { %318 = vst [vmem:[%s1656_s26 + $0x120] sm:$0xf] %v317_v8  ;;  %320 = vst [vmem:[%s1656_s26 + $0x124] sm:$0xf] %v319_v9  ;;  %v321_v10 = vld [vmem:[%s1649_s25 + $0x5c8] sm:$0xf] }
  0x45   : > { %v323_v11 = vld [vmem:[%s1649_s25 + $0x5dc] sm:$0xf]  ;;  %v325_v12 = vld [vmem:[%s1649_s25 + $0x5f0] sm:$0xf]  ;;  %322 = vst [vmem:[%s1656_s26 + $0x128] sm:$0xf] %v321_v10 }
  0x46   : > { %324 = vst [vmem:[%s1656_s26 + $0x12c] sm:$0xf] %v323_v11  ;;  %326 = vst [vmem:[%s1656_s26 + $0x130] sm:$0xf] %v325_v12  ;;  %v327_v13 = vld [vmem:[%s1649_s25 + $0x604] sm:$0xf] }
  0x47   : > { %v329_v14 = vld [vmem:[%s1649_s25 + $0x618] sm:$0xf]  ;;  %v331_v15 = vld [vmem:[%s1649_s25 + $0x62c] sm:$0xf]  ;;  %328 = vst [vmem:[%s1656_s26 + $0x134] sm:$0xf] %v327_v13 }
  0x48   : > { %330 = vst [vmem:[%s1656_s26 + $0x138] sm:$0xf] %v329_v14  ;;  %332 = vst [vmem:[%s1656_s26 + $0x13c] sm:$0xf] %v331_v15 }
  0x49 PF: > { %p1292_p8 = scmp.ge.s32.totalorder %s1582_s13, 1  ;;  %p515_p9 = scmp.lt.s32.totalorder %s1582_s13, 6 }
  0x4b   : > { %p516_p10 = pnand %p1292_p8, %p515_p9 }
  0x4c   : > { %s522_s27 = sand.u32 (!%p516_p10), 1, %s1566_s9  }
  0x4d   : > { %519 = sbr.rel (%p516_p10) target bundleno = 362 (0x16a), region = 65 }
  0x4e   : > { %s1460_s6 = smul.u32 (!%p516_p10), 320, %s522_s27 }
  0x4f   : > { %s1461_s23 = smul.u32 (!%p516_p10), 40, %s522_s27 }
  0x50   : > { %s1830_s15 = scalar_lea.vmem (!%p516_p10), [#allocation3], %s1460_s6 }
  0x51   : > { %s1959_s24 = scalar_lea.vmem (!%p516_p10), [#allocation4], %s1461_s23 }
  0x52   : > { %v582_v16 = vld [vmem:[%s1992_s0 + $0x8] sm:$0xff]  ;;  %v587_v17 = vld [vmem:[%s1992_s0 + $0x30] sm:$0xff]  ;;  %v584_v18 = vld [vmem:[%s1992_s0 + $0x18] sm:$0xff]  ;;  %v1584_v1 = vmov 0.0   ;;  %vm1585_vm0 = vmmov 0   ;;  %s1333_s9 = sshll.u32 (%p1636_p6), %s1574_s11, 3 }
  0x53   : > { %v607_v19 = vpack.c.bf16 %v587_v17, %v582_v16  ;;  %v589_v20 = vld [vmem:[%s1992_s0 + $0x40] sm:$0xff]  ;;  %v1504_v22 = vld [vmem:[%s1830_s15 + $0x78] sm:$0xff]   ;;  %v1508_v26 = vld [vmem:[%s1830_s15 + $0x70] sm:$0xff]   ;;  %s1143_s26 = scalar_lea.vmem (%p1636_p6), %s1994_s2, %s1333_s9 }
  0x54   : > { %v609_v21 = vpack.c.bf16 %v589_v20, %v584_v18  ;;  %v1505_v23 = vld [vmem:[%s1830_s15 + $0xf8] sm:$0xff]   ;;  %1336 = vmatprep.subr.bf16.mxu0 %v1504_v22  ;;  %v1509_v27 = vld [vmem:[%s1830_s15 + $0xf0] sm:$0xff]   ;;  %v1512_v30 = vld [vmem:[%s1830_s15 + $0x68] sm:$0xff]  }
  0x55   : > { %973 = vmatprep.mubr.bf16.mxu0 %v607_v19  ;;  %v1506_v24 = vld [vmem:[%s1830_s15 + $0x38] sm:$0xff]   ;;  %1370 = vmatprep.subr.bf16.mxu1 %v1505_v23  ;;  %v1510_v28 = vld [vmem:[%s1830_s15 + $0x30] sm:$0xff]   ;;  %v1513_v31 = vld [vmem:[%s1830_s15 + $0xe8] sm:$0xff]  }
  0x56   : > { %1029 = vmatprep.mubr.bf16.mxu1 %v609_v21  ;;  %v1507_v25 = vld [vmem:[%s1830_s15 + $0xb8] sm:$0xff]   ;;  %1337 = vmatpush3.bf16.msra.mxu0 %v1506_v24  ;;  %v1511_v29 = vld [vmem:[%s1830_s15 + $0xb0] sm:$0xff]   ;;  %v1514_v32 = vld [vmem:[%s1830_s15 + $0x28] sm:$0xff]  }
  0x57   : > { %1371 = vmatpush3.bf16.msra.mxu1 %v1507_v25  ;;  %1338 = vmatprep.subr.bf16.mxu0 %v1508_v26  ;;  %v1515_v33 = vld [vmem:[%s1830_s15 + $0xa8] sm:$0xff]   ;;  %v1516_v34 = vld [vmem:[%s1830_s15 + $0x60] sm:$0xff]   ;;  %v1520_v38 = vld [vmem:[%s1830_s15 + $0x58] sm:$0xff]  }
  0x58   : > { %1372 = vmatprep.subr.bf16.mxu1 %v1509_v27  ;;  %v1517_v35 = vld [vmem:[%s1830_s15 + $0xe0] sm:$0xff]   ;;  %v1521_v39 = vld [vmem:[%s1830_s15 + $0xd8] sm:$0xff]   ;;  %v1524_v42 = vld [vmem:[%s1830_s15 + $0x50] sm:$0xff]  }
  0x59   : > { %v1518_v36 = vld [vmem:[%s1830_s15 + $0x20] sm:$0xff]   ;;  %v1522_v40 = vld [vmem:[%s1830_s15 + $0x18] sm:$0xff]   ;;  %v1525_v43 = vld [vmem:[%s1830_s15 + $0xd0] sm:$0xff]  }
  0x5a   : > { %1339 = vmatpush3.bf16.msra.mxu0 %v1510_v28  ;;  %v1519_v37 = vld [vmem:[%s1830_s15 + $0xa0] sm:$0xff]   ;;  %v1523_v41 = vld [vmem:[%s1830_s15 + $0x98] sm:$0xff]   ;;  %v1526_v44 = vld [vmem:[%s1830_s15 + $0x10] sm:$0xff]  }
  0x5b   : > { %1373 = vmatpush3.bf16.msra.mxu1 %v1511_v29  ;;  %1340 = vmatprep.subr.bf16.mxu0 %v1512_v30  ;;  %v1527_v45 = vld [vmem:[%s1830_s15 + $0x90] sm:$0xff]   ;;  %v1528_v46 = vld [vmem:[%s1830_s15 + $0x48] sm:$0xff]   ;;  %v581_v49 = vld [vmem:[%s1992_s0] sm:$0xff] }
  0x5c   : > { %1374 = vmatprep.subr.bf16.mxu1 %v1513_v31  ;;  %v1529_v47 = vld [vmem:[%s1830_s15 + $0xc8] sm:$0xff]   ;;  %v583_v52 = vld [vmem:[%s1992_s0 + $0x10] sm:$0xff]  ;;  %v588_v53 = vld [vmem:[%s1992_s0 + $0x38] sm:$0xff] }
  0x5d   : > { %v1530_v48 = vld [vmem:[%s1830_s15 + $0x8] sm:$0xff]   ;;  %v1532_v54 = vld [vmem:[%s1830_s15 + $0x40] sm:$0xff]   ;;  %v592_v56 = vld [vmem:[%s1992_s0 + $0x58] sm:$0xff]  ;;  %v608_v63 = vpack.c.bf16 %v588_v53, %v583_v52 }
  0x5e   : > { %1341 = vmatpush3.bf16.msra.mxu0 %v1514_v32  ;;  %v586_v50 = vld [vmem:[%s1992_s0 + $0x28] sm:$0xff]  ;;  %v1533_v55 = vld [vmem:[%s1830_s15 + $0xc0] sm:$0xff]   ;;  %v599_v60 = vld [vmem:[%s1992_s0 + $0x90] sm:$0xff] }
  0x5f   : > { %1375 = vmatpush3.bf16.msra.mxu1 %v1515_v33  ;;  %1342 = vmatprep.subr.bf16.mxu0 %v1516_v34  ;;  %v1531_v51 = vld [vmem:[%s1830_s15 + $0x88] sm:$0xff]   ;;  %v597_v57 = vld [vmem:[%s1992_s0 + $0x80] sm:$0xff]  ;;  %v606_v62 = vpack.c.bf16 %v586_v50, %v581_v49  ;;  %v1536_v0 = vld [vmem:[%s1830_s15 + $0x138] sm:$0xff]  }
  0x60   : > { %1376 = vmatprep.subr.bf16.mxu1 %v1517_v35  ;;  %v1534_v58 = vld [vmem:[%s1830_s15] sm:$0xff]   ;;  %v594_v59 = vld [vmem:[%s1992_s0 + $0x68] sm:$0xff]  ;;  %v612_v2 = vpack.c.bf16 %v597_v57, %v592_v56  ;;  %v1537_v3 = vld [vmem:[%s1830_s15 + $0x130] sm:$0xff]  }
  0x61   : > { %v1535_v61 = vld [vmem:[%s1830_s15 + $0x80] sm:$0xff]   ;;  %v614_v4 = vpack.c.bf16 %v599_v60, %v594_v59  ;;  %v591_v5 = vld [vmem:[%s1992_s0 + $0x50] sm:$0xff]  ;;  %v596_v6 = vld [vmem:[%s1992_s0 + $0x78] sm:$0xff] }
  0x62   : > { %1343 = vmatpush3.bf16.msra.mxu0 %v1518_v36  ;;  %v593_v7 = vld [vmem:[%s1992_s0 + $0x60] sm:$0xff]  ;;  %v598_v8 = vld [vmem:[%s1992_s0 + $0x88] sm:$0xff]  ;;  %v611_v9 = vpack.c.bf16 %v596_v6, %v591_v5  ;;  %v604_v10 = vld [vmem:[%s1992_s0 + $0xb8] sm:$0xff] }
  0x63   : > { %1377 = vmatpush3.bf16.msra.mxu1 %v1519_v37  ;;  %1344 = vmatprep.subr.bf16.mxu0 %v1520_v38  ;;  %v1538_v11 = vld [vmem:[%s1830_s15 + $0x128] sm:$0xff]   ;;  %v613_v12 = vpack.c.bf16 %v598_v8, %v593_v7  ;;  %v619_v14 = vpack.c.bf16 %v604_v10, %v604_v10  ;;  %v1539_v16 = vld [vmem:[%s1830_s15 + $0x120] sm:$0xff]   ;;  %v603_v18 = vld [vmem:[%s1992_s0 + $0xb0] sm:$0xff] }
  0x64   : > { %1378 = vmatprep.subr.bf16.mxu1 %v1521_v39  ;;  %v602_v13 = vld [vmem:[%s1992_s0 + $0xa8] sm:$0xff]  ;;  %v601_v17 = vld [vmem:[%s1992_s0 + $0xa0] sm:$0xff]  ;;  %v1540_v20 = vld [vmem:[%s1830_s15 + $0x118] sm:$0xff]   ;;  %v618_v21 = vpack.c.bf16 %v603_v18, %v603_v18 }
  0x65   : > { %v617_v15 = vpack.c.bf16 %v602_v13, %v602_v13  ;;  %v616_v19 = vpack.c.bf16 %v601_v17, %v601_v17  ;;  %v1541_v22 = vld [vmem:[%s1830_s15 + $0x110] sm:$0xff]   ;;  %v1542_v23 = vld [vmem:[%s1830_s15 + $0x108] sm:$0xff]   ;;  %v1543_v24 = vld [vmem:[%s1830_s15 + $0x100] sm:$0xff]  }
  0x66   : > { %1345 = vmatpush3.bf16.msra.mxu0 %v1522_v40  ;;  %v585_v25 = vld [vmem:[%s1992_s0 + $0x20] sm:$0xff]  ;;  %v590_v26 = vld [vmem:[%s1992_s0 + $0x48] sm:$0xff]  ;;  %v595_v27 = vld [vmem:[%s1992_s0 + $0x70] sm:$0xff] }
  0x67   : > { %1379 = vmatpush3.bf16.msra.mxu1 %v1523_v41  ;;  %1346 = vmatprep.subr.bf16.mxu0 %v1524_v42  ;;  %v600_v28 = vld [vmem:[%s1992_s0 + $0x98] sm:$0xff]  ;;  %v610_v29 = vpack.c.bf16 %v590_v26, %v585_v25  ;;  %v605_v31 = vld [vmem:[%s1992_s0 + $0xc0] sm:$0xff] }
  0x68   : > { %1380 = vmatprep.subr.bf16.mxu1 %v1525_v43  ;;  %v615_v30 = vpack.c.bf16 %v600_v28, %v595_v27  ;;  %v620_v32 = vpack.c.bf16 %v605_v31, %v605_v31 }
  0x6a   : > { %1347 = vmatpush3.bf16.msra.mxu0 %v1526_v44 }
  0x6b   : > { %1381 = vmatpush3.bf16.msra.mxu1 %v1527_v45  ;;  %1348 = vmatprep.subr.bf16.mxu0 %v1528_v46 }
  0x6c   : > { %1382 = vmatprep.subr.bf16.mxu1 %v1529_v47 }
  0x6e   : > { %1349 = vmatpush3.bf16.msra.mxu0 %v1530_v48 }
  0x6f   : > { %1383 = vmatpush3.bf16.msra.mxu1 %v1531_v51  ;;  %1350 = vmatprep.subr.bf16.mxu0 %v1532_v54 }
  0x70   : > { %1384 = vmatprep.subr.bf16.mxu1 %v1533_v55 }
  0x72   : > { %1351 = vmatpush3.bf16.msra.mxu0 %v1534_v58 }
  0x73   : > { %1385 = vmatpush3.bf16.msra.mxu1 %v1535_v61  ;;  %1415 = vmatprep.subr.bf16.mxu0 %v1584_v1 }
  0x74   : > { %1443 = vmatprep.subr.bf16.mxu1 %v1584_v1 }
  0x75   : > { %974 = vmatmul.mubr.bf16.vlgmr.msra.gmra.mxu0 %v606_v62 }
  0x76   : > { %1030 = vmatmul.mubr.bf16.vlgmr.msra.gmra.mxu1 %v608_v63  ;;  %1416 = vmatpush3.bf16.msra.mxu0 %v1536_v0 }
  0x77   : > { %1451 = vmatpush3.bf16.msra.mxu1 %v1536_v0  ;;  %1417 = vmatprep.subr.bf16.mxu0 %v1584_v1 }
  0x78   : > { %1444 = vmatprep.subr.bf16.mxu1 %v1584_v1  ;;  %981 = vmatprep.mubr.bf16.mxu0 %v612_v2 }
  0x79   : > { %1037 = vmatprep.mubr.bf16.mxu1 %v614_v4 }
  0x7a   : > { %1418 = vmatpush3.bf16.msra.mxu0 %v1537_v3 }
  0x7b   : > { %1452 = vmatpush3.bf16.msra.mxu1 %v1537_v3  ;;  %1419 = vmatprep.subr.bf16.mxu0 %v1584_v1 }
  0x7c   : > { %1445 = vmatprep.subr.bf16.mxu1 %v1584_v1 }
  0x7d   : > { %982 = vmatmul.mubr.bf16.gmra.mxu0 %v611_v9 }
  0x7e   : > { %1420 = vmatpush3.bf16.msra.mxu0 %v1538_v11  ;;  %1038 = vmatmul.mubr.bf16.gmra.mxu1 %v613_v12 }
  0x7f   : > { %1453 = vmatpush3.bf16.msra.mxu1 %v1538_v11  ;;  %1421 = vmatprep.subr.bf16.mxu0 %v1584_v1 }
  0x80   : > { %1446 = vmatprep.subr.bf16.mxu1 %v1584_v1  ;;  %1045 = vmatprep.mubr.bf16.mxu1 %v619_v14 }
  0x81   : > { %989 = vmatprep.mubr.bf16.mxu0 %v617_v15 }
  0x82   : > { %1422 = vmatpush3.bf16.msra.mxu0 %v1539_v16 }
  0x83   : > { %1454 = vmatpush3.bf16.msra.mxu1 %v1539_v16  ;;  %1423 = vmatprep.subr.bf16.mxu0 %v1584_v1 }
  0x84   : > { %1447 = vmatprep.subr.bf16.mxu1 %v1584_v1 }
  0x85   : > { %990 = vmatmul.mubr.bf16.gmra.mxu0 %v616_v19 }
  0x86   : > { %1424 = vmatpush3.bf16.msra.mxu0 %v1540_v20  ;;  %1046 = vmatmul.mubr.bf16.gmra.mxu1 %v618_v21 }
  0x87   : > { %1455 = vmatpush3.bf16.msra.mxu1 %v1540_v20  ;;  %1425 = vmatprep.subr.bf16.mxu0 %v1584_v1 }
  0x88   : > { %1448 = vmatprep.subr.bf16.mxu1 %v1584_v1  ;;  %1431 = vmatprep.mubr.msk.bf16.mxu0 %vm1585_vm0, %v1584_v1 }
  0x89   : > { %1435 = vmatprep.mubr.msk.bf16.mxu1 %vm1585_vm0, %v1584_v1 }
  0x8a   : > { %1426 = vmatpush3.bf16.msra.mxu0 %v1541_v22 }
  0x8b   : > { %1456 = vmatpush3.bf16.msra.mxu1 %v1541_v22  ;;  %1427 = vmatprep.subr.bf16.mxu0 %v1584_v1 }
  0x8c   : > { %1449 = vmatprep.subr.bf16.mxu1 %v1584_v1 }
  0x8e   : > { %1428 = vmatpush3.bf16.msra.mxu0 %v1542_v23 }
  0x8f   : > { %1457 = vmatpush3.bf16.msra.mxu1 %v1542_v23  ;;  %1429 = vmatprep.subr.bf16.mxu0 %v1584_v1 }
  0x90   : > { %1450 = vmatprep.subr.bf16.mxu1 %v1584_v1 }
  0x92   : > { %1430 = vmatpush3.bf16.msra.mxu0 %v1543_v24 }
  0x93   : > { %1458 = vmatpush3.bf16.msra.mxu1 %v1543_v24 }
  0x95   : > { %1432 = vmatmul.mubr.bf16.vlgmr.msra.gmra.mxu0 %v610_v29 }
  0x96   : > { %1436 = vmatmul.mubr.bf16.vlgmr.msra.gmra.mxu1 %v615_v30 }
  0x97   : > { %1439 = vmatprep.mubr.msk.bf16.mxu1 %vm1585_vm0, %v1584_v1 }
  0x9e   : > { %1440 = vmatmul.mubr.bf16.gmra.mxu1 %v620_v32 }
 0x135   : > { %v1352_v33 = vpop.f32.mrf.mxu0 }
 0x136   : > { %v1386_v34 = vpop.f32.mrf.mxu1 }
 0x137   : > { %v1353_v35 = vpop.f32.mrf.mxu0 }
 0x138   : > { %v1387_v36 = vpop.f32.mrf.mxu1  ;;  %v1354_v57 = vadd.f32 %v1353_v35, %v1352_v33 }
 0x139   : > { %v1355_v37 = vpop.f32.mrf.mxu0  ;;  %v1388_v58 = vadd.f32 %v1387_v36, %v1386_v34 }
 0x13a   : > { %v1389_v38 = vpop.f32.mrf.mxu1 }
 0x13b   : > { %v1356_v39 = vpop.f32.mrf.mxu0  ;;  %v1032_v63 = vadd.f32 %v1388_v58, %v1354_v57 }
 0x13c   : > { %v1390_v40 = vpop.f32.mrf.mxu1  ;;  %v1357_v61 = vadd.f32 %v1356_v39, %v1355_v37 }
 0x13d   : > { %v1358_v41 = vpop.f32.mrf.mxu0  ;;  %v1391_v62 = vadd.f32 %v1390_v40, %v1389_v38 }
 0x13e   : > { %v1392_v42 = vpop.f32.mrf.mxu1 }
 0x13f   : > { %v1359_v43 = vpop.f32.mrf.mxu0  ;;  %v1035_v9 = vadd.f32 %v1391_v62, %v1357_v61 }
 0x140   : > { %v1393_v44 = vpop.f32.mrf.mxu1  ;;  %v1360_v59 = vadd.f32 %v1359_v43, %v1358_v41 }
 0x141   : > { %v1361_v45 = vpop.f32.mrf.mxu0  ;;  %v1394_v60 = vadd.f32 %v1393_v44, %v1392_v42 }
 0x142   : > { %v1395_v46 = vpop.f32.mrf.mxu1 }
 0x143   : > { %v1362_v47 = vpop.f32.mrf.mxu0  ;;  %v1040_v3 = vadd.f32 %v1394_v60, %v1360_v59 }
 0x144   : > { %v1396_v48 = vpop.f32.mrf.mxu1  ;;  %v1363_v0 = vadd.f32 %v1362_v47, %v1361_v45 }
 0x145   : > { %v1364_v49 = vpop.f32.mrf.mxu0  ;;  %v1397_v1 = vadd.f32 %v1396_v48, %v1395_v46 }
 0x146   : > { %v1398_v50 = vpop.f32.mrf.mxu1 }
 0x147   : > { %v1365_v51 = vpop.f32.mrf.mxu0  ;;  %v1043_v13 = vadd.f32 %v1397_v1, %v1363_v0 }
 0x148   : > { %v1399_v52 = vpop.f32.mrf.mxu1  ;;  %v1366_v11 = vadd.f32 %v1365_v51, %v1364_v49 }
 0x149   : > { %v1367_v53 = vpop.f32.mrf.mxu0  ;;  %v1400_v10 = vadd.f32 %v1399_v52, %v1398_v50 }
 0x14a   : > { %v1401_v54 = vpop.f32.mrf.mxu1 }
 0x14b   : > { %v1368_v55 = vpop.f32.mrf.mxu0  ;;  %v1048_v19 = vadd.f32 %v1400_v10, %v1366_v11 }
 0x14c   : > { %v1402_v56 = vpop.f32.mrf.mxu1 }
 0x155   : > { %v1087_v2 = vpop.f32.mrf.mxu0 }
 0x156   : > { %v1088_v4 = vadd.f32 %v1087_v2, %v1032_v63  ;;  %v1095_v5 = vpop.f32.mrf.mxu1 }
 0x157   : > { %v1096_v6 = vadd.f32 %v1095_v5, %v1040_v3  ;;  %v1433_v7 = vpop.f32.mrf.mxu0 }
 0x158   : > { %1127 = vst [vmem:[%s1959_s24] sm:$0xff] %v1088_v4  ;;  %v1437_v8 = vpop.f32.mrf.mxu1 }
 0x159   : > { %1129 = vst [vmem:[%s1959_s24 + $0x10] sm:$0xff] %v1096_v6  ;;  %v1090_v12 = vpop.f32.mrf.mxu0 }
 0x15a   : > { %v1091_v14 = vadd.f32 %v1090_v12, %v1035_v9  ;;  %v1098_v15 = vpop.f32.mrf.mxu1 }
 0x15b   : > { %v1099_v16 = vadd.f32 %v1098_v15, %v1043_v13  ;;  %v1434_v17 = vpop.f32.mrf.mxu0 }
 0x15c   : > { %1128 = vst [vmem:[%s1959_s24 + $0x8] sm:$0xff] %v1091_v14  ;;  %v1438_v18 = vpop.f32.mrf.mxu1 }
 0x15d   : > { %1130 = vst [vmem:[%s1959_s24 + $0x18] sm:$0xff] %v1099_v16 }
 0x15e   : > { %v1103_v20 = vpop.f32.mrf.mxu1 }
 0x15f   : > { %v1104_v21 = vadd.f32 %v1103_v20, %v1048_v19  ;;  %v1180_v25 = vld [vmem:[%s1959_s24] sm:$0xff] (%p1636_p6) }
 0x160   : > { %v1441_v22 = vpop.f32.mrf.mxu1  ;;  %1138 = sbr.rel (!%p1636_p6) target bundleno = 362 (0x16a), region = 81  ;;  %v1184_v27 = vld [vmem:[%s1959_s24 + $0x10] sm:$0xff] (%p1636_p6)  ;;  %1181 = vst [vmem:[%s1143_s26] sm:$0xff] (%p1636_p6), %v1180_v25 }
 0x161   : > { %1131 = vst [vmem:[%s1959_s24 + $0x20] sm:$0xff] %v1104_v21  ;;  %1185 = vst [vmem:[%s1143_s26 + $0x50] sm:$0xff] (%p1636_p6), %v1184_v27 }
 0x162   : > { %v1106_v23 = vpop.f32.mrf.mxu1 }
 0x163   : > { %v1182_v26 = vld [vmem:[%s1959_s24 + $0x8] sm:$0xff] (%p1636_p6) }
 0x164   : > { %v1442_v24 = vpop.f32.mrf.mxu1  ;;  %v1186_v28 = vld [vmem:[%s1959_s24 + $0x18] sm:$0xff] (%p1636_p6)  ;;  %1183 = vst [vmem:[%s1143_s26 + $0x28] sm:$0xff] (%p1636_p6), %v1182_v26 }
 0x165   : > { %1187 = vst [vmem:[%s1143_s26 + $0x78] sm:$0xff] %v1186_v28 }
 0x168   : > { %v1188_v29 = vld [vmem:[%s1959_s24 + $0x20] sm:$0xff] }
 0x169   : > { %1189 = vst [vmem:[%s1143_s26 + $0xa0] sm:$0xff] %v1188_v29 }
 0x16a PF: > { %s12_s13 = sadd.s32 1, %s1582_s13   ;;  %s1996_s9 = smov %s1570_s10 }
 0x16b   : > { %p9_p11 = scmp.ge.s32.totalorder %s12_s13, 7   ;;  %s1997_s10 = smov %s1641_s19 }
 0x16c   : > { %s1998_s11 = smov %s1578_s12  ;;  %s1999_s12 = smov %s2001_s14 }
 0x16d   :  { %11 = sbr.rel (!%p9_p11) target bundleno = 3 (0x3), region = 153 }

// kernel: fno_factorized_2d_block.17
= control target key start
LH: loop header
LB: loop body
LE: loop exit
PB: predicated region body
PF: predicated region fallthrough
CT: control target
= control target key end

     0   :  { %s1789_s24 = smov 0   ;;  %s2392_s0 = inlined_call_operand.vmem [shape: f32[800,32], index: 0, kind: input, shape index: {}]   ;;  %s2393_s1 = inlined_call_operand.vmem [shape: f32[800,32], index: 1, kind: input, shape index: {}]   ;;  %s2394_s2 = inlined_call_operand.vmem [shape: f32[800,32], index: 2, kind: input, shape index: {}]   ;;  %s2395_s3 = inlined_call_operand.vmem [shape: f32[32,64], index: 3, kind: input, shape index: {}]   ;;  %s2396_s4 = inlined_call_operand.vmem [shape: f32[1,64], index: 4, kind: input, shape index: {}]   ;;  %s2397_s5 = inlined_call_operand.vmem [shape: f32[64,32], index: 5, kind: input, shape index: {}]   ;;  %s2398_s6 = inlined_call_operand.vmem [shape: f32[1,32], index: 6, kind: input, shape index: {}]   ;;  %s2399_s7 = inlined_call_operand.vmem [shape: f32[800,32], index: 7, kind: output, shape index: {}]  }
   0x1 LB: > { %s1364_s25 = sadd.s32 4294967295, %s1745_s24   ;;  %p1368_p0 = scmp.ge.s32.totalorder %s1745_s24, 1  ;;  %s1745_s24 = sphi %s1789_s24, %s17_s24  }
   0x2   : > { %p260_p1 = scmp.lt.s32.totalorder %s1745_s24, 5 }
   0x4   : > { %p261_p2 = pnand %p1368_p0, %p260_p1 }
   0x5   : > { %s302_s28 = smul.u32 (!%p261_p2), 25, %s1364_s25 }
   0x6   : > { %264 = sbr.rel (%p261_p2) target bundleno = 511 (0x1ff), region = 48 }
   0x7   : > { %p303_p3 = scmp.lt.s32.totalorder (!%p261_p2), %s302_s28, 99 }
   0xb   : > { %v354_v0 = vld [vmem:[%s2395_s3 + $0x18] sm:$0xff]  ;;  %v1747_v1 = vmov 0.0   ;;  %v353_v2 = vld [vmem:[%s2395_s3 + $0x10] sm:$0xff]  ;;  %vm1748_vm0 = vmmov 0   ;;  %v352_v4 = vld [vmem:[%s2395_s3 + $0x8] sm:$0xff]  ;;  %s2401_s28 = smov (!%p303_p3, %s302_s28), 99 }
   0xc   : > { %1489 = vmatprep.subr.mxu0 %v1747_v1  ;;  %1497 = vmatprep.mubr.msk.f32.mxu0 %vm1748_vm0, %v1747_v1  ;;  %v660_v3 = vld [vmem:[%s2397_s5 + $0x38] sm:$0xff]  ;;  %v659_v5 = vld [vmem:[%s2397_s5 + $0x30] sm:$0xff]  ;;  %v351_v6 = vld [vmem:[%s2395_s3] sm:$0xff]  ;;  %s1822_s16 = sshll.u32 %s2401_s28, 3  ;;  %vm362_vm1 = vcmask 261120   ;;  %vm668_vm2 = vcmask 523264  }
   0xd   : > { %1490 = vmatpush3.msra.mxu0 %v354_v0  ;;  %1663 = vmatprep.subr.mxu1 %v1747_v1  ;;  %v658_v7 = vld [vmem:[%s2397_s5 + $0x28] sm:$0xff]  ;;  %s1833_s21 = scalar_lea.vmem %s2394_s2, %s1822_s16  ;;  %v657_v10 = vld [vmem:[%s2397_s5 + $0x20] sm:$0xff]  ;;  %v656_v12 = vld [vmem:[%s2397_s5 + $0x18] sm:$0xff]  ;;  %s2070_s14 = scalar_lea.vmem %s2392_s0, %s1822_s16 }
   0xe   : > { %1491 = vmatprep.subr.mxu0 %v1747_v1  ;;  %1671 = vmatpush3.msra.mxu1 %v660_v3  ;;  %v326_v8 = vld [vmem:[%s1833_s21] sm:$0xff]  ;;  %v327_v9 = vld [vmem:[%s1833_s21 + $0x8] sm:$0xff]  ;;  %v328_v11 = vld [vmem:[%s1833_s21 + $0x10] sm:$0xff]  ;;  %s2076_s18 = scalar_lea.vmem %s2393_s1, %s1822_s16  ;;  %s2182_s23 = scalar_lea.vmem %s2399_s7, %s1822_s16 }
   0xf   : > { %1492 = vmatpush3.msra.mxu0 %v353_v2  ;;  %1664 = vmatprep.subr.mxu1 %v1747_v1  ;;  %v329_v13 = vld [vmem:[%s1833_s21 + $0x18] sm:$0xff]  ;;  %v330_v14 = vld [vmem:[%s1833_s21 + $0x20] sm:$0xff]  ;;  %v331_v15 = vld [vmem:[%s1833_s21 + $0x28] sm:$0xff] }
  0x10   : > { %1493 = vmatprep.subr.mxu0 %v1747_v1  ;;  %1672 = vmatpush3.msra.mxu1 %v659_v5  ;;  %v332_v16 = vld [vmem:[%s1833_s21 + $0x30] sm:$0xff]  ;;  %v333_v17 = vld [vmem:[%s1833_s21 + $0x38] sm:$0xff]  ;;  %v334_v18 = vld [vmem:[%s1833_s21 + $0x40] sm:$0xff] }
  0x11   : > { %1494 = vmatpush3.msra.mxu0 %v352_v4  ;;  %1665 = vmatprep.subr.mxu1 %v1747_v1  ;;  %v335_v19 = vld [vmem:[%s1833_s21 + $0x48] sm:$0xff]  ;;  %v336_v20 = vld [vmem:[%s1833_s21 + $0x50] sm:$0xff]  ;;  %v337_v21 = vld [vmem:[%s1833_s21 + $0x58] sm:$0xff] }
  0x12   : > { %1495 = vmatprep.subr.mxu0 %v1747_v1  ;;  %1673 = vmatpush3.msra.mxu1 %v658_v7  ;;  %v338_v22 = vld [vmem:[%s1833_s21 + $0x60] sm:$0xff]  ;;  %v339_v23 = vld [vmem:[%s1833_s21 + $0x68] sm:$0xff]  ;;  %v340_v24 = vld [vmem:[%s1833_s21 + $0x70] sm:$0xff] }
  0x13   : > { %1496 = vmatpush3.msra.mxu0 %v351_v6  ;;  %1666 = vmatprep.subr.mxu1 %v1747_v1  ;;  %v341_v25 = vld [vmem:[%s1833_s21 + $0x78] sm:$0xff]  ;;  %v342_v26 = vld [vmem:[%s1833_s21 + $0x80] sm:$0xff]  ;;  %v655_v27 = vld [vmem:[%s2397_s5 + $0x10] sm:$0xff] }
  0x14   : > { %1498 = vmatmul.mubr.msk.f32.vlgmr.msra.gmra.mxu0 %vm362_vm1, %v326_v8  ;;  %1572 = vmatprep.subr.mxu0 %v1747_v1  ;;  %v343_v28 = vld [vmem:[%s1833_s21 + $0x88] sm:$0xff]  ;;  %v653_v30 = vld [vmem:[%s2397_s5] sm:$0xff]  ;;  %v344_v31 = vld [vmem:[%s1833_s21 + $0x90] sm:$0xff] }
  0x15   : > { %1500 = vmatprep.mubr.msk.f32.mxu0 %vm1748_vm0, %v1747_v1  ;;  %1573 = vmatpush3.msra.mxu0 %v660_v3  ;;  %v654_v29 = vld [vmem:[%s2397_s5 + $0x8] sm:$0xff]  ;;  %v345_v32 = vld [vmem:[%s1833_s21 + $0x98] sm:$0xff]  ;;  %v346_v33 = vld [vmem:[%s1833_s21 + $0xa0] sm:$0xff] }
  0x16   : > { %1574 = vmatprep.subr.mxu0 %v1747_v1  ;;  %1674 = vmatpush3.msra.mxu1 %v657_v10  ;;  %v347_v34 = vld [vmem:[%s1833_s21 + $0xa8] sm:$0xff]  ;;  %v348_v35 = vld [vmem:[%s1833_s21 + $0xb0] sm:$0xff]  ;;  %v349_v36 = vld [vmem:[%s1833_s21 + $0xb8] sm:$0xff] }
  0x17   : > { %1575 = vmatpush3.msra.mxu0 %v659_v5  ;;  %1667 = vmatprep.subr.mxu1 %v1747_v1  ;;  %v350_v37 = vld [vmem:[%s1833_s21 + $0xc0] sm:$0xff] }
  0x18   : > { %1501 = vmatmul.mubr.msk.f32.gmra.mxu0 %vm362_vm1, %v327_v9  ;;  %1576 = vmatprep.subr.mxu0 %v1747_v1  ;;  %v1968_v38 = vld [vmem:[%s2396_s4] ss:$0 sm:$0xff] }
  0x19   : > { %1503 = vmatprep.mubr.msk.f32.mxu0 %vm1748_vm0, %v1747_v1  ;;  %1577 = vmatpush3.msra.mxu0 %v658_v7 }
  0x1a   : > { %1578 = vmatprep.subr.mxu0 %v1747_v1  ;;  %1675 = vmatpush3.msra.mxu1 %v656_v12 }
  0x1b   : > { %1579 = vmatpush3.msra.mxu0 %v657_v10  ;;  %1668 = vmatprep.subr.mxu1 %v1747_v1 }
  0x1c   : > { %1504 = vmatmul.mubr.msk.f32.gmra.mxu0 %vm362_vm1, %v328_v11  ;;  %1580 = vmatprep.subr.mxu0 %v1747_v1 }
  0x1d   : > { %1506 = vmatprep.mubr.msk.f32.mxu0 %vm1748_vm0, %v1747_v1  ;;  %1581 = vmatpush3.msra.mxu0 %v656_v12 }
  0x1e   : > { %1582 = vmatprep.subr.mxu0 %v1747_v1  ;;  %1591 = vmatprep.mubr.msk.f32.mxu1 %vm1748_vm0, %v1747_v1 }
  0x1f   : > { %1676 = vmatpush3.msra.mxu1 %v655_v27  ;;  %1583 = vmatpush3.msra.mxu0 %v655_v27 }
  0x20   : > { %1507 = vmatmul.mubr.msk.f32.gmra.mxu0 %vm362_vm1, %v329_v13  ;;  %1584 = vmatprep.subr.mxu0 %v1747_v1 }
  0x21   : > { %1509 = vmatprep.mubr.msk.f32.mxu0 %vm1748_vm0, %v1747_v1  ;;  %1669 = vmatprep.subr.mxu1 %v1747_v1 }
  0x22   : > { %1585 = vmatpush3.msra.mxu0 %v654_v29  ;;  %1677 = vmatpush3.msra.mxu1 %v654_v29 }
  0x23   : > { %1586 = vmatprep.subr.mxu0 %v1747_v1  ;;  %1670 = vmatprep.subr.mxu1 %v1747_v1 }
  0x24   : > { %1510 = vmatmul.mubr.msk.f32.gmra.mxu0 %vm362_vm1, %v330_v14  ;;  %1678 = vmatpush3.msra.mxu1 %v653_v30 }
  0x25   : > { %1512 = vmatprep.mubr.msk.f32.mxu0 %vm1748_vm0, %v1747_v1  ;;  %1587 = vmatpush3.msra.mxu0 %v653_v30 }
  0x28   : > { %1513 = vmatmul.mubr.msk.f32.gmra.mxu0 %vm362_vm1, %v331_v15 }
  0x29   : > { %1515 = vmatprep.mubr.msk.f32.mxu0 %vm1748_vm0, %v1747_v1 }
  0x2c   : > { %1516 = vmatmul.mubr.msk.f32.gmra.mxu0 %vm362_vm1, %v332_v16 }
  0x2d   : > { %1518 = vmatprep.mubr.msk.f32.mxu0 %vm1748_vm0, %v1747_v1 }
  0x30   : > { %1519 = vmatmul.mubr.msk.f32.gmra.mxu0 %vm362_vm1, %v333_v17 }
  0x31   : > { %1521 = vmatprep.mubr.msk.f32.mxu0 %vm1748_vm0, %v1747_v1 }
  0x34   : > { %1522 = vmatmul.mubr.msk.f32.gmra.mxu0 %vm362_vm1, %v334_v18 }
  0x35   : > { %1524 = vmatprep.mubr.msk.f32.mxu0 %vm1748_vm0, %v1747_v1 }
  0x38   : > { %1525 = vmatmul.mubr.msk.f32.gmra.mxu0 %vm362_vm1, %v335_v19 }
  0x39   : > { %1527 = vmatprep.mubr.msk.f32.mxu0 %vm1748_vm0, %v1747_v1 }
  0x3c   : > { %1528 = vmatmul.mubr.msk.f32.gmra.mxu0 %vm362_vm1, %v336_v20 }
  0x3d   : > { %1530 = vmatprep.mubr.msk.f32.mxu0 %vm1748_vm0, %v1747_v1 }
  0x40   : > { %1531 = vmatmul.mubr.msk.f32.gmra.mxu0 %vm362_vm1, %v337_v21 }
  0x41   : > { %1533 = vmatprep.mubr.msk.f32.mxu0 %vm1748_vm0, %v1747_v1 }
  0x44   : > { %1534 = vmatmul.mubr.msk.f32.gmra.mxu0 %vm362_vm1, %v338_v22 }
  0x45   : > { %1536 = vmatprep.mubr.msk.f32.mxu0 %vm1748_vm0, %v1747_v1 }
  0x48   : > { %1537 = vmatmul.mubr.msk.f32.gmra.mxu0 %vm362_vm1, %v339_v23 }
  0x49   : > { %1539 = vmatprep.mubr.msk.f32.mxu0 %vm1748_vm0, %v1747_v1 }
  0x4c   : > { %1540 = vmatmul.mubr.msk.f32.gmra.mxu0 %vm362_vm1, %v340_v24 }
  0x4d   : > { %1542 = vmatprep.mubr.msk.f32.mxu0 %vm1748_vm0, %v1747_v1 }
  0x50   : > { %1543 = vmatmul.mubr.msk.f32.gmra.mxu0 %vm362_vm1, %v341_v25 }
  0x51   : > { %1545 = vmatprep.mubr.msk.f32.mxu0 %vm1748_vm0, %v1747_v1 }
  0x54   : > { %1546 = vmatmul.mubr.msk.f32.gmra.mxu0 %vm362_vm1, %v342_v26 }
  0x55   : > { %1548 = vmatprep.mubr.msk.f32.mxu0 %vm1748_vm0, %v1747_v1 }
  0x58   : > { %1549 = vmatmul.mubr.msk.f32.gmra.mxu0 %vm362_vm1, %v343_v28 }
  0x59   : > { %1551 = vmatprep.mubr.msk.f32.mxu0 %vm1748_vm0, %v1747_v1 }
  0x5c   : > { %1552 = vmatmul.mubr.msk.f32.gmra.mxu0 %vm362_vm1, %v344_v31 }
  0x5d   : > { %1554 = vmatprep.mubr.msk.f32.mxu0 %vm1748_vm0, %v1747_v1 }
  0x60   : > { %1555 = vmatmul.mubr.msk.f32.gmra.mxu0 %vm362_vm1, %v345_v32 }
  0x61   : > { %1557 = vmatprep.mubr.msk.f32.mxu0 %vm1748_vm0, %v1747_v1 }
  0x64   : > { %1558 = vmatmul.mubr.msk.f32.gmra.mxu0 %vm362_vm1, %v346_v33 }
  0x65   : > { %1560 = vmatprep.mubr.msk.f32.mxu0 %vm1748_vm0, %v1747_v1 }
  0x68   : > { %1561 = vmatmul.mubr.msk.f32.gmra.mxu0 %vm362_vm1, %v347_v34 }
  0x69   : > { %1563 = vmatprep.mubr.msk.f32.mxu0 %vm1748_vm0, %v1747_v1 }
  0x6c   : > { %1564 = vmatmul.mubr.msk.f32.gmra.mxu0 %vm362_vm1, %v348_v35 }
  0x6d   : > { %1566 = vmatprep.mubr.msk.f32.mxu0 %vm1748_vm0, %v1747_v1 }
  0x70   : > { %1567 = vmatmul.mubr.msk.f32.gmra.mxu0 %vm362_vm1, %v349_v36 }
  0x71   : > { %1569 = vmatprep.mubr.msk.f32.mxu0 %vm1748_vm0, %v1747_v1 }
  0x74   : > { %1570 = vmatmul.mubr.msk.f32.gmra.mxu0 %vm362_vm1, %v350_v37 }
  0x75   : > { %1588 = vmatprep.mubr.msk.f32.mxu0 %vm1748_vm0, %v1747_v1 }
  0xd4   : > { %v504_v39 = vpop.f32.mrf.mxu0 }
  0xd5   : > { %v505_v40 = vadd.f32 %v1968_v38, %v504_v39 }
  0xd6   : > { %v1499_v41 = vpop.f32.mrf.mxu0 }
  0xd7   : > { %v628_v42 = vmax.f32 %v505_v40, 0.0 }
  0xd8   : > { %v509_v43 = vpop.f32.mrf.mxu0 }
  0xd9   : > { %v510_v44 = vadd.f32 %v1968_v38, %v509_v43  ;;  %1589 = vmatmul.mubr.msk.f32.vlgmr.msra.gmra.mxu0 %vm668_vm2, %v628_v42 }
  0xda   : > { %v1502_v45 = vpop.f32.mrf.mxu0 }
  0xdb   : > { %v629_v46 = vmax.f32 %v510_v44, 0.0 }
  0xdc   : > { %v514_v47 = vpop.f32.mrf.mxu0 }
  0xdd   : > { %v515_v48 = vadd.f32 %v1968_v38, %v514_v47  ;;  %1592 = vmatmul.mubr.msk.f32.vlgmr.msra.gmra.mxu1 %vm668_vm2, %v629_v46 }
  0xde   : > { %v1505_v49 = vpop.f32.mrf.mxu0  ;;  %1594 = vmatprep.mubr.msk.f32.mxu1 %vm1748_vm0, %v1747_v1 }
  0xdf   : > { %v630_v50 = vmax.f32 %v515_v48, 0.0 }
  0xe0   : > { %v519_v51 = vpop.f32.mrf.mxu0 }
  0xe1   : > { %v520_v52 = vadd.f32 %v1968_v38, %v519_v51  ;;  %1595 = vmatmul.mubr.msk.f32.gmra.mxu1 %vm668_vm2, %v630_v50 }
  0xe2   : > { %v1508_v53 = vpop.f32.mrf.mxu0  ;;  %1597 = vmatprep.mubr.msk.f32.mxu1 %vm1748_vm0, %v1747_v1 }
  0xe3   : > { %v631_v54 = vmax.f32 %v520_v52, 0.0 }
  0xe4   : > { %v524_v55 = vpop.f32.mrf.mxu0 }
  0xe5   : > { %v525_v56 = vadd.f32 %v1968_v38, %v524_v55  ;;  %1598 = vmatmul.mubr.msk.f32.gmra.mxu1 %vm668_vm2, %v631_v54 }
  0xe6   : > { %v1511_v57 = vpop.f32.mrf.mxu0  ;;  %1600 = vmatprep.mubr.msk.f32.mxu1 %vm1748_vm0, %v1747_v1 }
  0xe7   : > { %v632_v58 = vmax.f32 %v525_v56, 0.0 }
  0xe8   : > { %v529_v59 = vpop.f32.mrf.mxu0 }
  0xe9   : > { %v530_v60 = vadd.f32 %v1968_v38, %v529_v59  ;;  %1601 = vmatmul.mubr.msk.f32.gmra.mxu1 %vm668_vm2, %v632_v58 }
  0xea   : > { %v1514_v61 = vpop.f32.mrf.mxu0  ;;  %1603 = vmatprep.mubr.msk.f32.mxu1 %vm1748_vm0, %v1747_v1 }
  0xeb   : > { %v633_v62 = vmax.f32 %v530_v60, 0.0 }
  0xec   : > { %v534_v63 = vpop.f32.mrf.mxu0 }
  0xed   : > { %v535_v0 = vadd.f32 %v1968_v38, %v534_v63  ;;  %1604 = vmatmul.mubr.msk.f32.gmra.mxu1 %vm668_vm2, %v633_v62 }
  0xee   : > { %v1517_v2 = vpop.f32.mrf.mxu0  ;;  %1606 = vmatprep.mubr.msk.f32.mxu1 %vm1748_vm0, %v1747_v1 }
  0xef   : > { %v634_v3 = vmax.f32 %v535_v0, 0.0 }
  0xf0   : > { %v539_v4 = vpop.f32.mrf.mxu0 }
  0xf1   : > { %v540_v5 = vadd.f32 %v1968_v38, %v539_v4  ;;  %1607 = vmatmul.mubr.msk.f32.gmra.mxu1 %vm668_vm2, %v634_v3 }
  0xf2   : > { %v1520_v6 = vpop.f32.mrf.mxu0  ;;  %1609 = vmatprep.mubr.msk.f32.mxu1 %vm1748_vm0, %v1747_v1 }
  0xf3   : > { %v635_v7 = vmax.f32 %v540_v5, 0.0 }
  0xf4   : > { %v544_v8 = vpop.f32.mrf.mxu0 }
  0xf5   : > { %v545_v9 = vadd.f32 %v1968_v38, %v544_v8  ;;  %1610 = vmatmul.mubr.msk.f32.gmra.mxu1 %vm668_vm2, %v635_v7 }
  0xf6   : > { %v1523_v10 = vpop.f32.mrf.mxu0  ;;  %1612 = vmatprep.mubr.msk.f32.mxu1 %vm1748_vm0, %v1747_v1 }
  0xf7   : > { %v636_v11 = vmax.f32 %v545_v9, 0.0 }
  0xf8   : > { %v549_v12 = vpop.f32.mrf.mxu0 }
  0xf9   : > { %v550_v13 = vadd.f32 %v1968_v38, %v549_v12  ;;  %1613 = vmatmul.mubr.msk.f32.gmra.mxu1 %vm668_vm2, %v636_v11 }
  0xfa   : > { %v1526_v14 = vpop.f32.mrf.mxu0  ;;  %1615 = vmatprep.mubr.msk.f32.mxu1 %vm1748_vm0, %v1747_v1 }
  0xfb   : > { %v637_v15 = vmax.f32 %v550_v13, 0.0  ;;  %v935_v14 = vld [vmem:[%s2070_s14 + $0x8] sm:$0xff] }
  0xfc   : > { %v554_v16 = vpop.f32.mrf.mxu0 }
  0xfd   : > { %v555_v17 = vadd.f32 %v1968_v38, %v554_v16  ;;  %1616 = vmatmul.mubr.msk.f32.gmra.mxu1 %vm668_vm2, %v637_v15  ;;  %v960_v15 = vld [vmem:[%s2076_s18 + $0x8] sm:$0xff] }
  0xfe   : > { %v1529_v18 = vpop.f32.mrf.mxu0  ;;  %1618 = vmatprep.mubr.msk.f32.mxu1 %vm1748_vm0, %v1747_v1 }
  0xff   : > { %v638_v19 = vmax.f32 %v555_v17, 0.0  ;;  %v2084_v17 = vadd.f32 %v960_v15, %v935_v14  ;;  %v936_v18 = vld [vmem:[%s2070_s14 + $0x10] sm:$0xff] }
 0x100   : > { %v559_v20 = vpop.f32.mrf.mxu0  ;;  %v944_v14 = vld [vmem:[%s2070_s14 + $0x50] sm:$0xff] }
 0x101   : > { %v560_v21 = vadd.f32 %v1968_v38, %v559_v20  ;;  %1619 = vmatmul.mubr.msk.f32.gmra.mxu1 %vm668_vm2, %v638_v19  ;;  %v961_v19 = vld [vmem:[%s2076_s18 + $0x10] sm:$0xff] }
 0x102   : > { %v1532_v22 = vpop.f32.mrf.mxu0  ;;  %1621 = vmatprep.mubr.msk.f32.mxu1 %vm1748_vm0, %v1747_v1  ;;  %v969_v15 = vld [vmem:[%s2076_s18 + $0x50] sm:$0xff] }
 0x103   : > { %v639_v23 = vmax.f32 %v560_v21, 0.0  ;;  %v1035_v21 = vmul.f32 0.044715, %v2084_v17  ;;  %v2090_v22 = vadd.f32 %v961_v19, %v936_v18  ;;  %v945_v18 = vld [vmem:[%s2070_s14 + $0x58] sm:$0xff] }
 0x104   : > { %v564_v24 = vpop.f32.mrf.mxu0  ;;  %v970_v19 = vld [vmem:[%s2076_s18 + $0x58] sm:$0xff] }
 0x105   : > { %v565_v25 = vadd.f32 %v1968_v38, %v564_v24  ;;  %1622 = vmatmul.mubr.msk.f32.gmra.mxu1 %vm668_vm2, %v639_v23  ;;  %v937_v23 = vld [vmem:[%s2070_s14 + $0x18] sm:$0xff] }
 0x106   : > { %v1535_v26 = vpop.f32.mrf.mxu0  ;;  %1624 = vmatprep.mubr.msk.f32.mxu1 %vm1748_vm0, %v1747_v1  ;;  %v962_v24 = vld [vmem:[%s2076_s18 + $0x18] sm:$0xff] }
 0x107   : > { %v640_v27 = vmax.f32 %v565_v25, 0.0  ;;  %v1060_v26 = vmul.f32 %v1035_v21, %v2084_v17 }
 0x108   : > { %v569_v28 = vpop.f32.mrf.mxu0 }
 0x109   : > { %v570_v29 = vadd.f32 %v1968_v38, %v569_v28  ;;  %1625 = vmatmul.mubr.msk.f32.gmra.mxu1 %vm668_vm2, %v640_v27  ;;  %v1036_v27 = vmul.f32 0.044715, %v2090_v22  ;;  %v2097_v28 = vadd.f32 %v962_v24, %v937_v23 }
 0x10a   : > { %v1538_v30 = vpop.f32.mrf.mxu0  ;;  %1627 = vmatprep.mubr.msk.f32.mxu1 %vm1748_vm0, %v1747_v1 }
 0x10b   : > { %v641_v31 = vmax.f32 %v570_v29, 0.0  ;;  %v938_v29 = vld [vmem:[%s2070_s14 + $0x20] sm:$0xff] }
 0x10c   : > { %v574_v32 = vpop.f32.mrf.mxu0  ;;  %v963_v30 = vld [vmem:[%s2076_s18 + $0x20] sm:$0xff] }
 0x10d   : > { %v575_v33 = vadd.f32 %v1968_v38, %v574_v32  ;;  %1628 = vmatmul.mubr.msk.f32.gmra.mxu1 %vm668_vm2, %v641_v31  ;;  %v1085_v32 = vmul.f32 %v1060_v26, %v2084_v17 }
 0x10e   : > { %v1541_v34 = vpop.f32.mrf.mxu0  ;;  %1630 = vmatprep.mubr.msk.f32.mxu1 %vm1748_vm0, %v1747_v1 }
 0x10f   : > { %v642_v35 = vmax.f32 %v575_v33, 0.0  ;;  %v1061_v33 = vmul.f32 %v1036_v27, %v2090_v22  ;;  %v1037_v34 = vmul.f32 0.044715, %v2097_v28 }
 0x110   : > { %v579_v36 = vpop.f32.mrf.mxu0 }
 0x111   : > { %v580_v37 = vadd.f32 %v1968_v38, %v579_v36  ;;  %1631 = vmatmul.mubr.msk.f32.gmra.mxu1 %vm668_vm2, %v642_v35  ;;  %v2105_v35 = vadd.f32 %v963_v30, %v938_v29  ;;  %v2157_v30 = vadd.f32 %v969_v15, %v944_v14 }
 0x112   : > { %v1544_v39 = vpop.f32.mrf.mxu0  ;;  %1633 = vmatprep.mubr.msk.f32.mxu1 %vm1748_vm0, %v1747_v1 }
 0x113   : > { %v643_v40 = vmax.f32 %v580_v37, 0.0  ;;  %v939_v37 = vld [vmem:[%s2070_s14 + $0x28] sm:$0xff] }
 0x114   : > { %v584_v41 = vpop.f32.mrf.mxu0  ;;  %v964_v39 = vld [vmem:[%s2076_s18 + $0x28] sm:$0xff] }
 0x115   : > { %v585_v42 = vadd.f32 %v1968_v38, %v584_v41  ;;  %1634 = vmatmul.mubr.msk.f32.gmra.mxu1 %vm668_vm2, %v643_v40  ;;  %v1110_v40 = vadd.f32 %v1085_v32, %v2084_v17  ;;  %v1086_v41 = vmul.f32 %v1061_v33, %v2090_v22  ;;  %v1010_v32 = vmul.f32 0.5, %v2084_v17 }
 0x116   : > { %v1547_v43 = vpop.f32.mrf.mxu0  ;;  %1636 = vmatprep.mubr.msk.f32.mxu1 %vm1748_vm0, %v1747_v1  ;;  %v1044_v17 = vmul.f32 0.044715, %v2157_v30 }
 0x117   : > { %v644_v44 = vmax.f32 %v585_v42, 0.0  ;;  %v1062_v42 = vmul.f32 %v1037_v34, %v2097_v28  ;;  %v1038_v43 = vmul.f32 0.044715, %v2105_v35 }
 0x118   : > { %v589_v45 = vpop.f32.mrf.mxu0 }
 0x119   : > { %v590_v46 = vadd.f32 %v1968_v38, %v589_v45  ;;  %1637 = vmatmul.mubr.msk.f32.gmra.mxu1 %vm668_vm2, %v644_v44  ;;  %v2114_v44 = vadd.f32 %v964_v39, %v939_v37 }
 0x11a   : > { %v1550_v47 = vpop.f32.mrf.mxu0  ;;  %1639 = vmatprep.mubr.msk.f32.mxu1 %vm1748_vm0, %v1747_v1 }
 0x11b   : > { %v645_v48 = vmax.f32 %v590_v46, 0.0  ;;  %v940_v46 = vld [vmem:[%s2070_s14 + $0x30] sm:$0xff] }
 0x11c   : > { %v594_v49 = vpop.f32.mrf.mxu0  ;;  %v965_v47 = vld [vmem:[%s2076_s18 + $0x30] sm:$0xff] }
 0x11d   : > { %v595_v50 = vadd.f32 %v1968_v38, %v594_v49  ;;  %1640 = vmatmul.mubr.msk.f32.gmra.mxu1 %vm668_vm2, %v645_v48  ;;  %v1135_v48 = vmul.f32 0.7978846, %v1110_v40  ;;  %v1111_v49 = vadd.f32 %v1086_v41, %v2090_v22 }
 0x11e   : > { %v1553_v51 = vpop.f32.mrf.mxu0  ;;  %1642 = vmatprep.mubr.msk.f32.mxu1 %vm1748_vm0, %v1747_v1 }
 0x11f   : > { %v646_v52 = vmax.f32 %v595_v50, 0.0  ;;  %v1087_v50 = vmul.f32 %v1062_v42, %v2097_v28  ;;  %v1063_v51 = vmul.f32 %v1038_v43, %v2105_v35 }
 0x120   : > { %v599_v53 = vpop.f32.mrf.mxu0 }
 0x121   : > { %v600_v54 = vadd.f32 %v1968_v38, %v599_v53  ;;  %1643 = vmatmul.mubr.msk.f32.gmra.mxu1 %vm668_vm2, %v646_v52  ;;  %v1039_v52 = vmul.f32 0.044715, %v2114_v44  ;;  %v2122_v53 = vadd.f32 %v965_v47, %v940_v46  ;;  %v971_v46 = vld [vmem:[%s2076_s18 + $0x60] sm:$0xff] }
 0x122   : > { %v1556_v55 = vpop.f32.mrf.mxu0  ;;  %1645 = vmatprep.mubr.msk.f32.mxu1 %vm1748_vm0, %v1747_v1 }
 0x123   : > { %v647_v56 = vmax.f32 %v600_v54, 0.0  ;;  %v941_v54 = vld [vmem:[%s2070_s14 + $0x38] sm:$0xff] }
 0x124   : > { %v604_v57 = vpop.f32.mrf.mxu0  ;;  %v966_v55 = vld [vmem:[%s2076_s18 + $0x38] sm:$0xff] }
 0x125   : > { %v605_v58 = vadd.f32 %v1968_v38, %v604_v57  ;;  %1646 = vmatmul.mubr.msk.f32.gmra.mxu1 %vm668_vm2, %v647_v56  ;;  %v1136_v56 = vmul.f32 0.7978846, %v1111_v49  ;;  %v1112_v57 = vadd.f32 %v1087_v50, %v2097_v28  ;;  %v947_v50 = vld [vmem:[%s2070_s14 + $0x68] sm:$0xff] }
 0x126   : > { %v1559_v59 = vpop.f32.mrf.mxu0  ;;  %1648 = vmatprep.mubr.msk.f32.mxu1 %vm1748_vm0, %v1747_v1 }
 0x127   : > { %v648_v60 = vmax.f32 %v605_v58, 0.0  ;;  %v1088_v58 = vmul.f32 %v1063_v51, %v2105_v35  ;;  %v1064_v59 = vmul.f32 %v1039_v52, %v2114_v44  ;;  %v972_v51 = vld [vmem:[%s2076_s18 + $0x68] sm:$0xff] }
 0x128   : > { %v609_v61 = vpop.f32.mrf.mxu0 }
 0x129   : > { %v610_v62 = vadd.f32 %v1968_v38, %v609_v61  ;;  %1649 = vmatmul.mubr.msk.f32.gmra.mxu1 %vm668_vm2, %v648_v60  ;;  %v1040_v60 = vmul.f32 0.044715, %v2122_v53  ;;  %v2130_v61 = vadd.f32 %v966_v55, %v941_v54 }
 0x12a   : > { %v1562_v63 = vpop.f32.mrf.mxu0  ;;  %1651 = vmatprep.mubr.msk.f32.mxu1 %vm1748_vm0, %v1747_v1 }
 0x12b   : > { %v649_v0 = vmax.f32 %v610_v62, 0.0  ;;  %v942_v62 = vld [vmem:[%s2070_s14 + $0x40] sm:$0xff] }
 0x12c   : > { %v614_v2 = vpop.f32.mrf.mxu0  ;;  %v967_v63 = vld [vmem:[%s2076_s18 + $0x40] sm:$0xff] }
 0x12d   : > { %v615_v3 = vadd.f32 %v1968_v38, %v614_v2  ;;  %1652 = vmatmul.mubr.msk.f32.gmra.mxu1 %vm668_vm2, %v649_v0  ;;  %v1137_v0 = vmul.f32 0.7978846, %v1112_v57  ;;  %v1113_v2 = vadd.f32 %v1088_v58, %v2105_v35 }
 0x12e   : > { %v1565_v4 = vpop.f32.mrf.mxu0  ;;  %1654 = vmatprep.mubr.msk.f32.mxu1 %vm1748_vm0, %v1747_v1 }
 0x12f   : > { %v650_v5 = vmax.f32 %v615_v3, 0.0  ;;  %v1089_v3 = vmul.f32 %v1064_v59, %v2114_v44  ;;  %v1065_v4 = vmul.f32 %v1040_v60, %v2122_v53  ;;  %v1069_v59 = vmul.f32 %v1044_v17, %v2157_v30 }
 0x130   : > { %v619_v6 = vpop.f32.mrf.mxu0 }
 0x131   : > { %v620_v7 = vadd.f32 %v1968_v38, %v619_v6  ;;  %1655 = vmatmul.mubr.msk.f32.gmra.mxu1 %vm668_vm2, %v650_v5  ;;  %v1041_v5 = vmul.f32 0.044715, %v2130_v61  ;;  %v2138_v6 = vadd.f32 %v967_v63, %v942_v62 }
 0x132   : > { %v1568_v8 = vpop.f32.mrf.mxu0  ;;  %1657 = vmatprep.mubr.msk.f32.mxu1 %vm1748_vm0, %v1747_v1 }
 0x133   : > { %v651_v9 = vmax.f32 %v620_v7, 0.0  ;;  %v943_v7 = vld [vmem:[%s2070_s14 + $0x48] sm:$0xff] }
 0x134   : > { %v624_v10 = vpop.f32.mrf.mxu0  ;;  %v968_v8 = vld [vmem:[%s2076_s18 + $0x48] sm:$0xff] }
 0x135   : > { %v625_v11 = vadd.f32 %v1968_v38, %v624_v10  ;;  %1658 = vmatmul.mubr.msk.f32.gmra.mxu1 %vm668_vm2, %v651_v9  ;;  %v959_v38 = vld [vmem:[%s2076_s18] sm:$0xff]  ;;  %v1138_v9 = vmul.f32 0.7978846, %v1113_v2  ;;  %v1114_v10 = vadd.f32 %v1089_v3, %v2114_v44 }
 0x136   : > { %v1571_v12 = vpop.f32.mrf.mxu0  ;;  %1660 = vmatprep.mubr.msk.f32.mxu1 %vm1748_vm0, %v1747_v1  ;;  %v934_v1 = vld [vmem:[%s2070_s14] sm:$0xff] }
 0x137   : > { %v652_v13 = vmax.f32 %v625_v11, 0.0  ;;  %v2082_v16 = vadd.f32 %v959_v38, %v934_v1  ;;  %v1090_v11 = vmul.f32 %v1065_v4, %v2122_v53  ;;  %v1066_v12 = vmul.f32 %v1041_v5, %v2130_v61  ;;  %v948_v4 = vld [vmem:[%s2070_s14 + $0x70] sm:$0xff] }
 0x138   : > { %v2146_v1 = vadd.f32 %v968_v8, %v943_v7  ;;  %v1139_v21 = vmul.f32 0.7978846, %v1114_v10  ;;  %v973_v5 = vld [vmem:[%s2076_s18 + $0x70] sm:$0xff] }
 0x139   : > { %1661 = vmatmul.mubr.msk.f32.gmra.mxu1 %vm668_vm2, %v652_v13  ;;  %v1034_v20 = vmul.f32 0.044715, %v2082_v16  ;;  %v1042_v13 = vmul.f32 0.044715, %v2138_v6  ;;  %v1115_v23 = vadd.f32 %v1090_v11, %v2122_v53  ;;  %v1091_v24 = vmul.f32 %v1066_v12, %v2130_v61 }
 0x13a   : > { %v1009_v26 = vmul.f32 0.5, %v2082_v16  ;;  %v1043_v29 = vmul.f32 0.044715, %v2146_v1 }
 0x13b   : > { %v1059_v25 = vmul.f32 %v1034_v20, %v2082_v16  ;;  %v1116_v37 = vadd.f32 %v1091_v24, %v2130_v61  ;;  %v1013_v24 = vmul.f32 0.5, %v2105_v35 }
 0x13c   : > { %v1068_v41 = vmul.f32 %v1043_v29, %v2146_v1 }
 0x13d   : > { %v1084_v31 = vmul.f32 %v1059_v25, %v2082_v16  ;;  %v1067_v25 = vmul.f32 %v1042_v13, %v2138_v6 }
 0x13f   : > { %v1109_v36 = vadd.f32 %v1084_v31, %v2082_v16  ;;  %v2159_v31 = vadd.f32 %v970_v19, %v945_v18  ;;  %v1140_v16 = vmul.f32 0.7978846, %v1115_v23  ;;  %v1092_v39 = vmul.f32 %v1067_v25, %v2138_v6 }
 0x141   : > { %v1134_v45 = vmul.f32 0.7978846, %v1109_v36  ;;  %v2165_v36 = vld [vmem:[%s2398_s6] ss:$0 sm:$0xff]  ;;  %v1045_v43 = vmul.f32 0.044715, %v2159_v31  ;;  %v1117_v57 = vadd.f32 %v1092_v39, %v2138_v6 }
 0x143   : > { %1689 = vtanh.f32 %v1134_v45  ;;  %v946_v45 = vld [vmem:[%s2070_s14 + $0x60] sm:$0xff]  ;;  %v1070_v63 = vmul.f32 %v1045_v43, %v2159_v31  ;;  %v1142_v11 = vmul.f32 0.7978846, %v1117_v57 }
 0x144   : > { %1691 = vtanh.f32 %v1135_v48  ;;  %v1011_v48 = vmul.f32 0.5, %v2090_v22  ;;  %v1093_v22 = vmul.f32 %v1068_v41, %v2146_v1  ;;  %v2187_v60 = vadd.f32 %v971_v46, %v946_v45 }
 0x145   : > { %1693 = vtanh.f32 %v1136_v56  ;;  %v1141_v56 = vmul.f32 0.7978846, %v1116_v37  ;;  %v1095_v18 = vmul.f32 %v1070_v63, %v2159_v31  ;;  %v1014_v45 = vmul.f32 0.5, %v2114_v44 }
 0x146   : > { %1695 = vtanh.f32 %v1137_v0  ;;  %v2190_v0 = vadd.f32 %v972_v51, %v947_v50  ;;  %v1118_v13 = vadd.f32 %v1093_v22, %v2146_v1  ;;  %v1046_v14 = vmul.f32 0.044715, %v2187_v60 }
 0x147   : > { %1697 = vtanh.f32 %v1138_v9  ;;  %v1012_v9 = vmul.f32 0.5, %v2097_v28  ;;  %v1120_v39 = vadd.f32 %v1095_v18, %v2159_v31  ;;  %v1015_v63 = vmul.f32 0.5, %v2122_v53 }
 0x148   : > { %1699 = vtanh.f32 %v1139_v21  ;;  %v1047_v19 = vmul.f32 0.044715, %v2190_v0 }
 0x149   : > { %1701 = vtanh.f32 %v1140_v16  ;;  %v1071_v16 = vmul.f32 %v1046_v14, %v2187_v60 }
 0x14a   : > { %1703 = vtanh.f32 %v1141_v56 }
 0x14b   : > { %1705 = vtanh.f32 %v1142_v11 }
 0x150   : > { %v1690_v38 = vpop.eup %1689 }
 0x151   : > { %v1692_v20 = vpop.eup %1691  ;;  %v1184_v27 = vadd.f32 1.0, %v1690_v38  ;;  %v1094_v38 = vmul.f32 %v1069_v59, %v2157_v30 }
 0x152   : > { %v1185_v33 = vadd.f32 1.0, %v1692_v20  ;;  %v1694_v34 = vpop.eup %1693  ;;  %v2203_v20 = vadd.f32 %v973_v5, %v948_v4 }
 0x153   : > { %v1209_v40 = vmul.f32 %v1184_v27, %v1009_v26  ;;  %v1186_v49 = vadd.f32 1.0, %v1694_v34  ;;  %v1696_v52 = vpop.eup %1695  ;;  %v949_v26 = vld [vmem:[%s2070_s14 + $0x78] sm:$0xff]  ;;  %v1119_v34 = vadd.f32 %v1094_v38, %v2157_v30 }
 0x154   : > { %v1210_v55 = vmul.f32 %v1185_v33, %v1010_v32  ;;  %v1698_v7 = vpop.eup %1697  ;;  %v1187_v10 = vadd.f32 1.0, %v1696_v52  ;;  %v974_v27 = vld [vmem:[%s2076_s18 + $0x78] sm:$0xff]  ;;  %v1143_v33 = vmul.f32 0.7978846, %v1118_v13  ;;  %v1048_v35 = vmul.f32 0.044715, %v2203_v20 }
 0x155   : > { %v1211_v3 = vmul.f32 %v1186_v49, %v1011_v48  ;;  %v1188_v25 = vadd.f32 1.0, %v1698_v7  ;;  %v1700_v29 = vpop.eup %1699  ;;  %v2219_v17 = vadd.f32 %v974_v27, %v949_v26  ;;  %v975_v48 = vld [vmem:[%s2076_s18 + $0x80] sm:$0xff]  ;;  %v1144_v51 = vmul.f32 0.7978846, %v1119_v34 }
 0x156   : > { %v1212_v23 = vmul.f32 %v1187_v10, %v1012_v9  ;;  %v1189_v46 = vadd.f32 1.0, %v1700_v29  ;;  %v1702_v49 = vpop.eup %1701  ;;  %1707 = vtanh.f32 %v1143_v33  ;;  %v1096_v52 = vmul.f32 %v1071_v16, %v2187_v60 }
 0x157   : > { %v1213_v43 = vmul.f32 %v1188_v25, %v1013_v24  ;;  %v1073_v57 = vmul.f32 %v1048_v35, %v2203_v20  ;;  %v1704_v4 = vpop.eup %1703  ;;  %v1190_v7 = vadd.f32 1.0, %v1702_v49  ;;  %1709 = vtanh.f32 %v1144_v51  ;;  %v952_v24 = vld [vmem:[%s2070_s14 + $0x90] sm:$0xff] }
 0x158   : > { %v1191_v18 = vadd.f32 1.0, %v1704_v4  ;;  %v977_v25 = vld [vmem:[%s2076_s18 + $0x90] sm:$0xff]  ;;  %v1017_v35 = vmul.f32 0.5, %v2138_v6 }
 0x159   : > { %v1098_v11 = vmul.f32 %v1073_v57, %v2203_v20  ;;  %v1018_v57 = vmul.f32 0.5, %v2146_v1 }
 0x15b   : > { %v1123_v29 = vadd.f32 %v1098_v11, %v2203_v20 }
 0x199   : > { %v810_v42 = vpop.f32.mrf.mxu0 }
 0x19a   : > { %v811_v47 = vadd.f32 %v2165_v36, %v810_v42 }
 0x19b   : > { %v1590_v54 = vpop.f32.mrf.mxu0 }
 0x19c   : > { %v1234_v58 = vadd.f32 %v1209_v40, %v811_v47  ;;  %v1072_v40 = vmul.f32 %v1047_v19, %v2190_v0  ;;  %v950_v47 = vld [vmem:[%s2070_s14 + $0x80] sm:$0xff]  ;;  %v1706_v19 = vpop.eup %1705 }
 0x19d   : > { %v815_v62 = vpop.f32.mrf.mxu1  ;;  %v2231_v22 = vadd.f32 %v975_v48, %v950_v47  ;;  %v1148_v47 = vmul.f32 0.7978846, %v1123_v29 }
 0x19e   : > { %1259 = vst.msk [vmem:[%s2182_s23] sm:$0xff] %vm362_vm1, %v1234_v58  ;;  %v816_v2 = vadd.f32 %v2165_v36, %v815_v62  ;;  %v1097_v56 = vmul.f32 %v1072_v40, %v2190_v0  ;;  %v1049_v58 = vmul.f32 0.044715, %v2219_v17  ;;  %v1214_v62 = vmul.f32 %v1189_v46, %v1014_v45  ;;  %v1708_v45 = vpop.eup %1707 }
 0x19f   : > { %v1593_v8 = vpop.f32.mrf.mxu1  ;;  %v1050_v13 = vmul.f32 0.044715, %v2231_v22 }
 0x1a0   : > { %v1235_v12 = vadd.f32 %v1210_v55, %v816_v2  ;;  %v1145_v55 = vmul.f32 0.7978846, %v1120_v39  ;;  %v951_v2 = vld [vmem:[%s2070_s14 + $0x88] sm:$0xff]  ;;  %v1121_v8 = vadd.f32 %v1096_v52, %v2187_v60  ;;  %v1122_v10 = vadd.f32 %v1097_v56, %v2190_v0 }
 0x1a1   : > { %v820_v15 = vpop.f32.mrf.mxu1  ;;  %v2256_v39 = vadd.f32 %v977_v25, %v952_v24 }
 0x1a2   : > { %1260 = vst.msk [vmem:[%s2182_s23 + $0x8] sm:$0xff] %vm362_vm1, %v1235_v12  ;;  %v821_v28 = vadd.f32 %v2165_v36, %v820_v15  ;;  %1711 = vtanh.f32 %v1145_v55  ;;  %v1074_v12 = vmul.f32 %v1049_v58, %v2219_v17  ;;  %v1016_v15 = vmul.f32 0.5, %v2130_v61  ;;  %v954_v58 = vld [vmem:[%s2070_s14 + $0xa0] sm:$0xff] }
 0x1a3   : > { %v1596_v21 = vpop.f32.mrf.mxu1  ;;  %v1147_v27 = vmul.f32 0.7978846, %v1122_v10  ;;  %v1075_v61 = vmul.f32 %v1050_v13, %v2231_v22  ;;  %v1052_v52 = vmul.f32 0.044715, %v2256_v39 }
 0x1a4   : > { %v1236_v32 = vadd.f32 %v1211_v3, %v821_v28  ;;  %v976_v3 = vld [vmem:[%s2076_s18 + $0x88] sm:$0xff]  ;;  %v1215_v21 = vmul.f32 %v1190_v7, %v1015_v63  ;;  %v1099_v33 = vmul.f32 %v1074_v12, %v2219_v17  ;;  %v1019_v12 = vmul.f32 0.5, %v2157_v30 }
 0x1a5   : > { %v825_v37 = vpop.f32.mrf.mxu1  ;;  %v2244_v38 = vadd.f32 %v976_v3, %v951_v2 }
 0x1a6   : > { %1261 = vst.msk [vmem:[%s2182_s23 + $0x10] sm:$0xff] %vm362_vm1, %v1236_v32  ;;  %v826_v41 = vadd.f32 %v2165_v36, %v825_v37  ;;  %v1216_v37 = vmul.f32 %v1191_v18, %v1016_v15  ;;  %v1124_v49 = vadd.f32 %v1099_v33, %v2219_v17  ;;  %v980_v15 = vld [vmem:[%s2076_s18 + $0xa8] sm:$0xff] }
 0x1a7   : > { %v1599_v42 = vpop.f32.mrf.mxu1  ;;  %v1051_v34 = vmul.f32 0.044715, %v2244_v38 }
 0x1a8   : > { %v1237_v50 = vadd.f32 %v1212_v23, %v826_v41  ;;  %v1146_v23 = vmul.f32 0.7978846, %v1121_v8  ;;  %v1192_v41 = vadd.f32 1.0, %v1706_v19  ;;  %v953_v42 = vld [vmem:[%s2070_s14 + $0x98] sm:$0xff]  ;;  %v1149_v4 = vmul.f32 0.7978846, %v1124_v49 }
 0x1a9   : > { %v830_v54 = vpop.f32.mrf.mxu1  ;;  %v1076_v6 = vmul.f32 %v1051_v34, %v2244_v38  ;;  %v1077_v8 = vmul.f32 %v1052_v52, %v2256_v39  ;;  %v1020_v19 = vmul.f32 0.5, %v2159_v31  ;;  %v956_v34 = vld [vmem:[%s2070_s14 + $0xb0] sm:$0xff]  ;;  %v1021_v49 = vmul.f32 0.5, %v2187_v60  ;;  %v957_v52 = vld [vmem:[%s2070_s14 + $0xb8] sm:$0xff] }
 0x1aa   : > { %1262 = vst.msk [vmem:[%s2182_s23 + $0x18] sm:$0xff] %vm362_vm1, %v1237_v50  ;;  %v831_v44 = vadd.f32 %v2165_v36, %v830_v54  ;;  %1713 = vtanh.f32 %v1146_v23  ;;  %v1100_v50 = vmul.f32 %v1075_v61, %v2231_v22  ;;  %v1217_v56 = vmul.f32 %v1192_v41, %v1017_v35 }
 0x1ab   : > { %v1602_v59 = vpop.f32.mrf.mxu1  ;;  %1715 = vtanh.f32 %v1147_v27  ;;  %v1101_v7 = vmul.f32 %v1076_v6, %v2244_v38  ;;  %v1102_v30 = vmul.f32 %v1077_v8, %v2256_v39  ;;  %v958_v8 = vld [vmem:[%s2070_s14 + $0xc0] sm:$0xff] }
 0x1ac   : > { %v1238_v5 = vadd.f32 %v1213_v43, %v831_v44  ;;  %v978_v43 = vld [vmem:[%s2076_s18 + $0x98] sm:$0xff]  ;;  %v1193_v44 = vadd.f32 1.0, %v1708_v45  ;;  %v979_v59 = vld [vmem:[%s2076_s18 + $0xa0] sm:$0xff]  ;;  %1717 = vtanh.f32 %v1148_v47 }
 0x1ad   : > { %v835_v9 = vpop.f32.mrf.mxu1  ;;  %v2268_v54 = vadd.f32 %v978_v43, %v953_v42  ;;  %v2280_v10 = vadd.f32 %v979_v59, %v954_v58  ;;  %1719 = vtanh.f32 %v1149_v4  ;;  %v1126_v24 = vadd.f32 %v1101_v7, %v2244_v38 }
 0x1ae   : > { %1263 = vst.msk [vmem:[%s2182_s23 + $0x20] sm:$0xff] %vm362_vm1, %v1238_v5  ;;  %v836_v53 = vadd.f32 %v2165_v36, %v835_v9  ;;  %v1125_v5 = vadd.f32 %v1100_v50, %v2231_v22  ;;  %v1127_v43 = vadd.f32 %v1102_v30, %v2256_v39  ;;  %v1024_v30 = vmul.f32 0.5, %v2219_v17 }
 0x1af   : > { %v1605_v14 = vpop.f32.mrf.mxu1  ;;  %v1053_v9 = vmul.f32 0.044715, %v2268_v54  ;;  %v1054_v27 = vmul.f32 0.044715, %v2280_v10  ;;  %v1151_v41 = vmul.f32 0.7978846, %v1126_v24 }
 0x1b0   : > { %v1239_v28 = vadd.f32 %v1214_v62, %v836_v53  ;;  %v1710_v62 = vpop.eup %1709  ;;  %v1218_v53 = vmul.f32 %v1193_v44, %v1018_v57  ;;  %v955_v14 = vld [vmem:[%s2070_s14 + $0xa8] sm:$0xff]  ;;  %v1150_v23 = vmul.f32 0.7978846, %v1125_v5  ;;  %v1022_v44 = vmul.f32 0.5, %v2190_v0 }
 0x1b1   : > { %v840_v26 = vpop.f32.mrf.mxu1  ;;  %v1712_v2 = vpop.eup %1711  ;;  %v1194_v13 = vadd.f32 1.0, %v1710_v62  ;;  %v2293_v31 = vadd.f32 %v980_v15, %v955_v14  ;;  %v1152_v60 = vmul.f32 0.7978846, %v1127_v43 }
 0x1b2   : > { %1264 = vst.msk [vmem:[%s2182_s23 + $0x28] sm:$0xff] %vm362_vm1, %v1239_v28  ;;  %v841_v32 = vadd.f32 %v2165_v36, %v840_v26  ;;  %v1195_v28 = vadd.f32 1.0, %v1712_v2  ;;  %v1078_v26 = vmul.f32 %v1053_v9, %v2268_v54  ;;  %1721 = vtanh.f32 %v1150_v23  ;;  %v983_v9 = vld [vmem:[%s2076_s18 + $0xc0] sm:$0xff] }
 0x1b3   : > { %v1608_v16 = vpop.f32.mrf.mxu1  ;;  %v1055_v47 = vmul.f32 0.044715, %v2293_v31  ;;  %1723 = vtanh.f32 %v1151_v41  ;;  %v2329_v24 = vadd.f32 %v983_v9, %v958_v8 }
 0x1b4   : > { %v1240_v40 = vadd.f32 %v1215_v21, %v841_v32  ;;  %v1219_v32 = vmul.f32 %v1194_v13, %v1019_v12  ;;  %v981_v16 = vld [vmem:[%s2076_s18 + $0xb0] sm:$0xff]  ;;  %v1220_v35 = vmul.f32 %v1195_v28, %v1020_v19  ;;  %v1103_v45 = vmul.f32 %v1078_v26, %v2268_v54 }
 0x1b5   : > { %v845_v46 = vpop.f32.mrf.mxu1  ;;  %v2305_v6 = vadd.f32 %v981_v16, %v956_v34  ;;  %v1080_v2 = vmul.f32 %v1055_v47, %v2293_v31  ;;  %1725 = vtanh.f32 %v1152_v60 }
 0x1b6   : > { %1265 = vst.msk [vmem:[%s2182_s23 + $0x30] sm:$0xff] %vm362_vm1, %v1240_v40  ;;  %v846_v48 = vadd.f32 %v2165_v36, %v845_v46  ;;  %v1079_v46 = vmul.f32 %v1054_v27, %v2280_v10  ;;  %v1128_v62 = vadd.f32 %v1103_v45, %v2268_v54  ;;  %v1025_v45 = vmul.f32 0.5, %v2231_v22 }
 0x1b7   : > { %v1611_v51 = vpop.f32.mrf.mxu1  ;;  %v1714_v33 = vpop.eup %1713  ;;  %v1056_v5 = vmul.f32 0.044715, %v2305_v6  ;;  %v1105_v19 = vmul.f32 %v1080_v2, %v2293_v31  ;;  %v1026_v22 = vmul.f32 0.5, %v2244_v38 }
 0x1b8   : > { %v1241_v55 = vadd.f32 %v1216_v37, %v846_v48  ;;  %v1716_v37 = vpop.eup %1715  ;;  %v1196_v50 = vadd.f32 1.0, %v1714_v33  ;;  %v1153_v15 = vmul.f32 0.7978846, %v1128_v62 }
 0x1b9   : > { %v850_v63 = vpop.f32.mrf.mxu1  ;;  %v1197_v58 = vadd.f32 1.0, %v1716_v37 }
 0x1ba   : > { %1266 = vst.msk [vmem:[%s2182_s23 + $0x38] sm:$0xff] %vm362_vm1, %v1241_v55  ;;  %v851_v3 = vadd.f32 %v2165_v36, %v850_v63  ;;  %v982_v55 = vld [vmem:[%s2076_s18 + $0xb8] sm:$0xff]  ;;  %v1104_v63 = vmul.f32 %v1079_v46, %v2280_v10  ;;  %v1221_v4 = vmul.f32 %v1196_v50, %v1021_v49  ;;  %1727 = vtanh.f32 %v1153_v15 }
 0x1bb   : > { %v1614_v1 = vpop.f32.mrf.mxu1  ;;  %v2317_v7 = vadd.f32 %v982_v55, %v957_v52 }
 0x1bc   : > { %v1242_v11 = vadd.f32 %v1217_v56, %v851_v3  ;;  %v1718_v56 = vpop.eup %1717 }
 0x1bd   : > { %v855_v18 = vpop.f32.mrf.mxu1  ;;  %v1198_v12 = vadd.f32 1.0, %v1718_v56  ;;  %v1720_v13 = vpop.eup %1719  ;;  %v1057_v23 = vmul.f32 0.044715, %v2317_v7 }
 0x1be   : > { %1267 = vst.msk [vmem:[%s2182_s23 + $0x40] sm:$0xff] %vm362_vm1, %v1242_v11  ;;  %v856_v21 = vadd.f32 %v2165_v36, %v855_v18  ;;  %v1222_v11 = vmul.f32 %v1197_v58, %v1022_v44  ;;  %v1129_v18 = vadd.f32 %v1104_v63, %v2280_v10  ;;  %v1199_v26 = vadd.f32 1.0, %v1720_v13 }
 0x1bf   : > { %v1617_v25 = vpop.f32.mrf.mxu1  ;;  %v1722_v27 = vpop.eup %1721  ;;  %v1082_v37 = vmul.f32 %v1057_v23, %v2317_v7 }
 0x1c0   : > { %v1243_v29 = vadd.f32 %v1218_v53, %v856_v21  ;;  %v1023_v53 = vmul.f32 0.5, %v2203_v20  ;;  %v1081_v21 = vmul.f32 %v1056_v5, %v2305_v6  ;;  %v1154_v33 = vmul.f32 0.7978846, %v1129_v18 }
 0x1c1   : > { %v860_v61 = vpop.f32.mrf.mxu1  ;;  %v1224_v41 = vmul.f32 %v1199_v26, %v1024_v30  ;;  %v1200_v46 = vadd.f32 1.0, %v1722_v27  ;;  %v1107_v50 = vmul.f32 %v1082_v37, %v2317_v7  ;;  %v1029_v27 = vmul.f32 0.5, %v2280_v10 }
 0x1c2   : > { %1268 = vst.msk [vmem:[%s2182_s23 + $0x48] sm:$0xff] %vm362_vm1, %v1243_v29  ;;  %v861_v40 = vadd.f32 %v2165_v36, %v860_v61  ;;  %v1130_v61 = vadd.f32 %v1105_v19, %v2293_v31  ;;  %v1106_v16 = vmul.f32 %v1081_v21, %v2305_v6  ;;  %1729 = vtanh.f32 %v1154_v33 }
 0x1c3   : > { %v1620_v42 = vpop.f32.mrf.mxu1  ;;  %v1132_v62 = vadd.f32 %v1107_v50, %v2317_v7 }
 0x1c4   : > { %v1244_v48 = vadd.f32 %v1219_v32, %v861_v40  ;;  %v1223_v32 = vmul.f32 %v1198_v12, %v1023_v53  ;;  %v1058_v40 = vmul.f32 0.044715, %v2329_v24  ;;  %v1724_v42 = vpop.eup %1723  ;;  %v1155_v47 = vmul.f32 0.7978846, %v1130_v61 }
 0x1c5   : > { %v865_v51 = vpop.f32.mrf.mxu1  ;;  %v1131_v49 = vadd.f32 %v1106_v16, %v2305_v6  ;;  %v1201_v44 = vadd.f32 1.0, %v1724_v42  ;;  %v1726_v58 = vpop.eup %1725  ;;  %v1030_v16 = vmul.f32 0.5, %v2293_v31 }
 0x1c6   : > { %1269 = vst.msk [vmem:[%s2182_s23 + $0x50] sm:$0xff] %vm362_vm1, %v1244_v48  ;;  %v866_v57 = vadd.f32 %v2165_v36, %v865_v51  ;;  %v1083_v51 = vmul.f32 %v1058_v40, %v2329_v24  ;;  %1731 = vtanh.f32 %v1155_v47  ;;  %v1202_v38 = vadd.f32 1.0, %v1726_v58 }
 0x1c7   : > { %v1623_v59 = vpop.f32.mrf.mxu1  ;;  %v1156_v60 = vmul.f32 0.7978846, %v1131_v49  ;;  %v1226_v5 = vmul.f32 %v1201_v44, %v1026_v22  ;;  %v1728_v8 = vpop.eup %1727  ;;  %v1033_v58 = vmul.f32 0.5, %v2329_v24 }
 0x1c8   : > { %v1245_v3 = vadd.f32 %v1220_v35, %v866_v57  ;;  %v1225_v57 = vmul.f32 %v1200_v46, %v1025_v45  ;;  %v1108_v63 = vmul.f32 %v1083_v51, %v2329_v24  ;;  %v1203_v15 = vadd.f32 1.0, %v1728_v8 }
 0x1c9   : > { %v870_v1 = vpop.f32.mrf.mxu1  ;;  %1733 = vtanh.f32 %v1156_v60  ;;  %v1032_v51 = vmul.f32 0.5, %v2317_v7 }
 0x1ca   : > { %1270 = vst.msk [vmem:[%s2182_s23 + $0x58] sm:$0xff] %vm362_vm1, %v1245_v3  ;;  %v871_v0 = vadd.f32 %v2165_v36, %v870_v1  ;;  %v1027_v1 = vmul.f32 0.5, %v2256_v39 }
 0x1cb   : > { %v1626_v14 = vpop.f32.mrf.mxu1 }
 0x1cc   : > { %v1246_v28 = vadd.f32 %v1221_v4, %v871_v0  ;;  %v1157_v0 = vmul.f32 0.7978846, %v1132_v62  ;;  %v1028_v14 = vmul.f32 0.5, %v2268_v54  ;;  %v1227_v19 = vmul.f32 %v1202_v38, %v1027_v1 }
 0x1cd   : > { %v875_v25 = vpop.f32.mrf.mxu1 }
 0x1ce   : > { %1271 = vst.msk [vmem:[%s2182_s23 + $0x60] sm:$0xff] %vm362_vm1, %v1246_v28  ;;  %v876_v20 = vadd.f32 %v2165_v36, %v875_v25  ;;  %1735 = vtanh.f32 %v1157_v0 }
 0x1cf   : > { %v1629_v29 = vpop.f32.mrf.mxu1  ;;  %v1730_v18 = vpop.eup %1729 }
 0x1d0   : > { %v1247_v34 = vadd.f32 %v1222_v11, %v876_v20  ;;  %v1133_v11 = vadd.f32 %v1108_v63, %v2329_v24  ;;  %v1228_v20 = vmul.f32 %v1203_v15, %v1028_v14  ;;  %v1204_v54 = vadd.f32 1.0, %v1730_v18 }
 0x1d1   : > { %v880_v35 = vpop.f32.mrf.mxu1 }
 0x1d2   : > { %1272 = vst.msk [vmem:[%s2182_s23 + $0x68] sm:$0xff] %vm362_vm1, %v1247_v34  ;;  %v881_v17 = vadd.f32 %v2165_v36, %v880_v35  ;;  %v1158_v28 = vmul.f32 0.7978846, %v1133_v11  ;;  %v1229_v34 = vmul.f32 %v1204_v54, %v1029_v27 }
 0x1d3   : > { %v1632_v43 = vpop.f32.mrf.mxu1  ;;  %v1732_v30 = vpop.eup %1731 }
 0x1d4   : > { %v1248_v48 = vadd.f32 %v1223_v32, %v881_v17  ;;  %1737 = vtanh.f32 %v1158_v28  ;;  %v1205_v37 = vadd.f32 1.0, %v1732_v30  ;;  %v1031_v43 = vmul.f32 0.5, %v2305_v6 }
 0x1d5   : > { %v885_v52 = vpop.f32.mrf.mxu1 }
 0x1d6   : > { %1273 = vst.msk [vmem:[%s2182_s23 + $0x70] sm:$0xff] %vm362_vm1, %v1248_v48  ;;  %v886_v55 = vadd.f32 %v2165_v36, %v885_v52  ;;  %v1734_v40 = vpop.eup %1733  ;;  %v1230_v42 = vmul.f32 %v1205_v37, %v1030_v16 }
 0x1d7   : > { %v1635_v56 = vpop.f32.mrf.mxu1  ;;  %v1206_v45 = vadd.f32 1.0, %v1734_v40 }
 0x1d8   : > { %v1249_v59 = vadd.f32 %v1224_v41, %v886_v55 }
 0x1d9   : > { %v890_v2 = vpop.f32.mrf.mxu1  ;;  %v1231_v50 = vmul.f32 %v1206_v45, %v1031_v43 }
 0x1da   : > { %1274 = vst.msk [vmem:[%s2182_s23 + $0x78] sm:$0xff] %vm362_vm1, %v1249_v59  ;;  %v891_v3 = vadd.f32 %v2165_v36, %v890_v2 }
 0x1db   : > { %v1638_v4 = vpop.f32.mrf.mxu1  ;;  %v1736_v46 = vpop.eup %1735 }
 0x1dc   : > { %v1250_v9 = vadd.f32 %v1225_v57, %v891_v3  ;;  %v1207_v52 = vadd.f32 1.0, %v1736_v46 }
 0x1dd   : > { %v895_v53 = vpop.f32.mrf.mxu1 }
 0x1de   : > { %1275 = vst.msk [vmem:[%s2182_s23 + $0x80] sm:$0xff] %vm362_vm1, %v1250_v9  ;;  %v896_v12 = vadd.f32 %v2165_v36, %v895_v53  ;;  %v1232_v44 = vmul.f32 %v1207_v52, %v1032_v51 }
 0x1df   : > { %v1641_v13 = vpop.f32.mrf.mxu1 }
 0x1e0   : > { %v1251_v39 = vadd.f32 %v1226_v5, %v896_v12 }
 0x1e1   : > { %v900_v21 = vpop.f32.mrf.mxu1  ;;  %v1738_v55 = vpop.eup %1737 }
 0x1e2   : > { %1276 = vst.msk [vmem:[%s2182_s23 + $0x88] sm:$0xff] %vm362_vm1, %v1251_v39  ;;  %v901_v23 = vadd.f32 %v2165_v36, %v900_v21  ;;  %v1208_v59 = vadd.f32 1.0, %v1738_v55 }
 0x1e3   : > { %v1644_v25 = vpop.f32.mrf.mxu1 }
 0x1e4   : > { %v1252_v26 = vadd.f32 %v1227_v19, %v901_v23  ;;  %v1233_v2 = vmul.f32 %v1208_v59, %v1033_v58 }
 0x1e5   : > { %v905_v29 = vpop.f32.mrf.mxu1 }
 0x1e6   : > { %1277 = vst.msk [vmem:[%s2182_s23 + $0x90] sm:$0xff] %vm362_vm1, %v1252_v26  ;;  %v906_v32 = vadd.f32 %v2165_v36, %v905_v29 }
 0x1e7   : > { %v1647_v33 = vpop.f32.mrf.mxu1 }
 0x1e8   : > { %v1253_v61 = vadd.f32 %v1228_v20, %v906_v32 }
 0x1e9   : > { %v910_v35 = vpop.f32.mrf.mxu1 }
 0x1ea   : > { %1278 = vst.msk [vmem:[%s2182_s23 + $0x98] sm:$0xff] %vm362_vm1, %v1253_v61  ;;  %v911_v10 = vadd.f32 %v2165_v36, %v910_v35 }
 0x1eb   : > { %v1650_v17 = vpop.f32.mrf.mxu1 }
 0x1ec   : > { %v1254_v41 = vadd.f32 %v1229_v34, %v911_v10 }
 0x1ed   : > { %v915_v47 = vpop.f32.mrf.mxu1 }
 0x1ee   : > { %1279 = vst.msk [vmem:[%s2182_s23 + $0xa0] sm:$0xff] %vm362_vm1, %v1254_v41  ;;  %v916_v31 = vadd.f32 %v2165_v36, %v915_v47 }
 0x1ef   : > { %v1653_v48 = vpop.f32.mrf.mxu1 }
 0x1f0   : > { %v1255_v49 = vadd.f32 %v1230_v42, %v916_v31 }
 0x1f1   : > { %v920_v56 = vpop.f32.mrf.mxu1 }
 0x1f2   : > { %1280 = vst.msk [vmem:[%s2182_s23 + $0xa8] sm:$0xff] %vm362_vm1, %v1255_v49  ;;  %v921_v6 = vadd.f32 %v2165_v36, %v920_v56 }
 0x1f3   : > { %v1656_v57 = vpop.f32.mrf.mxu1 }
 0x1f4   : > { %v1256_v22 = vadd.f32 %v1231_v50, %v921_v6 }
 0x1f5   : > { %v925_v60 = vpop.f32.mrf.mxu1 }
 0x1f6   : > { %1281 = vst.msk [vmem:[%s2182_s23 + $0xb0] sm:$0xff] %vm362_vm1, %v1256_v22  ;;  %v926_v7 = vadd.f32 %v2165_v36, %v925_v60 }
 0x1f7   : > { %v1659_v62 = vpop.f32.mrf.mxu1 }
 0x1f8   : > { %v1257_v63 = vadd.f32 %v1232_v44, %v926_v7 }
 0x1f9   : > { %v930_v3 = vpop.f32.mrf.mxu1 }
 0x1fa   : > { %1282 = vst.msk [vmem:[%s2182_s23 + $0xb8] sm:$0xff] %vm362_vm1, %v1257_v63  ;;  %v931_v4 = vadd.f32 %v2165_v36, %v930_v3 }
 0x1fb   : > { %v1662_v5 = vpop.f32.mrf.mxu1 }
 0x1fc   : > { %v1258_v1 = vadd.f32 %v1233_v2, %v931_v4 }
 0x1fe   : > { %1283 = vst.msk [vmem:[%s2182_s23 + $0xc0] sm:$0xff] %vm362_vm1, %v1258_v1 }
 0x1ff PF: > { %s17_s24 = sadd.s32 1, %s1745_s24  }
 0x200   : > { %p14_p4 = scmp.ge.s32.totalorder %s17_s24, 6  }
 0x202   :  { %16 = sbr.rel (!%p14_p4) target bundleno = 1 (0x1), region = 84 }

// kernel: fno_factorized_2d_block.27
= control target key start
LH: loop header
LB: loop body
LE: loop exit
PB: predicated region body
PF: predicated region fallthrough
CT: control target
= control target key end

     0   :  { %s1113_s18 = smov 0   ;;  %s1401_s0 = inlined_call_operand.vmem [shape: f32[512,32], index: 0, kind: input, shape index: {}]   ;;  %s1402_s1 = inlined_call_operand.vmem [shape: f32[32,128], index: 1, kind: input, shape index: {}]   ;;  %s1403_s2 = inlined_call_operand.vmem [shape: f32[1,128], index: 2, kind: input, shape index: {}]   ;;  %s1404_s3 = inlined_call_operand.vmem [shape: f32[128,3], index: 3, kind: input, shape index: {}]   ;;  %s1405_s4 = inlined_call_operand.vmem [shape: f32[1,3], index: 4, kind: input, shape index: {}]   ;;  %s1406_s5 = inlined_call_operand.vmem [shape: f32[512,3], index: 5, kind: output, shape index: {}]  }
   0x1 LB: > { %s834_s19 = sadd.s32 4294967295, %s1081_s18   ;;  %p838_p0 = scmp.ge.s32.totalorder %s1081_s18, 1  ;;  %s1081_s18 = sphi %s1113_s18, %s15_s18  }
   0x2   : > { %p188_p1 = scmp.lt.s32.totalorder %s1081_s18, 5 }
   0x4   : > { %p189_p2 = pnand %p838_p0, %p188_p1 }
   0x5   : > { %s839_s24 = sshll.u32 (!%p189_p2), %s834_s19, 4 }
   0x6   : > { %192 = sbr.rel (%p189_p2) target bundleno = 473 (0x1d9), region = 40  ;;  %p217_p3 = scmp.lt.s32.totalorder (!%p189_p2), %s839_s24, 63 }
   0xb   : > { %v247_v0 = vld [vmem:[%s1402_s1 + $0x18] sm:$0xff]  ;;  %v246_v1 = vld [vmem:[%s1402_s1 + $0x10] sm:$0xff]  ;;  %v245_v2 = vld [vmem:[%s1402_s1 + $0x8] sm:$0xff]  ;;  %s1408_s24 = smov (!%p217_p3, %s839_s24), 63  ;;  %vm255_vm0 = vcmask 261120   ;;  %vm761_vm1 = vcmask 23552  }
   0xc   : > { %915 = vmatprep.subr.mxu0 %v247_v0  ;;  %v244_v3 = vld [vmem:[%s1402_s1] sm:$0xff]  ;;  %s840_s29 = sshll.u32 %s1408_s24, 3  ;;  %v608_v20 = vld [vmem:[%s1404_s3 + $0x78] sm:$0xff]  ;;  %v607_v21 = vld [vmem:[%s1404_s3 + $0x70] sm:$0xff] }
   0xd   : > { %916 = vmatpush3.msra.mxu0 %v247_v0  ;;  %s1141_s7 = scalar_lea.vmem %s1401_s0, %s840_s29  ;;  %1003 = vmatprep.subr.mxu1 %v608_v20  ;;  %v606_v22 = vld [vmem:[%s1404_s3 + $0x68] sm:$0xff]  ;;  %v605_v23 = vld [vmem:[%s1404_s3 + $0x60] sm:$0xff]  ;;  %v604_v24 = vld [vmem:[%s1404_s3 + $0x58] sm:$0xff]  ;;  %s1364_s26 = scalar_lea.vmem %s1406_s5, %s840_s29 }
   0xe   : > { %917 = vmatprep.subr.mxu0 %v246_v1  ;;  %v228_v4 = vld [vmem:[%s1141_s7] sm:$0xff]  ;;  %v229_v5 = vld [vmem:[%s1141_s7 + $0x8] sm:$0xff]  ;;  %v230_v6 = vld [vmem:[%s1141_s7 + $0x10] sm:$0xff]  ;;  %1019 = vmatpush3.msra.mxu1 %v608_v20 }
   0xf   : > { %918 = vmatpush3.msra.mxu0 %v246_v1  ;;  %923 = vmatprep.mubr.msk.f32.mxu0 %vm255_vm0, %v228_v4  ;;  %v231_v7 = vld [vmem:[%s1141_s7 + $0x18] sm:$0xff]  ;;  %v232_v8 = vld [vmem:[%s1141_s7 + $0x20] sm:$0xff]  ;;  %v233_v9 = vld [vmem:[%s1141_s7 + $0x28] sm:$0xff] }
  0x10   : > { %919 = vmatprep.subr.mxu0 %v245_v2  ;;  %v234_v10 = vld [vmem:[%s1141_s7 + $0x30] sm:$0xff]  ;;  %v235_v11 = vld [vmem:[%s1141_s7 + $0x38] sm:$0xff]  ;;  %v236_v12 = vld [vmem:[%s1141_s7 + $0x40] sm:$0xff]  ;;  %1004 = vmatprep.subr.mxu1 %v607_v21 }
  0x11   : > { %920 = vmatpush3.msra.mxu0 %v245_v2  ;;  %v237_v13 = vld [vmem:[%s1141_s7 + $0x48] sm:$0xff]  ;;  %v238_v14 = vld [vmem:[%s1141_s7 + $0x50] sm:$0xff]  ;;  %v239_v15 = vld [vmem:[%s1141_s7 + $0x58] sm:$0xff]  ;;  %1020 = vmatpush3.msra.mxu1 %v607_v21 }
  0x12   : > { %921 = vmatprep.subr.mxu0 %v244_v3  ;;  %v240_v16 = vld [vmem:[%s1141_s7 + $0x60] sm:$0xff]  ;;  %v241_v17 = vld [vmem:[%s1141_s7 + $0x68] sm:$0xff]  ;;  %v242_v18 = vld [vmem:[%s1141_s7 + $0x70] sm:$0xff]  ;;  %1005 = vmatprep.subr.mxu1 %v606_v22 }
  0x13   : > { %922 = vmatpush3.msra.mxu0 %v244_v3  ;;  %v243_v19 = vld [vmem:[%s1141_s7 + $0x78] sm:$0xff]  ;;  %1021 = vmatpush3.msra.mxu1 %v606_v22  ;;  %v603_v25 = vld [vmem:[%s1404_s3 + $0x50] sm:$0xff]  ;;  %v602_v26 = vld [vmem:[%s1404_s3 + $0x48] sm:$0xff] }
  0x14   : > { %924 = vmatmul.mubr.msk.f32.vlgmr.msra.gmra.mxu0 %vm255_vm0, %v229_v5  ;;  %947 = vmatprep.subr.mxu0 %v608_v20  ;;  %v601_v27 = vld [vmem:[%s1404_s3 + $0x40] sm:$0xff]  ;;  %v600_v28 = vld [vmem:[%s1404_s3 + $0x38] sm:$0xff]  ;;  %v599_v29 = vld [vmem:[%s1404_s3 + $0x30] sm:$0xff] }
  0x15   : > { %926 = vmatprep.mubr.msk.f32.mxu0 %vm255_vm0, %v230_v6  ;;  %948 = vmatpush3.msra.mxu0 %v608_v20  ;;  %v598_v30 = vld [vmem:[%s1404_s3 + $0x28] sm:$0xff]  ;;  %v597_v31 = vld [vmem:[%s1404_s3 + $0x20] sm:$0xff]  ;;  %v596_v32 = vld [vmem:[%s1404_s3 + $0x18] sm:$0xff] }
  0x16   : > { %949 = vmatprep.subr.mxu0 %v607_v21  ;;  %1006 = vmatprep.subr.mxu1 %v605_v23  ;;  %v595_v33 = vld [vmem:[%s1404_s3 + $0x10] sm:$0xff]  ;;  %v594_v34 = vld [vmem:[%s1404_s3 + $0x8] sm:$0xff]  ;;  %v593_v35 = vld [vmem:[%s1404_s3] sm:$0xff] }
  0x17   : > { %950 = vmatpush3.msra.mxu0 %v607_v21  ;;  %1022 = vmatpush3.msra.mxu1 %v605_v23  ;;  %v1226_v36 = vld [vmem:[%s1403_s2] ss:$0 sm:$0xff] }
  0x18   : > { %927 = vmatmul.mubr.msk.f32.gmra.mxu0 %vm255_vm0, %v231_v7  ;;  %951 = vmatprep.subr.mxu0 %v606_v22 }
  0x19   : > { %929 = vmatprep.mubr.msk.f32.mxu0 %vm255_vm0, %v232_v8  ;;  %952 = vmatpush3.msra.mxu0 %v606_v22 }
  0x1a   : > { %953 = vmatprep.subr.mxu0 %v605_v23  ;;  %1007 = vmatprep.subr.mxu1 %v604_v24 }
  0x1b   : > { %954 = vmatpush3.msra.mxu0 %v605_v23  ;;  %1023 = vmatpush3.msra.mxu1 %v604_v24 }
  0x1c   : > { %930 = vmatmul.mubr.msk.f32.gmra.mxu0 %vm255_vm0, %v233_v9  ;;  %955 = vmatprep.subr.mxu0 %v604_v24 }
  0x1d   : > { %932 = vmatprep.mubr.msk.f32.mxu0 %vm255_vm0, %v234_v10  ;;  %956 = vmatpush3.msra.mxu0 %v604_v24 }
  0x1e   : > { %957 = vmatprep.subr.mxu0 %v603_v25  ;;  %1008 = vmatprep.subr.mxu1 %v603_v25 }
  0x1f   : > { %958 = vmatpush3.msra.mxu0 %v603_v25  ;;  %1024 = vmatpush3.msra.mxu1 %v603_v25 }
  0x20   : > { %933 = vmatmul.mubr.msk.f32.gmra.mxu0 %vm255_vm0, %v235_v11  ;;  %959 = vmatprep.subr.mxu0 %v602_v26 }
  0x21   : > { %935 = vmatprep.mubr.msk.f32.mxu0 %vm255_vm0, %v236_v12  ;;  %1009 = vmatprep.subr.mxu1 %v602_v26 }
  0x22   : > { %960 = vmatpush3.msra.mxu0 %v602_v26  ;;  %1025 = vmatpush3.msra.mxu1 %v602_v26 }
  0x23   : > { %961 = vmatprep.subr.mxu0 %v601_v27  ;;  %1010 = vmatprep.subr.mxu1 %v601_v27 }
  0x24   : > { %936 = vmatmul.mubr.msk.f32.gmra.mxu0 %vm255_vm0, %v237_v13  ;;  %1026 = vmatpush3.msra.mxu1 %v601_v27 }
  0x25   : > { %938 = vmatprep.mubr.msk.f32.mxu0 %vm255_vm0, %v238_v14  ;;  %962 = vmatpush3.msra.mxu0 %v601_v27 }
  0x26   : > { %963 = vmatprep.subr.mxu0 %v600_v28  ;;  %1011 = vmatprep.subr.mxu1 %v600_v28 }
  0x27   : > { %964 = vmatpush3.msra.mxu0 %v600_v28  ;;  %1027 = vmatpush3.msra.mxu1 %v600_v28 }
  0x28   : > { %939 = vmatmul.mubr.msk.f32.gmra.mxu0 %vm255_vm0, %v239_v15  ;;  %965 = vmatprep.subr.mxu0 %v599_v29 }
  0x29   : > { %941 = vmatprep.mubr.msk.f32.mxu0 %vm255_vm0, %v240_v16  ;;  %1012 = vmatprep.subr.mxu1 %v599_v29 }
  0x2a   : > { %966 = vmatpush3.msra.mxu0 %v599_v29  ;;  %1028 = vmatpush3.msra.mxu1 %v599_v29 }
  0x2b   : > { %967 = vmatprep.subr.mxu0 %v598_v30  ;;  %1013 = vmatprep.subr.mxu1 %v598_v30 }
  0x2c   : > { %942 = vmatmul.mubr.msk.f32.gmra.mxu0 %vm255_vm0, %v241_v17  ;;  %1029 = vmatpush3.msra.mxu1 %v598_v30 }
  0x2d   : > { %944 = vmatprep.mubr.msk.f32.mxu0 %vm255_vm0, %v242_v18  ;;  %968 = vmatpush3.msra.mxu0 %v598_v30 }
  0x2e   : > { %969 = vmatprep.subr.mxu0 %v597_v31  ;;  %1014 = vmatprep.subr.mxu1 %v597_v31 }
  0x2f   : > { %970 = vmatpush3.msra.mxu0 %v597_v31  ;;  %1030 = vmatpush3.msra.mxu1 %v597_v31 }
  0x30   : > { %945 = vmatmul.mubr.msk.f32.gmra.mxu0 %vm255_vm0, %v243_v19  ;;  %971 = vmatprep.subr.mxu0 %v596_v32 }
  0x31   : > { %1015 = vmatprep.subr.mxu1 %v596_v32  ;;  %972 = vmatpush3.msra.mxu0 %v596_v32 }
  0x32   : > { %1031 = vmatpush3.msra.mxu1 %v596_v32  ;;  %973 = vmatprep.subr.mxu0 %v595_v33 }
  0x33   : > { %1016 = vmatprep.subr.mxu1 %v595_v33  ;;  %974 = vmatpush3.msra.mxu0 %v595_v33 }
  0x34   : > { %1032 = vmatpush3.msra.mxu1 %v595_v33  ;;  %975 = vmatprep.subr.mxu0 %v594_v34 }
  0x35   : > { %1017 = vmatprep.subr.mxu1 %v594_v34  ;;  %976 = vmatpush3.msra.mxu0 %v594_v34 }
  0x36   : > { %1033 = vmatpush3.msra.mxu1 %v594_v34  ;;  %977 = vmatprep.subr.mxu0 %v593_v35 }
  0x37   : > { %1018 = vmatprep.subr.mxu1 %v593_v35  ;;  %978 = vmatpush3.msra.mxu0 %v593_v35 }
  0x38   : > { %1034 = vmatpush3.msra.mxu1 %v593_v35 }
  0xd4   : > { %v925_v37 = vpop.f32.mrf.mxu0 }
  0xd5   : > { %v1229_v38 = vadd.f32 %v925_v37, %v1226_v36 }
  0xd6   : > { %v370_v39 = vpop.f32.mrf.mxu0 }
  0xd7   : > { %v466_v40 = vmul.f32 0.044715, %v1229_v38  ;;  %v1233_v41 = vadd.f32 %v1226_v36, %v370_v39 }
  0xd8   : > { %v928_v42 = vpop.f32.mrf.mxu0 }
  0xd9   : > { %v482_v43 = vmul.f32 %v466_v40, %v1229_v38  ;;  %v465_v44 = vmul.f32 0.044715, %v1233_v41  ;;  %v1238_v45 = vadd.f32 %v928_v42, %v1226_v36  ;;  %v450_v42 = vmul.f32 0.5, %v1229_v38 }
  0xda   : > { %v380_v46 = vpop.f32.mrf.mxu0 }
  0xdb   : > { %v498_v47 = vmul.f32 %v482_v43, %v1229_v38  ;;  %v481_v48 = vmul.f32 %v465_v44, %v1233_v41  ;;  %v468_v49 = vmul.f32 0.044715, %v1238_v45  ;;  %v1244_v50 = vadd.f32 %v1226_v36, %v380_v46 }
  0xdc   : > { %v931_v51 = vpop.f32.mrf.mxu0 }
  0xdd   : > { %v514_v52 = vadd.f32 %v498_v47, %v1229_v38  ;;  %v484_v53 = vmul.f32 %v468_v49, %v1238_v45  ;;  %v467_v54 = vmul.f32 0.044715, %v1244_v50  ;;  %v1250_v55 = vadd.f32 %v931_v51, %v1226_v36 }
  0xde   : > { %v390_v56 = vpop.f32.mrf.mxu0  ;;  %v497_v57 = vmul.f32 %v481_v48, %v1233_v41 }
  0xdf   : > { %v530_v58 = vmul.f32 0.7978846, %v514_v52  ;;  %v483_v59 = vmul.f32 %v467_v54, %v1244_v50  ;;  %v470_v60 = vmul.f32 0.044715, %v1250_v55  ;;  %v1256_v61 = vadd.f32 %v1226_v36, %v390_v56 }
  0xe0   : > { %v934_v62 = vpop.f32.mrf.mxu0  ;;  %v513_v63 = vadd.f32 %v497_v57, %v1233_v41  ;;  %v500_v0 = vmul.f32 %v484_v53, %v1238_v45  ;;  %v449_v56 = vmul.f32 0.5, %v1233_v41 }
  0xe1   : > { %1043 = vtanh.f32 %v530_v58  ;;  %v486_v1 = vmul.f32 %v470_v60, %v1250_v55  ;;  %v469_v2 = vmul.f32 0.044715, %v1256_v61  ;;  %v1263_v3 = vadd.f32 %v934_v62, %v1226_v36 }
  0xe2   : > { %v400_v4 = vpop.f32.mrf.mxu0  ;;  %v529_v5 = vmul.f32 0.7978846, %v513_v63  ;;  %v499_v6 = vmul.f32 %v483_v59, %v1244_v50  ;;  %v516_v7 = vadd.f32 %v500_v0, %v1238_v45  ;;  %v452_v62 = vmul.f32 0.5, %v1238_v45 }
  0xe3   : > { %v485_v8 = vmul.f32 %v469_v2, %v1256_v61  ;;  %v472_v9 = vmul.f32 0.044715, %v1263_v3  ;;  %v1270_v10 = vadd.f32 %v1226_v36, %v400_v4  ;;  %v502_v11 = vmul.f32 %v486_v1, %v1250_v55 }
  0xe4   : > { %v937_v12 = vpop.f32.mrf.mxu0  ;;  %1045 = vtanh.f32 %v529_v5  ;;  %v515_v13 = vadd.f32 %v499_v6, %v1244_v50  ;;  %v532_v14 = vmul.f32 0.7978846, %v516_v7 }
  0xe5   : > { %v488_v15 = vmul.f32 %v472_v9, %v1263_v3  ;;  %v1276_v16 = vadd.f32 %v937_v12, %v1226_v36  ;;  %v501_v17 = vmul.f32 %v485_v8, %v1256_v61  ;;  %v518_v18 = vadd.f32 %v502_v11, %v1250_v55 }
  0xe6   : > { %v410_v19 = vpop.f32.mrf.mxu0  ;;  %v531_v20 = vmul.f32 0.7978846, %v515_v13  ;;  %1047 = vtanh.f32 %v532_v14  ;;  %v471_v21 = vmul.f32 0.044715, %v1270_v10 }
  0xe7   : > { %v474_v22 = vmul.f32 0.044715, %v1276_v16  ;;  %v1283_v23 = vadd.f32 %v1226_v36, %v410_v19  ;;  %v517_v24 = vadd.f32 %v501_v17, %v1256_v61  ;;  %v534_v25 = vmul.f32 0.7978846, %v518_v18 }
  0xe8   : > { %v940_v26 = vpop.f32.mrf.mxu0  ;;  %1049 = vtanh.f32 %v531_v20  ;;  %v487_v27 = vmul.f32 %v471_v21, %v1270_v10  ;;  %v504_v28 = vmul.f32 %v488_v15, %v1263_v3 }
  0xe9   : > { %v490_v29 = vmul.f32 %v474_v22, %v1276_v16  ;;  %v473_v30 = vmul.f32 0.044715, %v1283_v23  ;;  %v1291_v31 = vadd.f32 %v940_v26, %v1226_v36  ;;  %v533_v32 = vmul.f32 0.7978846, %v517_v24 }
  0xea   : > { %v420_v33 = vpop.f32.mrf.mxu0  ;;  %1051 = vtanh.f32 %v534_v25  ;;  %v503_v34 = vmul.f32 %v487_v27, %v1270_v10  ;;  %v520_v35 = vadd.f32 %v504_v28, %v1263_v3  ;;  %v451_v25 = vmul.f32 0.5, %v1244_v50 }
  0xeb   : > { %v489_v37 = vmul.f32 %v473_v30, %v1283_v23  ;;  %v476_v39 = vmul.f32 0.044715, %v1291_v31  ;;  %v1298_v40 = vadd.f32 %v1226_v36, %v420_v33  ;;  %1053 = vtanh.f32 %v533_v32 }
  0xec   : > { %v943_v43 = vpop.f32.mrf.mxu0  ;;  %v519_v44 = vadd.f32 %v503_v34, %v1270_v10  ;;  %v536_v46 = vmul.f32 0.7978846, %v520_v35  ;;  %v506_v47 = vmul.f32 %v490_v29, %v1276_v16  ;;  %v453_v33 = vmul.f32 0.5, %v1256_v61 }
  0xed   : > { %v492_v48 = vmul.f32 %v476_v39, %v1291_v31  ;;  %v475_v49 = vmul.f32 0.044715, %v1298_v40  ;;  %v1306_v51 = vadd.f32 %v943_v43, %v1226_v36  ;;  %v505_v52 = vmul.f32 %v489_v37, %v1283_v23 }
  0xee   : > { %v1044_v53 = vpop.eup %1043  ;;  %v430_v54 = vpop.f32.mrf.mxu0  ;;  %v535_v38 = vmul.f32 0.7978846, %v519_v44  ;;  %1055 = vtanh.f32 %v536_v46  ;;  %v522_v57 = vadd.f32 %v506_v47, %v1276_v16 }
  0xef   : > { %v491_v58 = vmul.f32 %v475_v49, %v1298_v40  ;;  %v478_v59 = vmul.f32 0.044715, %v1306_v51  ;;  %v1314_v60 = vadd.f32 %v1226_v36, %v430_v54  ;;  %v521_v0 = vadd.f32 %v505_v52, %v1283_v23 }
  0xf0   : > { %v946_v63 = vpop.f32.mrf.mxu0  ;;  %1057 = vtanh.f32 %v535_v38  ;;  %v538_v1 = vmul.f32 0.7978846, %v522_v57  ;;  %v508_v41 = vmul.f32 %v492_v48, %v1291_v31  ;;  %v562_v7 = vadd.f32 1.0, %v1044_v53 }
  0xf1   : > { %v1046_v2 = vpop.eup %1045  ;;  %v494_v4 = vmul.f32 %v478_v59, %v1306_v51  ;;  %v477_v5 = vmul.f32 0.044715, %v1314_v60  ;;  %v1322_v6 = vadd.f32 %v946_v63, %v1226_v36  ;;  %v537_v11 = vmul.f32 0.7978846, %v521_v0 }
  0xf2   : > { %v440_v8 = vpop.f32.mrf.mxu0  ;;  %v561_v9 = vadd.f32 1.0, %v1046_v2  ;;  %1059 = vtanh.f32 %v538_v1  ;;  %v507_v45 = vmul.f32 %v491_v58, %v1298_v40  ;;  %v524_v17 = vadd.f32 %v508_v41, %v1291_v31 }
  0xf3   : > { %v1048_v12 = vpop.eup %1047  ;;  %v493_v13 = vmul.f32 %v477_v5, %v1314_v60  ;;  %v480_v14 = vmul.f32 0.044715, %v1322_v6  ;;  %v1328_v15 = vadd.f32 %v1226_v36, %v440_v8  ;;  %1061 = vtanh.f32 %v537_v11 }
  0xf4   : > { %v577_v18 = vmul.f32 %v561_v9, %v449_v56  ;;  %v564_v19 = vadd.f32 1.0, %v1048_v12  ;;  %v523_v20 = vadd.f32 %v507_v45, %v1298_v40  ;;  %v578_v24 = vmul.f32 %v562_v7, %v450_v42 }
  0xf5   : > { %v1050_v21 = vpop.eup %1049  ;;  %v479_v22 = vmul.f32 0.044715, %v1328_v15  ;;  %v540_v26 = vmul.f32 0.7978846, %v524_v17  ;;  %v496_v27 = vmul.f32 %v480_v14, %v1322_v6  ;;  %v509_v29 = vmul.f32 %v493_v13, %v1314_v60 }
  0xf6   : > { %979 = vmatprep.mubr.f32.mxu0 %v577_v18  ;;  %v563_v28 = vadd.f32 1.0, %v1050_v21  ;;  %v539_v36 = vmul.f32 0.7978846, %v523_v20  ;;  %v510_v34 = vmul.f32 %v494_v4, %v1306_v51  ;;  %v580_v50 = vmul.f32 %v564_v19, %v452_v62 }
  0xf7   : > { %v1052_v30 = vpop.eup %1051  ;;  %v495_v32 = vmul.f32 %v479_v22, %v1328_v15  ;;  %980 = vmatmul.mubr.f32.vlgmr.msra.gmra.mxu0 %v578_v24  ;;  %1063 = vtanh.f32 %v540_v26  ;;  %v525_v39 = vadd.f32 %v509_v29, %v1314_v60  ;;  %v512_v48 = vmul.f32 %v496_v27, %v1322_v6 }
  0xf8   : > { %v1054_v35 = vpop.eup %1053  ;;  %v579_v37 = vmul.f32 %v563_v28, %v451_v25  ;;  %1065 = vtanh.f32 %v539_v36  ;;  %v566_v43 = vadd.f32 1.0, %v1052_v30  ;;  %v526_v44 = vadd.f32 %v510_v34, %v1306_v51 }
  0xf9   : > { %v565_v42 = vadd.f32 1.0, %v1054_v35  ;;  %v511_v46 = vmul.f32 %v495_v32, %v1328_v15  ;;  %v541_v47 = vmul.f32 0.7978846, %v525_v39  ;;  %v454_v52 = vmul.f32 0.5, %v1250_v55 }
  0xfa   : > { %982 = vmatprep.mubr.f32.mxu0 %v579_v37  ;;  %v542_v53 = vmul.f32 0.7978846, %v526_v44  ;;  %v528_v56 = vadd.f32 %v512_v48, %v1322_v6  ;;  %v455_v62 = vmul.f32 0.5, %v1270_v10  ;;  %v456_v55 = vmul.f32 0.5, %v1263_v3 }
  0xfb   : > { %v1056_v61 = vpop.eup %1055  ;;  %983 = vmatmul.mubr.f32.gmra.mxu0 %v580_v50  ;;  %v581_v49 = vmul.f32 %v565_v42, %v453_v33  ;;  %v527_v54 = vadd.f32 %v511_v46, %v1328_v15  ;;  %1067 = vtanh.f32 %v541_v47  ;;  %v582_v57 = vmul.f32 %v566_v43, %v454_v52 }
  0xfc   : > { %v568_v58 = vadd.f32 1.0, %v1056_v61  ;;  %1069 = vtanh.f32 %v542_v53  ;;  %v544_v0 = vmul.f32 0.7978846, %v528_v56  ;;  %v457_v7 = vmul.f32 0.5, %v1283_v23 }
  0xfd   : > { %v1058_v38 = vpop.eup %1057  ;;  %985 = vmatprep.mubr.f32.mxu0 %v581_v49  ;;  %v543_v59 = vmul.f32 0.7978846, %v527_v54  ;;  %v458_v9 = vmul.f32 0.5, %v1276_v16  ;;  %v459_v3 = vmul.f32 0.5, %v1298_v40  ;;  %v460_v17 = vmul.f32 0.5, %v1291_v31 }
  0xfe   : > { %v567_v63 = vadd.f32 1.0, %v1058_v38  ;;  %v584_v4 = vmul.f32 %v568_v58, %v456_v55  ;;  %v461_v21 = vmul.f32 0.5, %v1314_v60  ;;  %v462_v22 = vmul.f32 0.5, %v1306_v51  ;;  %v860_v51 = vld [vmem:[%s1405_s4] ss:$0 sm:$0xff] }
  0xff   : > { %v1060_v1 = vpop.eup %1059  ;;  %986 = vmatmul.mubr.f32.gmra.mxu0 %v582_v57  ;;  %1071 = vtanh.f32 %v543_v59  ;;  %v463_v28 = vmul.f32 0.5, %v1328_v15  ;;  %v464_v30 = vmul.f32 0.5, %v1322_v6 }
 0x100   : > { %v583_v41 = vmul.f32 %v567_v63, %v455_v62  ;;  %1073 = vtanh.f32 %v544_v0  ;;  %v1062_v2 = vpop.eup %1061  ;;  %v570_v5 = vadd.f32 1.0, %v1060_v1 }
 0x101   : > { %v569_v8 = vadd.f32 1.0, %v1062_v2 }
 0x102   : > { %988 = vmatprep.mubr.f32.mxu1 %v583_v41  ;;  %v586_v12 = vmul.f32 %v570_v5, %v458_v9 }
 0x103   : > { %989 = vmatmul.mubr.f32.vlgmr.msra.gmra.mxu1 %v584_v4  ;;  %v585_v11 = vmul.f32 %v569_v8, %v457_v7 }
 0x104   : > { %v1064_v10 = vpop.eup %1063 }
 0x105   : > { %v1066_v45 = vpop.eup %1065  ;;  %v572_v13 = vadd.f32 1.0, %v1064_v10  ;;  %991 = vmatprep.mubr.f32.mxu1 %v585_v11 }
 0x106   : > { %v571_v14 = vadd.f32 1.0, %v1066_v45 }
 0x107   : > { %992 = vmatmul.mubr.f32.gmra.mxu1 %v586_v12  ;;  %v588_v20 = vmul.f32 %v572_v13, %v460_v17 }
 0x108   : > { %v587_v18 = vmul.f32 %v571_v14, %v459_v3  ;;  %v1068_v19 = vpop.eup %1067 }
 0x109   : > { %v1070_v23 = vpop.eup %1069  ;;  %v573_v16 = vadd.f32 1.0, %v1068_v19 }
 0x10a   : > { %994 = vmatprep.mubr.f32.mxu1 %v587_v18  ;;  %v574_v24 = vadd.f32 1.0, %v1070_v23 }
 0x10b   : > { %995 = vmatmul.mubr.f32.gmra.mxu1 %v588_v20  ;;  %v589_v26 = vmul.f32 %v573_v16, %v461_v21 }
 0x10c   : > { %v1072_v25 = vpop.eup %1071  ;;  %v590_v27 = vmul.f32 %v574_v24, %v462_v22 }
 0x10d   : > { %v1074_v40 = vpop.eup %1073  ;;  %v575_v31 = vadd.f32 1.0, %v1072_v25  ;;  %997 = vmatprep.mubr.f32.mxu1 %v589_v26 }
 0x10e   : > { %v576_v36 = vadd.f32 1.0, %v1074_v40 }
 0x10f   : > { %998 = vmatmul.mubr.f32.gmra.mxu1 %v590_v27  ;;  %v591_v29 = vmul.f32 %v575_v31, %v463_v28 }
 0x110   : > { %v592_v60 = vmul.f32 %v576_v36, %v464_v30 }
 0x111   : > { %1000 = vmatprep.mubr.f32.mxu1 %v591_v29 }
 0x113   : > { %1001 = vmatmul.mubr.f32.gmra.mxu1 %v592_v60 }
 0x1b7   : > { %v981_v15 = vpop.f32.mrf.mxu0 }
 0x1b8   : > { %v688_v6 = vadd.f32 %v981_v15, %v860_v51 }
 0x1b9   : > { %v682_v32 = vpop.f32.mrf.mxu0 }
 0x1ba   : > { %763 = vst.msk [vmem:[%s1364_s26 + $0x8] sm:$0xff] %vm761_vm1, %v688_v6  ;;  %v683_v33 = vadd.f32 %v860_v51, %v682_v32 }
 0x1bb   : > { %v984_v34 = vpop.f32.mrf.mxu0 }
 0x1bc   : > { %762 = vst.msk [vmem:[%s1364_s26] sm:$0xff] %vm761_vm1, %v683_v33  ;;  %v698_v35 = vadd.f32 %v984_v34, %v860_v51 }
 0x1bd   : > { %v692_v37 = vpop.f32.mrf.mxu0 }
 0x1be   : > { %765 = vst.msk [vmem:[%s1364_s26 + $0x18] sm:$0xff] %vm761_vm1, %v698_v35  ;;  %v693_v50 = vadd.f32 %v860_v51, %v692_v37 }
 0x1bf   : > { %v987_v39 = vpop.f32.mrf.mxu0 }
 0x1c0   : > { %764 = vst.msk [vmem:[%s1364_s26 + $0x10] sm:$0xff] %vm761_vm1, %v693_v50  ;;  %v708_v42 = vadd.f32 %v987_v39, %v860_v51 }
 0x1c1   : > { %v702_v43 = vpop.f32.mrf.mxu0 }
 0x1c2   : > { %767 = vst.msk [vmem:[%s1364_s26 + $0x28] sm:$0xff] %vm761_vm1, %v708_v42  ;;  %v703_v44 = vadd.f32 %v860_v51, %v702_v43 }
 0x1c3   : > { %v990_v46 = vpop.f32.mrf.mxu1 }
 0x1c4   : > { %766 = vst.msk [vmem:[%s1364_s26 + $0x20] sm:$0xff] %vm761_vm1, %v703_v44  ;;  %v718_v47 = vadd.f32 %v990_v46, %v860_v51 }
 0x1c5   : > { %v712_v48 = vpop.f32.mrf.mxu1 }
 0x1c6   : > { %769 = vst.msk [vmem:[%s1364_s26 + $0x38] sm:$0xff] %vm761_vm1, %v718_v47  ;;  %v713_v61 = vadd.f32 %v860_v51, %v712_v48 }
 0x1c7   : > { %v993_v49 = vpop.f32.mrf.mxu1 }
 0x1c8   : > { %768 = vst.msk [vmem:[%s1364_s26 + $0x30] sm:$0xff] %vm761_vm1, %v713_v61  ;;  %v728_v52 = vadd.f32 %v993_v49, %v860_v51 }
 0x1c9   : > { %v722_v53 = vpop.f32.mrf.mxu1 }
 0x1ca   : > { %771 = vst.msk [vmem:[%s1364_s26 + $0x48] sm:$0xff] %vm761_vm1, %v728_v52  ;;  %v723_v54 = vadd.f32 %v860_v51, %v722_v53 }
 0x1cb   : > { %v996_v56 = vpop.f32.mrf.mxu1 }
 0x1cc   : > { %770 = vst.msk [vmem:[%s1364_s26 + $0x40] sm:$0xff] %vm761_vm1, %v723_v54  ;;  %v738_v38 = vadd.f32 %v996_v56, %v860_v51 }
 0x1cd   : > { %v732_v57 = vpop.f32.mrf.mxu1 }
 0x1ce   : > { %773 = vst.msk [vmem:[%s1364_s26 + $0x58] sm:$0xff] %vm761_vm1, %v738_v38  ;;  %v733_v58 = vadd.f32 %v860_v51, %v732_v57 }
 0x1cf   : > { %v999_v59 = vpop.f32.mrf.mxu1 }
 0x1d0   : > { %772 = vst.msk [vmem:[%s1364_s26 + $0x50] sm:$0xff] %vm761_vm1, %v733_v58  ;;  %v748_v62 = vadd.f32 %v999_v59, %v860_v51 }
 0x1d1   : > { %v742_v63 = vpop.f32.mrf.mxu1 }
 0x1d2   : > { %775 = vst.msk [vmem:[%s1364_s26 + $0x68] sm:$0xff] %vm761_vm1, %v748_v62  ;;  %v743_v0 = vadd.f32 %v860_v51, %v742_v63 }
 0x1d3   : > { %v1002_v1 = vpop.f32.mrf.mxu1 }
 0x1d4   : > { %774 = vst.msk [vmem:[%s1364_s26 + $0x60] sm:$0xff] %vm761_vm1, %v743_v0  ;;  %v758_v55 = vadd.f32 %v1002_v1, %v860_v51 }
 0x1d5   : > { %v752_v41 = vpop.f32.mrf.mxu1 }
 0x1d6   : > { %777 = vst.msk [vmem:[%s1364_s26 + $0x78] sm:$0xff] %vm761_vm1, %v758_v55  ;;  %v753_v2 = vadd.f32 %v860_v51, %v752_v41 }
 0x1d8   : > { %776 = vst.msk [vmem:[%s1364_s26 + $0x70] sm:$0xff] %vm761_vm1, %v753_v2 }
 0x1d9 PF: > { %s15_s18 = sadd.s32 1, %s1081_s18  }
 0x1da   : > { %p12_p4 = scmp.ge.s32.totalorder %s15_s18, 6  }
 0x1dc   :  { %14 = sbr.rel (!%p12_p4) target bundleno = 1 (0x1), region = 70 }

</bundles_post_ra>
